<compile_context>
chip_gen: v7x
topology: tpu7x:2x2x1
jax: 0.10.0
libtpu: 0.0.40
codegen_flags: <defaults>
</compile_context>

<pallas_src>
import math
import functools

import jax
import jax.numpy as jnp
from jax.experimental import pallas as pl
from jax.experimental.pallas import tpu as pltpu


# --------------------------- VMEM budget / tiling ---------------------------

@functools.lru_cache(maxsize=1)
def _vmem_budget_bytes():
    cap = 128 * 1024 * 1024
    try:
        info = pltpu.get_tpu_info()
        cap = int(getattr(info, "vmem_capacity_bytes", cap))
    except Exception:
        pass
    # ~25% headroom: v7x 64 MiB -> 48 MiB, v5e/v6e 128 MiB -> 96 MiB.
    return (cap * 3) // 4


def _pick_tiles(M, K, N, x_bytes, w_bytes, out_bytes, have_ln, have_res,
                budget):
    """Pick (tm, tn) so double-buffered tiles fit ~75% of the VMEM budget."""
    # Lane tile: full N when small, else a 512-wide multiple of 128.
    tn = N if N <= 512 else 512
    tm = min(8, M)
    for cand in (4096, 2048, 1024, 512, 256, 128, 64, 32, 16, 8):
        tm_eff = min(cand, M)
        use = 2 * tm_eff * K * x_bytes            # x block (double buffered)
        use += 2 * K * tn * w_bytes               # streamed weight tile
        use += 2 * tm_eff * tn * out_bytes        # output tile
        if have_ln:
            use += tm_eff * K * w_bytes           # LN(x) scratch (single)
        if have_res:
            use += 2 * tm_eff * tn * x_bytes      # residual tile
        if use <= 0.75 * budget:
            tm = tm_eff
            break
    return tm, tn


# --------------------------- in-kernel helpers ------------------------------

def _gelu_tanh(x):
    # tanh-approx GELU: one EUP tanh instead of the erf polynomial's
    # abs/divide/Horner/exp; error << bf16 resolution for inference.
    c = 0.7978845608028654  # sqrt(2/pi)
    return 0.5 * x * (1.0 + jnp.tanh(c * (x + 0.044715 * x * x * x)))


# ------------------------- fused LN/Linear kernel ---------------------------

def _fused_linear_kernel(*refs, have_ln, have_bias, have_res, activation,
                         transpose_rhs, eps):
    it = iter(refs)
    x_ref = next(it)
    if have_ln:
        g_ref = next(it)
        be_ref = next(it)
    w_ref = next(it)
    bias_ref = next(it) if have_bias else None
    res_ref = next(it) if have_res else None
    o_ref = next(it)
    xln_ref = next(it) if have_ln else None          # VMEM scratch

    if have_ln:
        # LayerNorm computed once per row block (j == 0) and cached; the j axis
        # is "arbitrary" so it is never split across cores.
        @pl.when(pl.program_id(1) == 0)
        def _():
            xf = x_ref[...].astype(jnp.float32)
            mu = jnp.mean(xf, axis=-1, keepdims=True)
            xc = xf - mu
            var = jnp.mean(xc * xc, axis=-1, keepdims=True)  # biased, like torch LN
            xn = xc * jax.lax.rsqrt(var + eps)
            xln_ref[...] = (xn * g_ref[...] + be_ref[...]).astype(xln_ref.dtype)
        x = xln_ref[...]
    else:
        x = x_ref[...]

    if transpose_rhs:
        # weight tile is (tn, K): contract on K without materialising W^T.
        acc = jax.lax.dot_general(x, w_ref[...], (((1,), (1,)), ((), ())),
                                  preferred_element_type=jnp.float32)
    else:
        acc = jnp.dot(x, w_ref[...], preferred_element_type=jnp.float32)

    if have_bias:
        acc = acc + bias_ref[...]
    if activation == "gelu":
        acc = _gelu_tanh(acc)
    if have_res:
        acc = acc + res_ref[...].astype(jnp.float32)
    o_ref[...] = acc.astype(o_ref.dtype)


def fused_linear(x, w, *, ln=None, bias=None, residual=None, activation=None,
                 transpose_rhs=False, out_dtype=None, eps=1e-5):
    M, K = x.shape
    N = w.shape[0] if transpose_rhs else w.shape[1]
    out_dtype = jnp.dtype(out_dtype or x.dtype)

    have_ln = ln is not None
    have_bias = bias is not None
    have_res = residual is not None

    budget = _vmem_budget_bytes()
    tm, tn = _pick_tiles(M, K, N, x.dtype.itemsize, w.dtype.itemsize,
                         out_dtype.itemsize, have_ln, have_res, budget)
    grid_m, grid_n = pl.cdiv(M, tm), pl.cdiv(N, tn)

    inputs = [x]
    in_specs = [pl.BlockSpec((tm, K), lambda i, j: (i, 0))]      # resident over j
    if have_ln:
        g, b = ln
        inputs += [g.reshape(1, K).astype(jnp.float32),
                   b.reshape(1, K).astype(jnp.float32)]
        in_specs += [pl.BlockSpec((1, K), lambda i, j: (0, 0)),
                     pl.BlockSpec((1, K), lambda i, j: (0, 0))]
    inputs.append(w)
    if transpose_rhs:
        in_specs.append(pl.BlockSpec((tn, K), lambda i, j: (j, 0)))
    else:
        in_specs.append(pl.BlockSpec((K, tn), lambda i, j: (0, j)))
    # TODO(synk): consider pipeline_mode=pl.Buffered(3) on the weight spec on
    # v5e/v6e if the weight DMA is still exposed after the larger tm.
    if have_bias:
        inputs.append(bias.reshape(1, N).astype(jnp.float32))
        in_specs.append(pl.BlockSpec((1, tn), lambda i, j: (0, j)))
    if have_res:
        inputs.append(residual)
        in_specs.append(pl.BlockSpec((tm, tn), lambda i, j: (i, j)))

    scratch_shapes = []
    if have_ln:
        scratch_shapes.append(pltpu.VMEM((tm, K), w.dtype))      # LN(x) cache

    kernel = functools.partial(
        _fused_linear_kernel, have_ln=have_ln, have_bias=have_bias,
        have_res=have_res, activation=activation, transpose_rhs=transpose_rhs,
        eps=eps)

    flops = 2 * M * K * N
    bytes_accessed = (M * K * x.dtype.itemsize                   # x, read once
                      + grid_m * K * N * w.dtype.itemsize        # weight re-reads
                      + M * N * out_dtype.itemsize)              # output
    if have_bias:
        bytes_accessed += grid_m * N * 4
    if have_res:
        bytes_accessed += M * N * residual.dtype.itemsize
    transcend = M * N if activation == "gelu" else 0

    return pl.pallas_call(
        kernel,
        out_shape=jax.ShapeDtypeStruct((M, N), out_dtype),
        grid=(grid_m, grid_n),
        in_specs=in_specs,
        out_specs=pl.BlockSpec((tm, tn), lambda i, j: (i, j)),
        scratch_shapes=scratch_shapes,
        compiler_params=pltpu.CompilerParams(
            dimension_semantics=("parallel",
                                 "arbitrary" if have_ln else "parallel"),
            vmem_limit_bytes=budget),
        cost_estimate=pl.CostEstimate(flops=int(flops),
                                      transcendentals=int(transcend),
                                      bytes_accessed=int(bytes_accessed)),
    )(*inputs)


# ----------------------------- attention kernel -----------------------------

def _attention_kernel(qkv_q_ref, qkv_kv_ref, cos_q_ref, sin_q_ref,
                      cos_k_ref, sin_k_ref, o_ref, *, num_heads, head_dim,
                      scale, seq_len, tq):
    # qkv_*: bf16 blocks of the fused QKV activation, columns [q|k|v] each
    # head-major.  qkv_q_ref: (tq, 3*dim) rows of the current q tile;
    # qkv_kv_ref: (S, 3*dim) full per-batch block (resident across q tiles).
    # o_ref: (tq, dim) lane-dense output consumed directly by out_proj.
    dim = num_heads * head_dim
    hd2 = head_dim // 2
    qi = pl.program_id(1)

    cos_q = cos_q_ref[...]                           # (tq, Dh/2) f32
    sin_q = sin_q_ref[...]
    cos_k = cos_k_ref[...]                           # (S, Dh/2) f32
    sin_k = sin_k_ref[...]

    row = qi * tq + jax.lax.broadcasted_iota(jnp.int32, (tq, seq_len), 0)
    col = jax.lax.broadcasted_iota(jnp.int32, (tq, seq_len), 1)
    causal = col > row
    neg = jnp.finfo(jnp.float32).min

    outs = []
    for h in range(num_heads):
        q0 = h * head_dim
        k0 = dim + h * head_dim
        v0 = 2 * dim + h * head_dim

        # fold 1/sqrt(Dh) into q before rotation (rotation is linear)
        q1 = qkv_q_ref[:, q0:q0 + hd2].astype(jnp.float32) * scale
        q2 = qkv_q_ref[:, q0 + hd2:q0 + head_dim].astype(jnp.float32) * scale
        k1 = qkv_kv_ref[:, k0:k0 + hd2].astype(jnp.float32)
        k2 = qkv_kv_ref[:, k0 + hd2:k0 + head_dim].astype(jnp.float32)
        v = qkv_kv_ref[:, v0:v0 + head_dim]

        # RoPE (the torch cache duplicates cos/sin across halves).  Halves are
        # kept separate: score = a1 @ b1^T + a2 @ b2^T, no sub-128-lane concat.
        a1 = (q1 * cos_q - q2 * sin_q).astype(qkv_q_ref.dtype)
        a2 = (q2 * cos_q + q1 * sin_q).astype(qkv_q_ref.dtype)
        b1 = (k1 * cos_k - k2 * sin_k).astype(qkv_q_ref.dtype)
        b2 = (k2 * cos_k + k1 * sin_k).astype(qkv_q_ref.dtype)

        s = jax.lax.dot_general(a1, b1, (((1,), (1,)), ((), ())),
                                preferred_element_type=jnp.float32)
        s = s + jax.lax.dot_general(a2, b2, (((1,), (1,)), ((), ())),
                                    preferred_element_type=jnp.float32)
        s = jnp.where(causal, neg, s)
        s = s - jnp.max(s, axis=-1, keepdims=True)
        p = jnp.exp(s)
        inv_l = pl.reciprocal(jnp.sum(p, axis=-1, keepdims=True), approx=True)

        o = jnp.dot(p.astype(v.dtype), v, preferred_element_type=jnp.float32)
        outs.append(o * inv_l)                       # normalize (tq,Dh), not (tq,S)

    # single lane-dense (tq, dim) store instead of per-head masked stores
    o_ref[...] = jnp.concatenate(outs, axis=-1).astype(o_ref.dtype)


def attention_pallas(qkv, cos_half, sin_half, *, batch, seq_len, num_heads,
                     head_dim, out_dtype):
    M = qkv.shape[0]                                 # == batch * seq_len
    dim = num_heads * head_dim
    hd2 = head_dim // 2
    scale = 1.0 / math.sqrt(head_dim)
    budget = _vmem_budget_bytes()

    # q-row tile: bounds per-head (tq, S) intermediates and gives the megacore
    # a second parallel axis for small batch.
    tq = seq_len
    if seq_len > 256:
        for cand in (256, 128, 64, 32, 16, 8):
            if seq_len % cand == 0:
                tq = cand
                break
    nq = seq_len // tq

    kernel = functools.partial(_attention_kernel, num_heads=num_heads,
                               head_dim=head_dim, scale=scale,
                               seq_len=seq_len, tq=tq)

    flops = 4 * batch * num_heads * seq_len * seq_len * head_dim
    bytes_accessed = (batch * seq_len * 3 * dim * qkv.dtype.itemsize   # kv block / batch
                      + M * 3 * dim * qkv.dtype.itemsize               # q tiles
                      + M * dim * jnp.dtype(out_dtype).itemsize)

    return pl.pallas_call(
        kernel,
        out_shape=jax.ShapeDtypeStruct((M, dim), out_dtype),
        grid=(batch, nq),
        in_specs=[
            pl.BlockSpec((tq, 3 * dim), lambda b, qi: (b * nq + qi, 0)),
            pl.BlockSpec((seq_len, 3 * dim), lambda b, qi: (b, 0)),   # resident over qi
            pl.BlockSpec((tq, hd2), lambda b, qi: (qi, 0)),
            pl.BlockSpec((tq, hd2), lambda b, qi: (qi, 0)),
            pl.BlockSpec((seq_len, hd2), lambda b, qi: (0, 0)),
            pl.BlockSpec((seq_len, hd2), lambda b, qi: (0, 0)),
        ],
        out_specs=pl.BlockSpec((tq, dim), lambda b, qi: (b * nq + qi, 0)),
        compiler_params=pltpu.CompilerParams(
            dimension_semantics=("parallel", "parallel"),
            vmem_limit_bytes=budget),
        cost_estimate=pl.CostEstimate(
            flops=int(flops),
            transcendentals=int(batch * num_heads * seq_len * seq_len),
            bytes_accessed=int(bytes_accessed)),
    )(qkv, qkv, cos_half, sin_half, cos_half, sin_half)


# ------------------------------ model wrapper -------------------------------

def init_params(key, vocab_size, n_layers, dim, num_heads, head_dim, ff_dim,
                param_dtype=jnp.bfloat16):
    # _init_weights: all Linear weights & Embedding ~ N(0, 0.02), biases zero,
    # LayerNorm gamma=1 / beta=0.  Weights stored as (in, out) so y = x @ W + b.
    # Matmul weights / embedding in bf16; LN params & biases stay f32.
    std = 0.02
    keys = jax.random.split(key, 1 + 4 * n_layers)
    emb = (jax.random.normal(keys[0], (vocab_size, dim), jnp.float32)
           * std).astype(param_dtype)
    layers = []
    ki = 1
    for _ in range(n_layers):
        w_qkv = (jax.random.normal(keys[ki], (dim, 3 * num_heads * head_dim),
                                   jnp.float32) * std).astype(param_dtype); ki += 1
        w_out = (jax.random.normal(keys[ki], (num_heads * head_dim, dim),
                                   jnp.float32) * std).astype(param_dtype); ki += 1
        w_ff1 = (jax.random.normal(keys[ki], (dim, ff_dim),
                                   jnp.float32) * std).astype(param_dtype); ki += 1
        w_ff2 = (jax.random.normal(keys[ki], (ff_dim, dim),
                                   jnp.float32) * std).astype(param_dtype); ki += 1
        layers.append(dict(
            ln1_g=jnp.ones((dim,), jnp.float32), ln1_b=jnp.zeros((dim,), jnp.float32),
            ln2_g=jnp.ones((dim,), jnp.float32), ln2_b=jnp.zeros((dim,), jnp.float32),
            w_qkv=w_qkv, w_out=w_out,
            w_ff1=w_ff1, b_ff1=jnp.zeros((ff_dim,), jnp.float32),
            w_ff2=w_ff2, b_ff2=jnp.zeros((dim,), jnp.float32)))
    return dict(emb=emb, layers=layers,
                lnf_g=jnp.ones((dim,), jnp.float32),
                lnf_b=jnp.zeros((dim,), jnp.float32))


def rope_cache_half(seq_len, head_dim):
    # cos/sin of the (S, Dh/2) half-cache; the torch cache duplicates it across
    # both halves, so cos1 == cos2 and sin1 == sin2.
    inv_freq = 1.0 / (10000.0 ** (jnp.arange(0, head_dim, 2, dtype=jnp.float32)
                                  / head_dim))
    t = jnp.arange(seq_len, dtype=jnp.float32)
    freqs = jnp.outer(t, inv_freq)                   # (S, Dh/2)
    return jnp.cos(freqs), jnp.sin(freqs)


def gpt_forward(params, input_ids, *, num_heads, head_dim):
    B, S = input_ids.shape
    emb = params["emb"]                              # (vocab, dim) bf16
    vocab, dim = emb.shape
    assert num_heads * head_dim == dim

    # Token embedding gather kept as plain XLA glue.
    x = emb[input_ids.reshape(-1)]                   # (B*S, dim) bf16
    cos_half, sin_half = rope_cache_half(S, head_dim)

    # TODO(synk): optional attention_mask is not supported; causal mask only.
    for layer in params["layers"]:
        # ---- attention sub-block: x = x + out_proj(attn(LN1(x))) ----
        qkv = fused_linear(x, layer["w_qkv"],
                           ln=(layer["ln1_g"], layer["ln1_b"]))      # (B*S, 3*dim)
        attn = attention_pallas(qkv, cos_half, sin_half, batch=B, seq_len=S,
                                num_heads=num_heads, head_dim=head_dim,
                                out_dtype=x.dtype)                   # (B*S, dim)
        x = fused_linear(attn, layer["w_out"], residual=x)

        # ---- feed-forward sub-block: x = x + FF2(GELU(FF1(LN2(x)))) ----
        h = fused_linear(x, layer["w_ff1"],
                         ln=(layer["ln2_g"], layer["ln2_b"]),
                         bias=layer["b_ff1"], activation="gelu")     # (B*S, ff)
        x = fused_linear(h, layer["w_ff2"], bias=layer["b_ff2"], residual=x)

    # final LayerNorm + tied LM head (contract on dim, no emb.T materialised).
    # bf16 logits halve the largest HBM store in the model (memory-bound layer).
    logits = fused_linear(x, emb, ln=(params["lnf_g"], params["lnf_b"]),
                          transpose_rhs=True, out_dtype=jnp.bfloat16)
    return logits.reshape(B, S, vocab)


# ----------------------------------- main -----------------------------------

if __name__ == "__main__":
    vocab_size = 64
    n_layers = 2
    dim = 32
    num_heads = 4
    head_dim = 8
    ff_dim = 64
    B, S = 2, 8

    key = jax.random.PRNGKey(0)
    pkey, dkey = jax.random.split(key)
    params = init_params(pkey, vocab_size, n_layers, dim, num_heads, head_dim,
                         ff_dim)
    input_ids = jax.random.randint(dkey, (B, S), 0, vocab_size, dtype=jnp.int32)

    fwd = jax.jit(functools.partial(gpt_forward, num_heads=num_heads,
                                    head_dim=head_dim))
    logits = fwd(params, input_ids)
    jax.block_until_ready(logits)

    assert logits.shape == (B, S, vocab_size)
    assert logits.dtype == jnp.bfloat16
    assert bool(jnp.isfinite(logits.astype(jnp.float32)).all())
    print("KERNEL_OK")
</pallas_src>

<mosaic_0001>
module attributes {stable_mosaic.version = 11 : i64} {
  func.func @_fused_linear_kernel(%arg0: i32, %arg1: i32, %arg2: memref<16x32xbf16, #tpu.memory_space<vmem>>, %arg3: memref<1x32xf32, #tpu.memory_space<vmem>>, %arg4: memref<1x32xf32, #tpu.memory_space<vmem>>, %arg5: memref<32x96xbf16, #tpu.memory_space<vmem>>, %arg6: memref<16x96xbf16, #tpu.memory_space<vmem>>, %arg7: memref<16x32xbf16, #tpu.memory_space<vmem>>) attributes {dimension_semantics = [#tpu.dimension_semantics<parallel>, #tpu.dimension_semantics<arbitrary>], iteration_bounds = array<i64: 1, 1>, scalar_prefetch = 0 : i64, scratch_operands = 1 : i64, tpu.core_type = #tpu.core_type<tc>, window_params = [{transform_indices = @transform_0, window_bounds = array<i64: 16, 32>}, {pipeline_mode = #tpu.pipeline_mode<synchronous>, transform_indices = @transform_1, window_bounds = array<i64: 1, 32>}, {pipeline_mode = #tpu.pipeline_mode<synchronous>, transform_indices = @transform_2, window_bounds = array<i64: 1, 32>}, {transform_indices = @transform_3, window_bounds = array<i64: 32, 96>}, {transform_indices = @transform_4, window_bounds = array<i64: 16, 96>}]} {
    %c0_i32 = arith.constant 0 : i32
    %0 = arith.cmpi eq, %arg1, %c0_i32 : i32
    %1 = arith.extui %0 : i1 to i32
    %c0_i32_0 = arith.constant 0 : i32
    %2 = arith.cmpi ne, %1, %c0_i32_0 : i32
    scf.if %2 {
      %c0_6 = arith.constant 0 : index
      %c0_7 = arith.constant 0 : index
      %8 = vector.load %arg2[%c0_6, %c0_7] : memref<16x32xbf16, #tpu.memory_space<vmem>>, vector<16x32xbf16>
      %9 = arith.extf %8 : vector<16x32xbf16> to vector<16x32xf32>
      %cst_8 = arith.constant dense<0.000000e+00> : vector<16xf32>
      %10 = vector.multi_reduction <add>, %9, %cst_8 [1] : vector<16x32xf32> to vector<16xf32>
      %11 = vector.shape_cast %10 : vector<16xf32> to vector<16x1xf32>
      %cst_9 = arith.constant 3.200000e+01 : f32
      %12 = vector.broadcast %cst_9 : f32 to vector<16x1xf32>
      %13 = arith.divf %11, %12 : vector<16x1xf32>
      %14 = vector.broadcast %13 : vector<16x1xf32> to vector<16x32xf32>
      %15 = arith.subf %9, %14 : vector<16x32xf32>
      %16 = arith.mulf %15, %15 : vector<16x32xf32>
      %cst_10 = arith.constant dense<0.000000e+00> : vector<16xf32>
      %17 = vector.multi_reduction <add>, %16, %cst_10 [1] : vector<16x32xf32> to vector<16xf32>
      %18 = vector.shape_cast %17 : vector<16xf32> to vector<16x1xf32>
      %cst_11 = arith.constant 3.200000e+01 : f32
      %19 = vector.broadcast %cst_11 : f32 to vector<16x1xf32>
      %20 = arith.divf %18, %19 : vector<16x1xf32>
      %cst_12 = arith.constant 9.99999974E-6 : f32
      %21 = vector.broadcast %cst_12 : f32 to vector<16x1xf32>
      %22 = arith.addf %20, %21 : vector<16x1xf32>
      %23 = math.rsqrt %22 : vector<16x1xf32>
      %24 = vector.broadcast %23 : vector<16x1xf32> to vector<16x32xf32>
      %25 = arith.mulf %15, %24 : vector<16x32xf32>
      %c0_13 = arith.constant 0 : index
      %c0_14 = arith.constant 0 : index
      %26 = vector.load %arg3[%c0_13, %c0_14] : memref<1x32xf32, #tpu.memory_space<vmem>>, vector<1x32xf32>
      %27 = vector.broadcast %26 : vector<1x32xf32> to vector<16x32xf32>
      %28 = arith.mulf %25, %27 : vector<16x32xf32>
      %c0_15 = arith.constant 0 : index
      %c0_16 = arith.constant 0 : index
      %29 = vector.load %arg4[%c0_15, %c0_16] : memref<1x32xf32, #tpu.memory_space<vmem>>, vector<1x32xf32>
      %30 = vector.broadcast %29 : vector<1x32xf32> to vector<16x32xf32>
      %31 = arith.addf %28, %30 : vector<16x32xf32>
      %32 = arith.truncf %31 : vector<16x32xf32> to vector<16x32xbf16>
      %c0_17 = arith.constant 0 : index
      %c0_18 = arith.constant 0 : index
      %33 = vector.load %arg7[%c0_17, %c0_18] : memref<16x32xbf16, #tpu.memory_space<vmem>>, vector<16x32xbf16>
      tpu.vector_store %arg7[%c0_17, %c0_18], %32 {strides = array<i32>} : memref<16x32xbf16, #tpu.memory_space<vmem>>, vector<16x32xbf16>,
    } else {
    }
    %c0 = arith.constant 0 : index
    %c0_1 = arith.constant 0 : index
    %3 = vector.load %arg7[%c0, %c0_1] : memref<16x32xbf16, #tpu.memory_space<vmem>>, vector<16x32xbf16>
    %c0_2 = arith.constant 0 : index
    %c0_3 = arith.constant 0 : index
    %4 = vector.load %arg5[%c0_2, %c0_3] : memref<32x96xbf16, #tpu.memory_space<vmem>>, vector<32x96xbf16>
    %cst = arith.constant dense<0.000000e+00> : vector<16x96xf32>
    %5 = tpu.matmul %3, %4, %cst {dimension_numbers = #tpu.dot_dimension_numbers<[1], [0], [0], [1], [0, 0, 1, 1], [], []>} : vector<16x32xbf16>, vector<32x96xbf16>, vector<16x96xf32> -> vector<16x96xf32>
    %6 = arith.truncf %5 : vector<16x96xf32> to vector<16x96xbf16>
    %c0_4 = arith.constant 0 : index
    %c0_5 = arith.constant 0 : index
    %7 = vector.load %arg6[%c0_4, %c0_5] : memref<16x96xbf16, #tpu.memory_space<vmem>>, vector<16x96xbf16>
    tpu.vector_store %arg6[%c0_4, %c0_5], %6 {strides = array<i32>} : memref<16x96xbf16, #tpu.memory_space<vmem>>, vector<16x96xbf16>,
    return
  }
  func.func @transform_0(%arg0: i32, %arg1: i32) -> (i32, i32) {
    %c0_i32 = arith.constant 0 : i32
    %c0_i32_0 = arith.constant 0 : i32
    return %arg0, %c0_i32 : i32, i32
  }
  func.func @transform_1(%arg0: i32, %arg1: i32) -> (i32, i32) {
    %c0_i32 = arith.constant 0 : i32
    %c0_i32_0 = arith.constant 0 : i32
    %c0_i32_1 = arith.constant 0 : i32
    return %c0_i32, %c0_i32_0 : i32, i32
  }
  func.func @transform_2(%arg0: i32, %arg1: i32) -> (i32, i32) {
    %c0_i32 = arith.constant 0 : i32
    %c0_i32_0 = arith.constant 0 : i32
    %c0_i32_1 = arith.constant 0 : i32
    return %c0_i32, %c0_i32_0 : i32, i32
  }
  func.func @transform_3(%arg0: i32, %arg1: i32) -> (i32, i32) {
    %c0_i32 = arith.constant 0 : i32
    %c0_i32_0 = arith.constant 0 : i32
    return %c0_i32, %arg1 : i32, i32
  }
  func.func @transform_4(%arg0: i32, %arg1: i32) -> (i32, i32) {
    %c0_i32 = arith.constant 0 : i32
    return %arg0, %arg1 : i32, i32
  }
}

module attributes {stable_mosaic.version = 11 : i64} {
  func.func @_fused_linear_kernel(%arg0: i32, %arg1: i32, %arg2: memref<16x32xbf16, #tpu.memory_space<vmem>>, %arg3: memref<32x32xbf16, #tpu.memory_space<vmem>>, %arg4: memref<16x32xbf16, #tpu.memory_space<vmem>>, %arg5: memref<16x32xbf16, #tpu.memory_space<vmem>>) attributes {dimension_semantics = [#tpu.dimension_semantics<parallel>, #tpu.dimension_semantics<parallel>], iteration_bounds = array<i64: 1, 1>, scalar_prefetch = 0 : i64, scratch_operands = 0 : i64, tpu.core_type = #tpu.core_type<tc>, window_params = [{transform_indices = @transform_0, window_bounds = array<i64: 16, 32>}, {transform_indices = @transform_1, window_bounds = array<i64: 32, 32>}, {transform_indices = @transform_2, window_bounds = array<i64: 16, 32>}, {transform_indices = @transform_3, window_bounds = array<i64: 16, 32>}]} {
    %c0 = arith.constant 0 : index
    %c0_0 = arith.constant 0 : index
    %0 = vector.load %arg2[%c0, %c0_0] : memref<16x32xbf16, #tpu.memory_space<vmem>>, vector<16x32xbf16>
    %c0_1 = arith.constant 0 : index
    %c0_2 = arith.constant 0 : index
    %1 = vector.load %arg3[%c0_1, %c0_2] : memref<32x32xbf16, #tpu.memory_space<vmem>>, vector<32x32xbf16>
    %cst = arith.constant dense<0.000000e+00> : vector<16x32xf32>
    %2 = tpu.matmul %0, %1, %cst {dimension_numbers = #tpu.dot_dimension_numbers<[1], [0], [0], [1], [0, 0, 1, 1], [], []>} : vector<16x32xbf16>, vector<32x32xbf16>, vector<16x32xf32> -> vector<16x32xf32>
    %c0_3 = arith.constant 0 : index
    %c0_4 = arith.constant 0 : index
    %3 = vector.load %arg4[%c0_3, %c0_4] : memref<16x32xbf16, #tpu.memory_space<vmem>>, vector<16x32xbf16>
    %4 = arith.extf %3 : vector<16x32xbf16> to vector<16x32xf32>
    %5 = arith.addf %2, %4 : vector<16x32xf32>
    %6 = arith.truncf %5 : vector<16x32xf32> to vector<16x32xbf16>
    %c0_5 = arith.constant 0 : index
    %c0_6 = arith.constant 0 : index
    %7 = vector.load %arg5[%c0_5, %c0_6] : memref<16x32xbf16, #tpu.memory_space<vmem>>, vector<16x32xbf16>
    tpu.vector_store %arg5[%c0_5, %c0_6], %6 {strides = array<i32>} : memref<16x32xbf16, #tpu.memory_space<vmem>>, vector<16x32xbf16>,
    return
  }
  func.func @transform_0(%arg0: i32, %arg1: i32) -> (i32, i32) {
    %c0_i32 = arith.constant 0 : i32
    %c0_i32_0 = arith.constant 0 : i32
    return %arg0, %c0_i32 : i32, i32
  }
  func.func @transform_1(%arg0: i32, %arg1: i32) -> (i32, i32) {
    %c0_i32 = arith.constant 0 : i32
    %c0_i32_0 = arith.constant 0 : i32
    return %c0_i32, %arg1 : i32, i32
  }
  func.func @transform_2(%arg0: i32, %arg1: i32) -> (i32, i32) {
    %c0_i32 = arith.constant 0 : i32
    return %arg0, %arg1 : i32, i32
  }
  func.func @transform_3(%arg0: i32, %arg1: i32) -> (i32, i32) {
    %c0_i32 = arith.constant 0 : i32
    return %arg0, %arg1 : i32, i32
  }
}

module attributes {stable_mosaic.version = 11 : i64} {
  func.func @_attention_kernel(%arg0: i32, %arg1: i32, %arg2: memref<8x96xbf16, #tpu.memory_space<vmem>>, %arg3: memref<8x96xbf16, #tpu.memory_space<vmem>>, %arg4: memref<8x4xf32, #tpu.memory_space<vmem>>, %arg5: memref<8x4xf32, #tpu.memory_space<vmem>>, %arg6: memref<8x4xf32, #tpu.memory_space<vmem>>, %arg7: memref<8x4xf32, #tpu.memory_space<vmem>>, %arg8: memref<8x32xbf16, #tpu.memory_space<vmem>>) attributes {dimension_semantics = [#tpu.dimension_semantics<parallel>, #tpu.dimension_semantics<parallel>], iteration_bounds = array<i64: 2, 1>, scalar_prefetch = 0 : i64, scratch_operands = 0 : i64, tpu.core_type = #tpu.core_type<tc>, window_params = [{transform_indices = @transform_0, window_bounds = array<i64: 8, 96>}, {transform_indices = @transform_1, window_bounds = array<i64: 8, 96>}, {transform_indices = @transform_2, window_bounds = array<i64: 8, 4>}, {transform_indices = @transform_3, window_bounds = array<i64: 8, 4>}, {pipeline_mode = #tpu.pipeline_mode<synchronous>, transform_indices = @transform_4, window_bounds = array<i64: 8, 4>}, {pipeline_mode = #tpu.pipeline_mode<synchronous>, transform_indices = @transform_5, window_bounds = array<i64: 8, 4>}, {transform_indices = @transform_6, window_bounds = array<i64: 8, 32>}]} {
    %c0 = arith.constant 0 : index
    %c0_0 = arith.constant 0 : index
    %0 = vector.load %arg4[%c0, %c0_0] : memref<8x4xf32, #tpu.memory_space<vmem>>, vector<8x4xf32>
    %c0_1 = arith.constant 0 : index
    %c0_2 = arith.constant 0 : index
    %1 = vector.load %arg5[%c0_1, %c0_2] : memref<8x4xf32, #tpu.memory_space<vmem>>, vector<8x4xf32>
    %c0_3 = arith.constant 0 : index
    %c0_4 = arith.constant 0 : index
    %2 = vector.load %arg6[%c0_3, %c0_4] : memref<8x4xf32, #tpu.memory_space<vmem>>, vector<8x4xf32>
    %c0_5 = arith.constant 0 : index
    %c0_6 = arith.constant 0 : index
    %3 = vector.load %arg7[%c0_5, %c0_6] : memref<8x4xf32, #tpu.memory_space<vmem>>, vector<8x4xf32>
    %c8_i32 = arith.constant 8 : i32
    %4 = arith.muli %arg1, %c8_i32 : i32
    %5 = tpu.iota {dimensions = array<i32: 0>} : vector<8x8xi32>
    %6 = vector.broadcast %4 : i32 to vector<8x8xi32>
    %7 = arith.addi %6, %5 : vector<8x8xi32>
    %8 = tpu.iota {dimensions = array<i32: 1>} : vector<8x8xi32>
    %9 = arith.cmpi sgt, %8, %7 : vector<8x8xi32>
    %c0_7 = arith.constant 0 : index
    %c0_8 = arith.constant 0 : index
    %10 = vector.load %arg2[%c0_7, %c0_8] : memref<8x96xbf16, #tpu.memory_space<vmem>>, vector<8x4xbf16>
    %11 = arith.extf %10 : vector<8x4xbf16> to vector<8x4xf32>
    %cst = arith.constant 0.353553385 : f32
    %12 = vector.broadcast %cst : f32 to vector<8x4xf32>
    %13 = arith.mulf %11, %12 : vector<8x4xf32>
    %c0_9 = arith.constant 0 : index
    %c4 = arith.constant 4 : index
    %14 = vector.load %arg2[%c0_9, %c4] : memref<8x96xbf16, #tpu.memory_space<vmem>>, vector<8x4xbf16>
    %15 = arith.extf %14 : vector<8x4xbf16> to vector<8x4xf32>
    %cst_10 = arith.constant 0.353553385 : f32
    %16 = vector.broadcast %cst_10 : f32 to vector<8x4xf32>
    %17 = arith.mulf %15, %16 : vector<8x4xf32>
    %c0_11 = arith.constant 0 : index
    %c32 = arith.constant 32 : index
    %18 = vector.load %arg3[%c0_11, %c32] : memref<8x96xbf16, #tpu.memory_space<vmem>>, vector<8x4xbf16>
    %19 = arith.extf %18 : vector<8x4xbf16> to vector<8x4xf32>
    %c0_12 = arith.constant 0 : index
    %c36 = arith.constant 36 : index
    %20 = vector.load %arg3[%c0_12, %c36] : memref<8x96xbf16, #tpu.memory_space<vmem>>, vector<8x4xbf16>
    %21 = arith.extf %20 : vector<8x4xbf16> to vector<8x4xf32>
    %c0_13 = arith.constant 0 : index
    %c64 = arith.constant 64 : index
    %22 = vector.load %arg3[%c0_13, %c64] : memref<8x96xbf16, #tpu.memory_space<vmem>>, vector<8x8xbf16>
    %23 = arith.mulf %13, %0 : vector<8x4xf32>
    %24 = arith.mulf %17, %1 : vector<8x4xf32>
    %25 = arith.subf %23, %24 : vector<8x4xf32>
    %26 = arith.truncf %25 : vector<8x4xf32> to vector<8x4xbf16>
    %27 = arith.mulf %17, %0 : vector<8x4xf32>
    %28 = arith.mulf %13, %1 : vector<8x4xf32>
    %29 = arith.addf %27, %28 : vector<8x4xf32>
    %30 = arith.truncf %29 : vector<8x4xf32> to vector<8x4xbf16>
    %31 = arith.mulf %19, %2 : vector<8x4xf32>
    %32 = arith.mulf %21, %3 : vector<8x4xf32>
    %33 = arith.subf %31, %32 : vector<8x4xf32>
    %34 = arith.truncf %33 : vector<8x4xf32> to vector<8x4xbf16>
    %35 = arith.mulf %21, %2 : vector<8x4xf32>
    %36 = arith.mulf %19, %3 : vector<8x4xf32>
    %37 = arith.addf %35, %36 : vector<8x4xf32>
    %38 = arith.truncf %37 : vector<8x4xf32> to vector<8x4xbf16>
    %cst_14 = arith.constant dense<0.000000e+00> : vector<8x8xf32>
    %39 = tpu.matmul %26, %34, %cst_14 {dimension_numbers = #tpu.dot_dimension_numbers<[1], [1], [0], [0], [0, 0, 1, 0], [], []>} : vector<8x4xbf16>, vector<8x4xbf16>, vector<8x8xf32> -> vector<8x8xf32>
    %cst_15 = arith.constant dense<0.000000e+00> : vector<8x8xf32>
    %40 = tpu.matmul %30, %38, %cst_15 {dimension_numbers = #tpu.dot_dimension_numbers<[1], [1], [0], [0], [0, 0, 1, 0], [], []>} : vector<8x4xbf16>, vector<8x4xbf16>, vector<8x8xf32> -> vector<8x8xf32>
    %41 = arith.addf %39, %40 : vector<8x8xf32>
    %cst_16 = arith.constant -3.40282347E+38 : f32
    %42 = vector.broadcast %cst_16 : f32 to vector<8x8xf32>
    %43 = arith.select %9, %42, %41 : vector<8x8xi1>, vector<8x8xf32>
    %cst_17 = arith.constant dense<0xFF800000> : vector<8xf32>
    %44 = vector.multi_reduction <maximumf>, %43, %cst_17 [1] : vector<8x8xf32> to vector<8xf32>
    %45 = vector.shape_cast %44 : vector<8xf32> to vector<8x1xf32>
    %46 = vector.broadcast %45 : vector<8x1xf32> to vector<8x8xf32>
    %47 = arith.subf %43, %46 : vector<8x8xf32>
    %48 = math.exp %47 : vector<8x8xf32>
    %cst_18 = arith.constant dense<0.000000e+00> : vector<8xf32>
    %49 = vector.multi_reduction <add>, %48, %cst_18 [1] : vector<8x8xf32> to vector<8xf32>
    %50 = vector.shape_cast %49 : vector<8xf32> to vector<8x1xf32>
    %51 = tpu.reciprocal %50 {approx = true} : vector<8x1xf32> -> vector<8x1xf32>
    %52 = arith.truncf %48 : vector<8x8xf32> to vector<8x8xbf16>
    %cst_19 = arith.constant dense<0.000000e+00> : vector<8x8xf32>
    %53 = tpu.matmul %52, %22, %cst_19 {dimension_numbers = #tpu.dot_dimension_numbers<[1], [0], [0], [1], [0, 0, 1, 1], [], []>} : vector<8x8xbf16>, vector<8x8xbf16>, vector<8x8xf32> -> vector<8x8xf32>
    %54 = vector.broadcast %51 : vector<8x1xf32> to vector<8x8xf32>
    %55 = arith.mulf %53, %54 : vector<8x8xf32>
    %c0_20 = arith.constant 0 : index
    %c8 = arith.constant 8 : index
    %56 = vector.load %arg2[%c0_20, %c8] : memref<8x96xbf16, #tpu.memory_space<vmem>>, vector<8x4xbf16>
    %57 = arith.extf %56 : vector<8x4xbf16> to vector<8x4xf32>
    %cst_21 = arith.constant 0.353553385 : f32
    %58 = vector.broadcast %cst_21 : f32 to vector<8x4xf32>
    %59 = arith.mulf %57, %58 : vector<8x4xf32>
    %c0_22 = arith.constant 0 : index
    %c12 = arith.constant 12 : index
    %60 = vector.load %arg2[%c0_22, %c12] : memref<8x96xbf16, #tpu.memory_space<vmem>>, vector<8x4xbf16>
    %61 = arith.extf %60 : vector<8x4xbf16> to vector<8x4xf32>
    %cst_23 = arith.constant 0.353553385 : f32
    %62 = vector.broadcast %cst_23 : f32 to vector<8x4xf32>
    %63 = arith.mulf %61, %62 : vector<8x4xf32>
    %c0_24 = arith.constant 0 : index
    %c40 = arith.constant 40 : index
    %64 = vector.load %arg3[%c0_24, %c40] : memref<8x96xbf16, #tpu.memory_space<vmem>>, vector<8x4xbf16>
    %65 = arith.extf %64 : vector<8x4xbf16> to vector<8x4xf32>
    %c0_25 = arith.constant 0 : index
    %c44 = arith.constant 44 : index
    %66 = vector.load %arg3[%c0_25, %c44] : memref<8x96xbf16, #tpu.memory_space<vmem>>, vector<8x4xbf16>
    %67 = arith.extf %66 : vector<8x4xbf16> to vector<8x4xf32>
    %c0_26 = arith.constant 0 : index
    %c72 = arith.constant 72 : index
    %68 = vector.load %arg3[%c0_26, %c72] : memref<8x96xbf16, #tpu.memory_space<vmem>>, vector<8x8xbf16>
    %69 = arith.mulf %59, %0 : vector<8x4xf32>
    %70 = arith.mulf %63, %1 : vector<8x4xf32>
    %71 = arith.subf %69, %70 : vector<8x4xf32>
    %72 = arith.truncf %71 : vector<8x4xf32> to vector<8x4xbf16>
    %73 = arith.mulf %63, %0 : vector<8x4xf32>
    %74 = arith.mulf %59, %1 : vector<8x4xf32>
    %75 = arith.addf %73, %74 : vector<8x4xf32>
    %76 = arith.truncf %75 : vector<8x4xf32> to vector<8x4xbf16>
    %77 = arith.mulf %65, %2 : vector<8x4xf32>
    %78 = arith.mulf %67, %3 : vector<8x4xf32>
    %79 = arith.subf %77, %78 : vector<8x4xf32>
    %80 = arith.truncf %79 : vector<8x4xf32> to vector<8x4xbf16>
    %81 = arith.mulf %67, %2 : vector<8x4xf32>
    %82 = arith.mulf %65, %3 : vector<8x4xf32>
    %83 = arith.addf %81, %82 : vector<8x4xf32>
    %84 = arith.truncf %83 : vector<8x4xf32> to vector<8x4xbf16>
    %cst_27 = arith.constant dense<0.000000e+00> : vector<8x8xf32>
    %85 = tpu.matmul %72, %80, %cst_27 {dimension_numbers = #tpu.dot_dimension_numbers<[1], [1], [0], [0], [0, 0, 1, 0], [], []>} : vector<8x4xbf16>, vector<8x4xbf16>, vector<8x8xf32> -> vector<8x8xf32>
    %cst_28 = arith.constant dense<0.000000e+00> : vector<8x8xf32>
    %86 = tpu.matmul %76, %84, %cst_28 {dimension_numbers = #tpu.dot_dimension_numbers<[1], [1], [0], [0], [0, 0, 1, 0], [], []>} : vector<8x4xbf16>, vector<8x4xbf16>, vector<8x8xf32> -> vector<8x8xf32>
    %87 = arith.addf %85, %86 : vector<8x8xf32>
    %cst_29 = arith.constant -3.40282347E+38 : f32
    %88 = vector.broadcast %cst_29 : f32 to vector<8x8xf32>
    %89 = arith.select %9, %88, %87 : vector<8x8xi1>, vector<8x8xf32>
    %cst_30 = arith.constant dense<0xFF800000> : vector<8xf32>
    %90 = vector.multi_reduction <maximumf>, %89, %cst_30 [1] : vector<8x8xf32> to vector<8xf32>
    %91 = vector.shape_cast %90 : vector<8xf32> to vector<8x1xf32>
    %92 = vector.broadcast %91 : vector<8x1xf32> to vector<8x8xf32>
    %93 = arith.subf %89, %92 : vector<8x8xf32>
    %94 = math.exp %93 : vector<8x8xf32>
    %cst_31 = arith.constant dense<0.000000e+00> : vector<8xf32>
    %95 = vector.multi_reduction <add>, %94, %cst_31 [1] : vector<8x8xf32> to vector<8xf32>
    %96 = vector.shape_cast %95 : vector<8xf32> to vector<8x1xf32>
    %97 = tpu.reciprocal %96 {approx = true} : vector<8x1xf32> -> vector<8x1xf32>
    %98 = arith.truncf %94 : vector<8x8xf32> to vector<8x8xbf16>
    %cst_32 = arith.constant dense<0.000000e+00> : vector<8x8xf32>
    %99 = tpu.matmul %98, %68, %cst_32 {dimension_numbers = #tpu.dot_dimension_numbers<[1], [0], [0], [1], [0, 0, 1, 1], [], []>} : vector<8x8xbf16>, vector<8x8xbf16>, vector<8x8xf32> -> vector<8x8xf32>
    %100 = vector.broadcast %97 : vector<8x1xf32> to vector<8x8xf32>
    %101 = arith.mulf %99, %100 : vector<8x8xf32>
    %c0_33 = arith.constant 0 : index
    %c16 = arith.constant 16 : index
    %102 = vector.load %arg2[%c0_33, %c16] : memref<8x96xbf16, #tpu.memory_space<vmem>>, vector<8x4xbf16>
    %103 = arith.extf %102 : vector<8x4xbf16> to vector<8x4xf32>
    %cst_34 = arith.constant 0.353553385 : f32
    %104 = vector.broadcast %cst_34 : f32 to vector<8x4xf32>
    %105 = arith.mulf %103, %104 : vector<8x4xf32>
    %c0_35 = arith.constant 0 : index
    %c20 = arith.constant 20 : index
    %106 = vector.load %arg2[%c0_35, %c20] : memref<8x96xbf16, #tpu.memory_space<vmem>>, vector<8x4xbf16>
    %107 = arith.extf %106 : vector<8x4xbf16> to vector<8x4xf32>
    %cst_36 = arith.constant 0.353553385 : f32
    %108 = vector.broadcast %cst_36 : f32 to vector<8x4xf32>
    %109 = arith.mulf %107, %108 : vector<8x4xf32>
    %c0_37 = arith.constant 0 : index
    %c48 = arith.constant 48 : index
    %110 = vector.load %arg3[%c0_37, %c48] : memref<8x96xbf16, #tpu.memory_space<vmem>>, vector<8x4xbf16>
    %111 = arith.extf %110 : vector<8x4xbf16> to vector<8x4xf32>
    %c0_38 = arith.constant 0 : index
    %c52 = arith.constant 52 : index
    %112 = vector.load %arg3[%c0_38, %c52] : memref<8x96xbf16, #tpu.memory_space<vmem>>, vector<8x4xbf16>
    %113 = arith.extf %112 : vector<8x4xbf16> to vector<8x4xf32>
    %c0_39 = arith.constant 0 : index
    %c80 = arith.constant 80 : index
    %114 = vector.load %arg3[%c0_39, %c80] : memref<8x96xbf16, #tpu.memory_space<vmem>>, vector<8x8xbf16>
    %115 = arith.mulf %105, %0 : vector<8x4xf32>
    %116 = arith.mulf %109, %1 : vector<8x4xf32>
    %117 = arith.subf %115, %116 : vector<8x4xf32>
    %118 = arith.truncf %117 : vector<8x4xf32> to vector<8x4xbf16>
    %119 = arith.mulf %109, %0 : vector<8x4xf32>
    %120 = arith.mulf %105, %1 : vector<8x4xf32>
    %121 = arith.addf %119, %120 : vector<8x4xf32>
    %122 = arith.truncf %121 : vector<8x4xf32> to vector<8x4xbf16>
    %123 = arith.mulf %111, %2 : vector<8x4xf32>
    %124 = arith.mulf %113, %3 : vector<8x4xf32>
    %125 = arith.subf %123, %124 : vector<8x4xf32>
    %126 = arith.truncf %125 : vector<8x4xf32> to vector<8x4xbf16>
    %127 = arith.mulf %113, %2 : vector<8x4xf32>
    %128 = arith.mulf %111, %3 : vector<8x4xf32>
    %129 = arith.addf %127, %128 : vector<8x4xf32>
    %130 = arith.truncf %129 : vector<8x4xf32> to vector<8x4xbf16>
    %cst_40 = arith.constant dense<0.000000e+00> : vector<8x8xf32>
    %131 = tpu.matmul %118, %126, %cst_40 {dimension_numbers = #tpu.dot_dimension_numbers<[1], [1], [0], [0], [0, 0, 1, 0], [], []>} : vector<8x4xbf16>, vector<8x4xbf16>, vector<8x8xf32> -> vector<8x8xf32>
    %cst_41 = arith.constant dense<0.000000e+00> : vector<8x8xf32>
    %132 = tpu.matmul %122, %130, %cst_41 {dimension_numbers = #tpu.dot_dimension_numbers<[1], [1], [0], [0], [0, 0, 1, 0], [], []>} : vector<8x4xbf16>, vector<8x4xbf16>, vector<8x8xf32> -> vector<8x8xf32>
    %133 = arith.addf %131, %132 : vector<8x8xf32>
    %cst_42 = arith.constant -3.40282347E+38 : f32
    %134 = vector.broadcast %cst_42 : f32 to vector<8x8xf32>
    %135 = arith.select %9, %134, %133 : vector<8x8xi1>, vector<8x8xf32>
    %cst_43 = arith.constant dense<0xFF800000> : vector<8xf32>
    %136 = vector.multi_reduction <maximumf>, %135, %cst_43 [1] : vector<8x8xf32> to vector<8xf32>
    %137 = vector.shape_cast %136 : vector<8xf32> to vector<8x1xf32>
    %138 = vector.broadcast %137 : vector<8x1xf32> to vector<8x8xf32>
    %139 = arith.subf %135, %138 : vector<8x8xf32>
    %140 = math.exp %139 : vector<8x8xf32>
    %cst_44 = arith.constant dense<0.000000e+00> : vector<8xf32>
    %141 = vector.multi_reduction <add>, %140, %cst_44 [1] : vector<8x8xf32> to vector<8xf32>
    %142 = vector.shape_cast %141 : vector<8xf32> to vector<8x1xf32>
    %143 = tpu.reciprocal %142 {approx = true} : vector<8x1xf32> -> vector<8x1xf32>
    %144 = arith.truncf %140 : vector<8x8xf32> to vector<8x8xbf16>
    %cst_45 = arith.constant dense<0.000000e+00> : vector<8x8xf32>
    %145 = tpu.matmul %144, %114, %cst_45 {dimension_numbers = #tpu.dot_dimension_numbers<[1], [0], [0], [1], [0, 0, 1, 1], [], []>} : vector<8x8xbf16>, vector<8x8xbf16>, vector<8x8xf32> -> vector<8x8xf32>
    %146 = vector.broadcast %143 : vector<8x1xf32> to vector<8x8xf32>
    %147 = arith.mulf %145, %146 : vector<8x8xf32>
    %c0_46 = arith.constant 0 : index
    %c24 = arith.constant 24 : index
    %148 = vector.load %arg2[%c0_46, %c24] : memref<8x96xbf16, #tpu.memory_space<vmem>>, vector<8x4xbf16>
    %149 = arith.extf %148 : vector<8x4xbf16> to vector<8x4xf32>
    %cst_47 = arith.constant 0.353553385 : f32
    %150 = vector.broadcast %cst_47 : f32 to vector<8x4xf32>
    %151 = arith.mulf %149, %150 : vector<8x4xf32>
    %c0_48 = arith.constant 0 : index
    %c28 = arith.constant 28 : index
    %152 = vector.load %arg2[%c0_48, %c28] : memref<8x96xbf16, #tpu.memory_space<vmem>>, vector<8x4xbf16>
    %153 = arith.extf %152 : vector<8x4xbf16> to vector<8x4xf32>
    %cst_49 = arith.constant 0.353553385 : f32
    %154 = vector.broadcast %cst_49 : f32 to vector<8x4xf32>
    %155 = arith.mulf %153, %154 : vector<8x4xf32>
    %c0_50 = arith.constant 0 : index
    %c56 = arith.constant 56 : index
    %156 = vector.load %arg3[%c0_50, %c56] : memref<8x96xbf16, #tpu.memory_space<vmem>>, vector<8x4xbf16>
    %157 = arith.extf %156 : vector<8x4xbf16> to vector<8x4xf32>
    %c0_51 = arith.constant 0 : index
    %c60 = arith.constant 60 : index
    %158 = vector.load %arg3[%c0_51, %c60] : memref<8x96xbf16, #tpu.memory_space<vmem>>, vector<8x4xbf16>
    %159 = arith.extf %158 : vector<8x4xbf16> to vector<8x4xf32>
    %c0_52 = arith.constant 0 : index
    %c88 = arith.constant 88 : index
    %160 = vector.load %arg3[%c0_52, %c88] : memref<8x96xbf16, #tpu.memory_space<vmem>>, vector<8x8xbf16>
    %161 = arith.mulf %151, %0 : vector<8x4xf32>
    %162 = arith.mulf %155, %1 : vector<8x4xf32>
    %163 = arith.subf %161, %162 : vector<8x4xf32>
    %164 = arith.truncf %163 : vector<8x4xf32> to vector<8x4xbf16>
    %165 = arith.mulf %155, %0 : vector<8x4xf32>
    %166 = arith.mulf %151, %1 : vector<8x4xf32>
    %167 = arith.addf %165, %166 : vector<8x4xf32>
    %168 = arith.truncf %167 : vector<8x4xf32> to vector<8x4xbf16>
    %169 = arith.mulf %157, %2 : vector<8x4xf32>
    %170 = arith.mulf %159, %3 : vector<8x4xf32>
    %171 = arith.subf %169, %170 : vector<8x4xf32>
    %172 = arith.truncf %171 : vector<8x4xf32> to vector<8x4xbf16>
    %173 = arith.mulf %159, %2 : vector<8x4xf32>
    %174 = arith.mulf %157, %3 : vector<8x4xf32>
    %175 = arith.addf %173, %174 : vector<8x4xf32>
    %176 = arith.truncf %175 : vector<8x4xf32> to vector<8x4xbf16>
    %cst_53 = arith.constant dense<0.000000e+00> : vector<8x8xf32>
    %177 = tpu.matmul %164, %172, %cst_53 {dimension_numbers = #tpu.dot_dimension_numbers<[1], [1], [0], [0], [0, 0, 1, 0], [], []>} : vector<8x4xbf16>, vector<8x4xbf16>, vector<8x8xf32> -> vector<8x8xf32>
    %cst_54 = arith.constant dense<0.000000e+00> : vector<8x8xf32>
    %178 = tpu.matmul %168, %176, %cst_54 {dimension_numbers = #tpu.dot_dimension_numbers<[1], [1], [0], [0], [0, 0, 1, 0], [], []>} : vector<8x4xbf16>, vector<8x4xbf16>, vector<8x8xf32> -> vector<8x8xf32>
    %179 = arith.addf %177, %178 : vector<8x8xf32>
    %cst_55 = arith.constant -3.40282347E+38 : f32
    %180 = vector.broadcast %cst_55 : f32 to vector<8x8xf32>
    %181 = arith.select %9, %180, %179 : vector<8x8xi1>, vector<8x8xf32>
    %cst_56 = arith.constant dense<0xFF800000> : vector<8xf32>
    %182 = vector.multi_reduction <maximumf>, %181, %cst_56 [1] : vector<8x8xf32> to vector<8xf32>
    %183 = vector.shape_cast %182 : vector<8xf32> to vector<8x1xf32>
    %184 = vector.broadcast %183 : vector<8x1xf32> to vector<8x8xf32>
    %185 = arith.subf %181, %184 : vector<8x8xf32>
    %186 = math.exp %185 : vector<8x8xf32>
    %cst_57 = arith.constant dense<0.000000e+00> : vector<8xf32>
    %187 = vector.multi_reduction <add>, %186, %cst_57 [1] : vector<8x8xf32> to vector<8xf32>
    %188 = vector.shape_cast %187 : vector<8xf32> to vector<8x1xf32>
    %189 = tpu.reciprocal %188 {approx = true} : vector<8x1xf32> -> vector<8x1xf32>
    %190 = arith.truncf %186 : vector<8x8xf32> to vector<8x8xbf16>
    %cst_58 = arith.constant dense<0.000000e+00> : vector<8x8xf32>
    %191 = tpu.matmul %190, %160, %cst_58 {dimension_numbers = #tpu.dot_dimension_numbers<[1], [0], [0], [1], [0, 0, 1, 1], [], []>} : vector<8x8xbf16>, vector<8x8xbf16>, vector<8x8xf32> -> vector<8x8xf32>
    %192 = vector.broadcast %189 : vector<8x1xf32> to vector<8x8xf32>
    %193 = arith.mulf %191, %192 : vector<8x8xf32>
    %194 = tpu.concatenate %55, %101, %147, %193 in 1 : vector<8x8xf32>, vector<8x8xf32>, vector<8x8xf32>, vector<8x8xf32> -> vector<8x32xf32>
    %195 = arith.truncf %194 : vector<8x32xf32> to vector<8x32xbf16>
    %c0_59 = arith.constant 0 : index
    %c0_60 = arith.constant 0 : index
    %196 = vector.load %arg8[%c0_59, %c0_60] : memref<8x32xbf16, #tpu.memory_space<vmem>>, vector<8x32xbf16>
    tpu.vector_store %arg8[%c0_59, %c0_60], %195 {strides = array<i32>} : memref<8x32xbf16, #tpu.memory_space<vmem>>, vector<8x32xbf16>,
    return
  }
  func.func @transform_0(%arg0: i32, %arg1: i32) -> (i32, i32) {
    %c1_i32 = arith.constant 1 : i32
    %0 = arith.muli %arg0, %c1_i32 : i32
    %1 = arith.addi %0, %arg1 : i32
    %c0_i32 = arith.constant 0 : i32
    %c0_i32_0 = arith.constant 0 : i32
    return %1, %c0_i32 : i32, i32
  }
  func.func @transform_1(%arg0: i32, %arg1: i32) -> (i32, i32) {
    %c0_i32 = arith.constant 0 : i32
    %c0_i32_0 = arith.constant 0 : i32
    return %arg0, %c0_i32 : i32, i32
  }
  func.func @transform_2(%arg0: i32, %arg1: i32) -> (i32, i32) {
    %c0_i32 = arith.constant 0 : i32
    %c0_i32_0 = arith.constant 0 : i32
    return %arg1, %c0_i32 : i32, i32
  }
  func.func @transform_3(%arg0: i32, %arg1: i32) -> (i32, i32) {
    %c0_i32 = arith.constant 0 : i32
    %c0_i32_0 = arith.constant 0 : i32
    return %arg1, %c0_i32 : i32, i32
  }
  func.func @transform_4(%arg0: i32, %arg1: i32) -> (i32, i32) {
    %c0_i32 = arith.constant 0 : i32
    %c0_i32_0 = arith.constant 0 : i32
    %c0_i32_1 = arith.constant 0 : i32
    return %c0_i32, %c0_i32_0 : i32, i32
  }
  func.func @transform_5(%arg0: i32, %arg1: i32) -> (i32, i32) {
    %c0_i32 = arith.constant 0 : i32
    %c0_i32_0 = arith.constant 0 : i32
    %c0_i32_1 = arith.constant 0 : i32
    return %c0_i32, %c0_i32_0 : i32, i32
  }
  func.func @transform_6(%arg0: i32, %arg1: i32) -> (i32, i32) {
    %c1_i32 = arith.constant 1 : i32
    %0 = arith.muli %arg0, %c1_i32 : i32
    %1 = arith.addi %0, %arg1 : i32
    %c0_i32 = arith.constant 0 : i32
    %c0_i32_0 = arith.constant 0 : i32
    return %1, %c0_i32 : i32, i32
  }
}

module attributes {stable_mosaic.version = 11 : i64} {
  func.func @_fused_linear_kernel(%arg0: i32, %arg1: i32, %arg2: memref<16x32xbf16, #tpu.memory_space<vmem>>, %arg3: memref<1x32xf32, #tpu.memory_space<vmem>>, %arg4: memref<1x32xf32, #tpu.memory_space<vmem>>, %arg5: memref<32x64xbf16, #tpu.memory_space<vmem>>, %arg6: memref<1x64xf32, #tpu.memory_space<vmem>>, %arg7: memref<16x64xbf16, #tpu.memory_space<vmem>>, %arg8: memref<16x32xbf16, #tpu.memory_space<vmem>>) attributes {dimension_semantics = [#tpu.dimension_semantics<parallel>, #tpu.dimension_semantics<arbitrary>], iteration_bounds = array<i64: 1, 1>, scalar_prefetch = 0 : i64, scratch_operands = 1 : i64, tpu.core_type = #tpu.core_type<tc>, window_params = [{transform_indices = @transform_0, window_bounds = array<i64: 16, 32>}, {pipeline_mode = #tpu.pipeline_mode<synchronous>, transform_indices = @transform_1, window_bounds = array<i64: 1, 32>}, {pipeline_mode = #tpu.pipeline_mode<synchronous>, transform_indices = @transform_2, window_bounds = array<i64: 1, 32>}, {transform_indices = @transform_3, window_bounds = array<i64: 32, 64>}, {transform_indices = @transform_4, window_bounds = array<i64: 1, 64>}, {transform_indices = @transform_5, window_bounds = array<i64: 16, 64>}]} {
    %c0_i32 = arith.constant 0 : i32
    %0 = arith.cmpi eq, %arg1, %c0_i32 : i32
    %1 = arith.extui %0 : i1 to i32
    %c0_i32_0 = arith.constant 0 : i32
    %2 = arith.cmpi ne, %1, %c0_i32_0 : i32
    scf.if %2 {
      %c0_12 = arith.constant 0 : index
      %c0_13 = arith.constant 0 : index
      %24 = vector.load %arg2[%c0_12, %c0_13] : memref<16x32xbf16, #tpu.memory_space<vmem>>, vector<16x32xbf16>
      %25 = arith.extf %24 : vector<16x32xbf16> to vector<16x32xf32>
      %cst_14 = arith.constant dense<0.000000e+00> : vector<16xf32>
      %26 = vector.multi_reduction <add>, %25, %cst_14 [1] : vector<16x32xf32> to vector<16xf32>
      %27 = vector.shape_cast %26 : vector<16xf32> to vector<16x1xf32>
      %cst_15 = arith.constant 3.200000e+01 : f32
      %28 = vector.broadcast %cst_15 : f32 to vector<16x1xf32>
      %29 = arith.divf %27, %28 : vector<16x1xf32>
      %30 = vector.broadcast %29 : vector<16x1xf32> to vector<16x32xf32>
      %31 = arith.subf %25, %30 : vector<16x32xf32>
      %32 = arith.mulf %31, %31 : vector<16x32xf32>
      %cst_16 = arith.constant dense<0.000000e+00> : vector<16xf32>
      %33 = vector.multi_reduction <add>, %32, %cst_16 [1] : vector<16x32xf32> to vector<16xf32>
      %34 = vector.shape_cast %33 : vector<16xf32> to vector<16x1xf32>
      %cst_17 = arith.constant 3.200000e+01 : f32
      %35 = vector.broadcast %cst_17 : f32 to vector<16x1xf32>
      %36 = arith.divf %34, %35 : vector<16x1xf32>
      %cst_18 = arith.constant 9.99999974E-6 : f32
      %37 = vector.broadcast %cst_18 : f32 to vector<16x1xf32>
      %38 = arith.addf %36, %37 : vector<16x1xf32>
      %39 = math.rsqrt %38 : vector<16x1xf32>
      %40 = vector.broadcast %39 : vector<16x1xf32> to vector<16x32xf32>
      %41 = arith.mulf %31, %40 : vector<16x32xf32>
      %c0_19 = arith.constant 0 : index
      %c0_20 = arith.constant 0 : index
      %42 = vector.load %arg3[%c0_19, %c0_20] : memref<1x32xf32, #tpu.memory_space<vmem>>, vector<1x32xf32>
      %43 = vector.broadcast %42 : vector<1x32xf32> to vector<16x32xf32>
      %44 = arith.mulf %41, %43 : vector<16x32xf32>
      %c0_21 = arith.constant 0 : index
      %c0_22 = arith.constant 0 : index
      %45 = vector.load %arg4[%c0_21, %c0_22] : memref<1x32xf32, #tpu.memory_space<vmem>>, vector<1x32xf32>
      %46 = vector.broadcast %45 : vector<1x32xf32> to vector<16x32xf32>
      %47 = arith.addf %44, %46 : vector<16x32xf32>
      %48 = arith.truncf %47 : vector<16x32xf32> to vector<16x32xbf16>
      %c0_23 = arith.constant 0 : index
      %c0_24 = arith.constant 0 : index
      %49 = vector.load %arg8[%c0_23, %c0_24] : memref<16x32xbf16, #tpu.memory_space<vmem>>, vector<16x32xbf16>
      tpu.vector_store %arg8[%c0_23, %c0_24], %48 {strides = array<i32>} : memref<16x32xbf16, #tpu.memory_space<vmem>>, vector<16x32xbf16>,
    } else {
    }
    %c0 = arith.constant 0 : index
    %c0_1 = arith.constant 0 : index
    %3 = vector.load %arg8[%c0, %c0_1] : memref<16x32xbf16, #tpu.memory_space<vmem>>, vector<16x32xbf16>
    %c0_2 = arith.constant 0 : index
    %c0_3 = arith.constant 0 : index
    %4 = vector.load %arg5[%c0_2, %c0_3] : memref<32x64xbf16, #tpu.memory_space<vmem>>, vector<32x64xbf16>
    %cst = arith.constant dense<0.000000e+00> : vector<16x64xf32>
    %5 = tpu.matmul %3, %4, %cst {dimension_numbers = #tpu.dot_dimension_numbers<[1], [0], [0], [1], [0, 0, 1, 1], [], []>} : vector<16x32xbf16>, vector<32x64xbf16>, vector<16x64xf32> -> vector<16x64xf32>
    %c0_4 = arith.constant 0 : index
    %c0_5 = arith.constant 0 : index
    %6 = vector.load %arg6[%c0_4, %c0_5] : memref<1x64xf32, #tpu.memory_space<vmem>>, vector<1x64xf32>
    %7 = vector.broadcast %6 : vector<1x64xf32> to vector<16x64xf32>
    %8 = arith.addf %5, %7 : vector<16x64xf32>
    %cst_6 = arith.constant 5.000000e-01 : f32
    %9 = vector.broadcast %cst_6 : f32 to vector<16x64xf32>
    %10 = arith.mulf %9, %8 : vector<16x64xf32>
    %cst_7 = arith.constant 4.471500e-02 : f32
    %11 = vector.broadcast %cst_7 : f32 to vector<16x64xf32>
    %12 = arith.mulf %11, %8 : vector<16x64xf32>
    %13 = arith.mulf %12, %8 : vector<16x64xf32>
    %14 = arith.mulf %13, %8 : vector<16x64xf32>
    %15 = arith.addf %8, %14 : vector<16x64xf32>
    %cst_8 = arith.constant 0.797884583 : f32
    %16 = vector.broadcast %cst_8 : f32 to vector<16x64xf32>
    %17 = arith.mulf %16, %15 : vector<16x64xf32>
    %18 = math.tanh %17 : vector<16x64xf32>
    %cst_9 = arith.constant 1.000000e+00 : f32
    %19 = vector.broadcast %cst_9 : f32 to vector<16x64xf32>
    %20 = arith.addf %19, %18 : vector<16x64xf32>
    %21 = arith.mulf %10, %20 : vector<16x64xf32>
    %22 = arith.truncf %21 : vector<16x64xf32> to vector<16x64xbf16>
    %c0_10 = arith.constant 0 : index
    %c0_11 = arith.constant 0 : index
    %23 = vector.load %arg7[%c0_10, %c0_11] : memref<16x64xbf16, #tpu.memory_space<vmem>>, vector<16x64xbf16>
    tpu.vector_store %arg7[%c0_10, %c0_11], %22 {strides = array<i32>} : memref<16x64xbf16, #tpu.memory_space<vmem>>, vector<16x64xbf16>,
    return
  }
  func.func @transform_0(%arg0: i32, %arg1: i32) -> (i32, i32) {
    %c0_i32 = arith.constant 0 : i32
    %c0_i32_0 = arith.constant 0 : i32
    return %arg0, %c0_i32 : i32, i32
  }
  func.func @transform_1(%arg0: i32, %arg1: i32) -> (i32, i32) {
    %c0_i32 = arith.constant 0 : i32
    %c0_i32_0 = arith.constant 0 : i32
    %c0_i32_1 = arith.constant 0 : i32
    return %c0_i32, %c0_i32_0 : i32, i32
  }
  func.func @transform_2(%arg0: i32, %arg1: i32) -> (i32, i32) {
    %c0_i32 = arith.constant 0 : i32
    %c0_i32_0 = arith.constant 0 : i32
    %c0_i32_1 = arith.constant 0 : i32
    return %c0_i32, %c0_i32_0 : i32, i32
  }
  func.func @transform_3(%arg0: i32, %arg1: i32) -> (i32, i32) {
    %c0_i32 = arith.constant 0 : i32
    %c0_i32_0 = arith.constant 0 : i32
    return %c0_i32, %arg1 : i32, i32
  }
  func.func @transform_4(%arg0: i32, %arg1: i32) -> (i32, i32) {
    %c0_i32 = arith.constant 0 : i32
    %c0_i32_0 = arith.constant 0 : i32
    return %c0_i32, %arg1 : i32, i32
  }
  func.func @transform_5(%arg0: i32, %arg1: i32) -> (i32, i32) {
    %c0_i32 = arith.constant 0 : i32
    return %arg0, %arg1 : i32, i32
  }
}

module attributes {stable_mosaic.version = 11 : i64} {
  func.func @_fused_linear_kernel(%arg0: i32, %arg1: i32, %arg2: memref<16x64xbf16, #tpu.memory_space<vmem>>, %arg3: memref<64x32xbf16, #tpu.memory_space<vmem>>, %arg4: memref<1x32xf32, #tpu.memory_space<vmem>>, %arg5: memref<16x32xbf16, #tpu.memory_space<vmem>>, %arg6: memref<16x32xbf16, #tpu.memory_space<vmem>>) attributes {dimension_semantics = [#tpu.dimension_semantics<parallel>, #tpu.dimension_semantics<parallel>], iteration_bounds = array<i64: 1, 1>, scalar_prefetch = 0 : i64, scratch_operands = 0 : i64, tpu.core_type = #tpu.core_type<tc>, window_params = [{transform_indices = @transform_0, window_bounds = array<i64: 16, 64>}, {transform_indices = @transform_1, window_bounds = array<i64: 64, 32>}, {transform_indices = @transform_2, window_bounds = array<i64: 1, 32>}, {transform_indices = @transform_3, window_bounds = array<i64: 16, 32>}, {transform_indices = @transform_4, window_bounds = array<i64: 16, 32>}]} {
    %c0 = arith.constant 0 : index
    %c0_0 = arith.constant 0 : index
    %0 = vector.load %arg2[%c0, %c0_0] : memref<16x64xbf16, #tpu.memory_space<vmem>>, vector<16x64xbf16>
    %c0_1 = arith.constant 0 : index
    %c0_2 = arith.constant 0 : index
    %1 = vector.load %arg3[%c0_1, %c0_2] : memref<64x32xbf16, #tpu.memory_space<vmem>>, vector<64x32xbf16>
    %cst = arith.constant dense<0.000000e+00> : vector<16x32xf32>
    %2 = tpu.matmul %0, %1, %cst {dimension_numbers = #tpu.dot_dimension_numbers<[1], [0], [0], [1], [0, 0, 1, 1], [], []>} : vector<16x64xbf16>, vector<64x32xbf16>, vector<16x32xf32> -> vector<16x32xf32>
    %c0_3 = arith.constant 0 : index
    %c0_4 = arith.constant 0 : index
    %3 = vector.load %arg4[%c0_3, %c0_4] : memref<1x32xf32, #tpu.memory_space<vmem>>, vector<1x32xf32>
    %4 = vector.broadcast %3 : vector<1x32xf32> to vector<16x32xf32>
    %5 = arith.addf %2, %4 : vector<16x32xf32>
    %c0_5 = arith.constant 0 : index
    %c0_6 = arith.constant 0 : index
    %6 = vector.load %arg5[%c0_5, %c0_6] : memref<16x32xbf16, #tpu.memory_space<vmem>>, vector<16x32xbf16>
    %7 = arith.extf %6 : vector<16x32xbf16> to vector<16x32xf32>
    %8 = arith.addf %5, %7 : vector<16x32xf32>
    %9 = arith.truncf %8 : vector<16x32xf32> to vector<16x32xbf16>
    %c0_7 = arith.constant 0 : index
    %c0_8 = arith.constant 0 : index
    %10 = vector.load %arg6[%c0_7, %c0_8] : memref<16x32xbf16, #tpu.memory_space<vmem>>, vector<16x32xbf16>
    tpu.vector_store %arg6[%c0_7, %c0_8], %9 {strides = array<i32>} : memref<16x32xbf16, #tpu.memory_space<vmem>>, vector<16x32xbf16>,
    return
  }
  func.func @transform_0(%arg0: i32, %arg1: i32) -> (i32, i32) {
    %c0_i32 = arith.constant 0 : i32
    %c0_i32_0 = arith.constant 0 : i32
    return %arg0, %c0_i32 : i32, i32
  }
  func.func @transform_1(%arg0: i32, %arg1: i32) -> (i32, i32) {
    %c0_i32 = arith.constant 0 : i32
    %c0_i32_0 = arith.constant 0 : i32
    return %c0_i32, %arg1 : i32, i32
  }
  func.func @transform_2(%arg0: i32, %arg1: i32) -> (i32, i32) {
    %c0_i32 = arith.constant 0 : i32
    %c0_i32_0 = arith.constant 0 : i32
    return %c0_i32, %arg1 : i32, i32
  }
  func.func @transform_3(%arg0: i32, %arg1: i32) -> (i32, i32) {
    %c0_i32 = arith.constant 0 : i32
    return %arg0, %arg1 : i32, i32
  }
  func.func @transform_4(%arg0: i32, %arg1: i32) -> (i32, i32) {
    %c0_i32 = arith.constant 0 : i32
    return %arg0, %arg1 : i32, i32
  }
}

module attributes {stable_mosaic.version = 11 : i64} {
  func.func @_fused_linear_kernel(%arg0: i32, %arg1: i32, %arg2: memref<16x32xbf16, #tpu.memory_space<vmem>>, %arg3: memref<1x32xf32, #tpu.memory_space<vmem>>, %arg4: memref<1x32xf32, #tpu.memory_space<vmem>>, %arg5: memref<64x32xbf16, #tpu.memory_space<vmem>>, %arg6: memref<16x64xbf16, #tpu.memory_space<vmem>>, %arg7: memref<16x32xbf16, #tpu.memory_space<vmem>>) attributes {dimension_semantics = [#tpu.dimension_semantics<parallel>, #tpu.dimension_semantics<arbitrary>], iteration_bounds = array<i64: 1, 1>, scalar_prefetch = 0 : i64, scratch_operands = 1 : i64, tpu.core_type = #tpu.core_type<tc>, window_params = [{transform_indices = @transform_0, window_bounds = array<i64: 16, 32>}, {pipeline_mode = #tpu.pipeline_mode<synchronous>, transform_indices = @transform_1, window_bounds = array<i64: 1, 32>}, {pipeline_mode = #tpu.pipeline_mode<synchronous>, transform_indices = @transform_2, window_bounds = array<i64: 1, 32>}, {transform_indices = @transform_3, window_bounds = array<i64: 64, 32>}, {transform_indices = @transform_4, window_bounds = array<i64: 16, 64>}]} {
    %c0_i32 = arith.constant 0 : i32
    %0 = arith.cmpi eq, %arg1, %c0_i32 : i32
    %1 = arith.extui %0 : i1 to i32
    %c0_i32_0 = arith.constant 0 : i32
    %2 = arith.cmpi ne, %1, %c0_i32_0 : i32
    scf.if %2 {
      %c0_6 = arith.constant 0 : index
      %c0_7 = arith.constant 0 : index
      %8 = vector.load %arg2[%c0_6, %c0_7] : memref<16x32xbf16, #tpu.memory_space<vmem>>, vector<16x32xbf16>
      %9 = arith.extf %8 : vector<16x32xbf16> to vector<16x32xf32>
      %cst_8 = arith.constant dense<0.000000e+00> : vector<16xf32>
      %10 = vector.multi_reduction <add>, %9, %cst_8 [1] : vector<16x32xf32> to vector<16xf32>
      %11 = vector.shape_cast %10 : vector<16xf32> to vector<16x1xf32>
      %cst_9 = arith.constant 3.200000e+01 : f32
      %12 = vector.broadcast %cst_9 : f32 to vector<16x1xf32>
      %13 = arith.divf %11, %12 : vector<16x1xf32>
      %14 = vector.broadcast %13 : vector<16x1xf32> to vector<16x32xf32>
      %15 = arith.subf %9, %14 : vector<16x32xf32>
      %16 = arith.mulf %15, %15 : vector<16x32xf32>
      %cst_10 = arith.constant dense<0.000000e+00> : vector<16xf32>
      %17 = vector.multi_reduction <add>, %16, %cst_10 [1] : vector<16x32xf32> to vector<16xf32>
      %18 = vector.shape_cast %17 : vector<16xf32> to vector<16x1xf32>
      %cst_11 = arith.constant 3.200000e+01 : f32
      %19 = vector.broadcast %cst_11 : f32 to vector<16x1xf32>
      %20 = arith.divf %18, %19 : vector<16x1xf32>
      %cst_12 = arith.constant 9.99999974E-6 : f32
      %21 = vector.broadcast %cst_12 : f32 to vector<16x1xf32>
      %22 = arith.addf %20, %21 : vector<16x1xf32>
      %23 = math.rsqrt %22 : vector<16x1xf32>
      %24 = vector.broadcast %23 : vector<16x1xf32> to vector<16x32xf32>
      %25 = arith.mulf %15, %24 : vector<16x32xf32>
      %c0_13 = arith.constant 0 : index
      %c0_14 = arith.constant 0 : index
      %26 = vector.load %arg3[%c0_13, %c0_14] : memref<1x32xf32, #tpu.memory_space<vmem>>, vector<1x32xf32>
      %27 = vector.broadcast %26 : vector<1x32xf32> to vector<16x32xf32>
      %28 = arith.mulf %25, %27 : vector<16x32xf32>
      %c0_15 = arith.constant 0 : index
      %c0_16 = arith.constant 0 : index
      %29 = vector.load %arg4[%c0_15, %c0_16] : memref<1x32xf32, #tpu.memory_space<vmem>>, vector<1x32xf32>
      %30 = vector.broadcast %29 : vector<1x32xf32> to vector<16x32xf32>
      %31 = arith.addf %28, %30 : vector<16x32xf32>
      %32 = arith.truncf %31 : vector<16x32xf32> to vector<16x32xbf16>
      %c0_17 = arith.constant 0 : index
      %c0_18 = arith.constant 0 : index
      %33 = vector.load %arg7[%c0_17, %c0_18] : memref<16x32xbf16, #tpu.memory_space<vmem>>, vector<16x32xbf16>
      tpu.vector_store %arg7[%c0_17, %c0_18], %32 {strides = array<i32>} : memref<16x32xbf16, #tpu.memory_space<vmem>>, vector<16x32xbf16>,
    } else {
    }
    %c0 = arith.constant 0 : index
    %c0_1 = arith.constant 0 : index
    %3 = vector.load %arg7[%c0, %c0_1] : memref<16x32xbf16, #tpu.memory_space<vmem>>, vector<16x32xbf16>
    %c0_2 = arith.constant 0 : index
    %c0_3 = arith.constant 0 : index
    %4 = vector.load %arg5[%c0_2, %c0_3] : memref<64x32xbf16, #tpu.memory_space<vmem>>, vector<64x32xbf16>
    %cst = arith.constant dense<0.000000e+00> : vector<16x64xf32>
    %5 = tpu.matmul %3, %4, %cst {dimension_numbers = #tpu.dot_dimension_numbers<[1], [1], [0], [0], [0, 0, 1, 0], [], []>} : vector<16x32xbf16>, vector<64x32xbf16>, vector<16x64xf32> -> vector<16x64xf32>
    %6 = arith.truncf %5 : vector<16x64xf32> to vector<16x64xbf16>
    %c0_4 = arith.constant 0 : index
    %c0_5 = arith.constant 0 : index
    %7 = vector.load %arg6[%c0_4, %c0_5] : memref<16x64xbf16, #tpu.memory_space<vmem>>, vector<16x64xbf16>
    tpu.vector_store %arg6[%c0_4, %c0_5], %6 {strides = array<i32>} : memref<16x64xbf16, #tpu.memory_space<vmem>>, vector<16x64xbf16>,
    return
  }
  func.func @transform_0(%arg0: i32, %arg1: i32) -> (i32, i32) {
    %c0_i32 = arith.constant 0 : i32
    %c0_i32_0 = arith.constant 0 : i32
    return %arg0, %c0_i32 : i32, i32
  }
  func.func @transform_1(%arg0: i32, %arg1: i32) -> (i32, i32) {
    %c0_i32 = arith.constant 0 : i32
    %c0_i32_0 = arith.constant 0 : i32
    %c0_i32_1 = arith.constant 0 : i32
    return %c0_i32, %c0_i32_0 : i32, i32
  }
  func.func @transform_2(%arg0: i32, %arg1: i32) -> (i32, i32) {
    %c0_i32 = arith.constant 0 : i32
    %c0_i32_0 = arith.constant 0 : i32
    %c0_i32_1 = arith.constant 0 : i32
    return %c0_i32, %c0_i32_0 : i32, i32
  }
  func.func @transform_3(%arg0: i32, %arg1: i32) -> (i32, i32) {
    %c0_i32 = arith.constant 0 : i32
    %c0_i32_0 = arith.constant 0 : i32
    return %arg1, %c0_i32 : i32, i32
  }
  func.func @transform_4(%arg0: i32, %arg1: i32) -> (i32, i32) {
    %c0_i32 = arith.constant 0 : i32
    return %arg0, %arg1 : i32, i32
  }
}

</mosaic_0001>

<bundles_post_ra>
// kernel: gpt_forward.11
= control target key start
LH: loop header
LB: loop body
LE: loop exit
PB: predicated region body
PF: predicated region fallthrough
CT: control target
= control target key end

     0   :  { %9 = vsyncpa [#allocation4], 0  ;;  %s498_s0 = inlined_call_operand.hbm [shape: bf16[16,32], index: 0, kind: input, shape index: {}]   ;;  %s499_s1 = inlined_call_operand.hbm [shape: f32[1,32], index: 1, kind: input, shape index: {}]   ;;  %s500_s2 = inlined_call_operand.hbm [shape: f32[1,32], index: 2, kind: input, shape index: {}]   ;;  %s501_s3 = inlined_call_operand.hbm [shape: bf16[32,96], index: 3, kind: input, shape index: {}]   ;;  %s502_s4 = inlined_call_operand.hbm [shape: bf16[16,96], index: 4, kind: output, shape index: {}]  }
   0x1   :  { %10 = vsyncpa [#allocation7], 0 }
   0x2   :  { %11 = vsyncpa [#allocation10], 0 }
   0x3   :  { %12 = vsyncpa [#allocation5], 0  ;;  %s375_s15 = smov [#allocation6]   ;;  %s376_s17 = smov [#allocation3]  }
   0x4   :  { %s31_s16 = sshll.u32 %s375_s15, 4  ;;  %s18_s18 = sshll.u32 %s376_s17, 4  ;;  %s32_s16 = int_to_ptr.vmem [resolvable:$true] %s31_s16  ;;  %s409_s18 = int_to_ptr.vmem [resolvable:$true] %s18_s18 }
   0x5   :  { %s257_s21 = scalar_lea.hbm %s499_s1, 16 }
   0x6   :  { %p258_p0 = scmp.ne.s32.totalorder %s499_s1, %s257_s21  ;;  %p261_p1 = scmp.lt.u32.totalorder %s257_s21, %s499_s1 }
   0x8   :  { %p263_p2 = pnand %p261_p1, %p258_p0 }
   0xa   :  { %266 = shalt.err (!%p263_p2)
}
   0xb   :  { %s267_s26 = scalar_lea.vmem %s32_s16, 16  ;;  %s271_s27 = scalar_lea.vmem %s32_s16, 32 }
   0xc   :  { %p268_p3 = scmp.ne.s32.totalorder %s32_s16, %s267_s26  ;;  %p272_p4 = scmp.lt.s32.totalorder %s32_s16, %s32_s16 }
   0xd   :  { %p273_p5 = scmp.lt.s32.totalorder %s271_s27, %s267_s26 }
   0xf   :  { %p274_p6 = por %p273_p5, %p272_p4 }
  0x11   :  { %p275_p7 = pnand %p274_p6, %p268_p3 }
  0x13   :  { %278 = shalt.err (!%p275_p7)
}
  0x14   :  { %34 = dma.hbm_to_vmem [thread:$0]  %s499_s1, 16, %s32_s16, [#allocation7]  }
  0x15   :  { %s279_s6 = scalar_lea.hbm %s498_s0, 128 }
  0x16   :  { %p280_p8 = scmp.ne.s32.totalorder %s498_s0, %s279_s6  ;;  %p283_p9 = scmp.lt.u32.totalorder %s279_s6, %s498_s0 }
  0x18   :  { %p285_p10 = pnand %p283_p9, %p280_p8 }
  0x1a   :  { %288 = shalt.err (!%p285_p10)
}
  0x1b   :  { %s289_s11 = scalar_lea.vmem %s409_s18, 128  ;;  %p294_p12 = scmp.lt.s32.totalorder %s409_s18, %s409_s18 }
  0x1c   :  { %p290_p11 = scmp.ne.s32.totalorder %s409_s18, %s289_s11  ;;  %p295_p13 = scmp.lt.s32.totalorder %s289_s11, %s289_s11 }
  0x1e   :  { %p296_p0 = por %p295_p13, %p294_p12 }
  0x20   :  { %p297_p1 = pnand %p296_p0, %p290_p11 }
  0x22   :  { %300 = shalt.err (!%p297_p1)
}
  0x23   :  { %s377_s1 = smov 64   ;;  %s378_s12 = smov 4  }
  0x24   :  { %24 = dma.hbm_to_vmem [thread:$0]  %s498_s0, 128, %s409_s18, [#allocation4], %s377_s1, %s377_s1, %s378_s12  }
  0x25   :  { %s379_s15 = smov [#allocation8]   ;;  %s380_s17 = smov [#allocation9]  }
  0x26   :  { %s41_s16 = sshll.u32 %s379_s15, 4  ;;  %s50_s19 = sshll.u32 %s380_s17, 4  ;;  %s42_s16 = int_to_ptr.vmem [resolvable:$true] %s41_s16  ;;  %s443_s19 = int_to_ptr.vmem [resolvable:$true] %s50_s19 }
  0x27   :  { %s301_s22 = scalar_lea.hbm %s500_s2, 16 }
  0x28   :  { %p302_p2 = scmp.ne.s32.totalorder %s500_s2, %s301_s22  ;;  %p305_p3 = scmp.lt.u32.totalorder %s301_s22, %s500_s2 }
  0x2a   :  { %p307_p4 = pnand %p305_p3, %p302_p2 }
  0x2c   :  { %310 = shalt.err (!%p307_p4)
}
  0x2d   :  { %s311_s0 = scalar_lea.vmem %s42_s16, 16  ;;  %s315_s18 = scalar_lea.vmem %s42_s16, 32 }
  0x2e   :  { %p312_p5 = scmp.ne.s32.totalorder %s42_s16, %s311_s0  ;;  %p316_p6 = scmp.lt.s32.totalorder %s42_s16, %s42_s16 }
  0x2f   :  { %p317_p7 = scmp.lt.s32.totalorder %s315_s18, %s311_s0 }
  0x31   :  { %p318_p8 = por %p317_p7, %p316_p6 }
  0x33   :  { %p319_p9 = pnand %p318_p8, %p312_p5 }
  0x35   :  { %322 = shalt.err (!%p319_p9)
}
  0x36   :  { %44 = dma.hbm_to_vmem [thread:$0]  %s500_s2, 16, %s42_s16, [#allocation7]  }
  0x37   :  { %s323_s5 = scalar_lea.hbm %s501_s3, 256 }
  0x38   :  { %p324_p10 = scmp.ne.s32.totalorder %s501_s3, %s323_s5  ;;  %p327_p11 = scmp.lt.u32.totalorder %s323_s5, %s501_s3 }
  0x3a   :  { %p329_p12 = pnand %p327_p11, %p324_p10 }
  0x3c   :  { %332 = shalt.err (!%p329_p12)
}
  0x3d   :  { %s333_s10 = scalar_lea.vmem %s443_s19, 256  ;;  %p338_p0 = scmp.lt.s32.totalorder %s443_s19, %s443_s19 }
  0x3e   :  { %p334_p13 = scmp.ne.s32.totalorder %s443_s19, %s333_s10  ;;  %p339_p1 = scmp.lt.s32.totalorder %s333_s10, %s333_s10 }
  0x40   :  { %p340_p2 = por %p339_p1, %p338_p0 }
  0x42   :  { %p341_p3 = pnand %p340_p2, %p334_p13 }
  0x44   :  { %344 = shalt.err (!%p341_p3)
}
  0x45   :  { %56 = dma.hbm_to_vmem [thread:$0]  %s501_s3, 256, %s443_s19, [#allocation10], %s377_s1, %s377_s1, %s378_s12  }
  0x46   :  { %367 = dma.done.wait [#allocation4], 128  }
  0x47   :  { %368 = vsyncadd [#allocation4], 4294967168 }
  0x48   :  { %369 = dma.done.wait [#allocation7], 32  }
  0x49   :  { %370 = vsyncadd [#allocation7], 4294967264 }
  0x4a   :  { %371 = dma.done.wait [#allocation10], 256  }
  0x4b   :  { %372 = vsyncadd [#allocation10], 4294967040  ;;  %v228_v0 = vld [vmem:[#allocation3] sm:$0xff]   ;;  %vm78_vm0 = vcmask 261120   ;;  %v251_v15 = vld [vmem:[#allocation9] sm:$0xff]   ;;  %v381_v16 = vmov 0.0  }
  0x4c   :  { %v229_v1 = vunpack.c.l.bf16 %v228_v0  ;;  %v230_v2 = vunpack.c.h.bf16 %v228_v0  ;;  %234 = vmatprep.subr.bf16.mxu0 %v381_v16  ;;  %v252_v17 = vld [vmem:[#allocation9 + $0x8] sm:$0xff]   ;;  %vm382_vm1 = vmmov 0   ;;  %v218_v26 = vld [vmem:[#allocation6] ss:$0 sm:$0xff]  ;;  %v219_v30 = vld [vmem:[#allocation8] ss:$0 sm:$0xff] }
  0x4d   :  { %235 = vmatpush3.bf16.msra.mxu0 %v251_v15  ;;  %238 = vmatprep.mubr.msk.bf16.mxu0 %vm382_vm1, %v381_v16  ;;  %vm196_vm2 = vcmask 781312   ;;  %s383_s3 = smov [#allocation11]  }
  0x4e   :  { %v79_v3 = vsel %vm78_vm0, %v229_v1, 0.0  ;;  %v82_v4 = vsel %vm78_vm0, %v230_v2, 0.0  ;;  %236 = vmatprep.subr.bf16.mxu0 %v381_v16  ;;  %s204_s13 = sshll.u32 %s383_s3, 4  ;;  %s205_s13 = int_to_ptr.vmem [resolvable:$true] %s204_s13 }
  0x4f   :  { %80 = vadd.xlane.f32.xlu0 %v79_v3  ;;  %s345_s14 = scalar_lea.vmem %s205_s13, 128  ;;  %p350_p5 = scmp.lt.s32.totalorder %s205_s13, %s205_s13 }
  0x50   :  { %p346_p4 = scmp.ne.s32.totalorder %s205_s13, %s345_s14  ;;  %p351_p6 = scmp.lt.s32.totalorder %s345_s14, %s345_s14 }
  0x51   :  { %237 = vmatpush3.bf16.msra.mxu0 %v252_v17 }
  0x52   :  { %p352_p7 = por %p351_p6, %p350_p5 }
  0x53   :  { %83 = vadd.xlane.f32.xlu0 %v82_v4 }
  0x54   :  { %p353_p8 = pnand %p352_p7, %p346_p4 }
  0xdc   :  { %v81_v5 = vpop.xlane.xlu0 %80 }
  0xdd   :  { %v86_v6 = vmul.f32 0.03125, %v81_v5 }
  0xdf   :  { %v88_v7 = vsub.f32 %v229_v1, %v86_v6 }
  0xe0   :  { %v84_v8 = vpop.xlane.xlu0 %83 }
  0xe1   :  { %v87_v9 = vmul.f32 0.03125, %v84_v8  ;;  %v90_v10 = vmul.f32 %v88_v7, %v88_v7 }
  0xe3   :  { %v89_v11 = vsub.f32 %v230_v2, %v87_v9  ;;  %v92_v12 = vsel %vm78_vm0, %v90_v10, 0.0 }
  0xe4   :  { %93 = vadd.xlane.f32.xlu1 %v92_v12 }
  0xe5   :  { %v91_v13 = vmul.f32 %v89_v11, %v89_v11 }
  0xe7   :  { %v95_v14 = vsel %vm78_vm0, %v91_v13, 0.0 }
  0xe8   :  { %96 = vadd.xlane.f32.xlu1 %v95_v14 }
 0x171   :  { %v94_v18 = vpop.xlane.xlu1 %93 }
 0x172   :  { %v98_v19 = vmul.f32 0.03125, %v94_v18 }
 0x174   :  { %v100_v20 = vadd.f32 1e-05, %v98_v19 }
 0x175   :  { %v97_v21 = vpop.xlane.xlu1 %96 }
 0x176   :  { %253 = vrsqrt.f32 %v100_v20  ;;  %v99_v22 = vmul.f32 0.03125, %v97_v21 }
 0x178   :  { %v101_v23 = vadd.f32 1e-05, %v99_v22 }
 0x17a   :  { %255 = vrsqrt.f32 %v101_v23 }
 0x180   :  { %v254_v24 = vpop.eup %253 }
 0x181   :  { %v104_v25 = vmul.f32 %v254_v24, %v88_v7 }
 0x183   :  { %v113_v28 = vmul.f32 %v218_v26, %v104_v25 }
 0x184   :  { %v256_v27 = vpop.eup %255 }
 0x185   :  { %v105_v29 = vmul.f32 %v256_v27, %v89_v11  ;;  %v122_v32 = vadd.f32 %v219_v30, %v113_v28 }
 0x187   :  { %v114_v31 = vmul.f32 %v218_v26, %v105_v29 }
 0x189   :  { %v123_v33 = vadd.f32 %v219_v30, %v114_v31 }
 0x18b   :  { %v124_v34 = vpack.c.bf16 %v123_v33, %v122_v32 }
 0x18d   :  { %125 = vst.msk [vmem:[#allocation2] sm:$0xff] %vm78_vm0, %v124_v34 }
 0x194   :  { %v126_v35 = vld [vmem:[#allocation2] sm:$0xff] }
 0x195   :  { %239 = vmatmul.mubr.msk.bf16.vlgmr.msra.gmra.mrb[0].mxu0 %vm78_vm0, %v126_v35 }
 0x268   :  { %v181_v36 = vpop.f32.mrb[0].mxu0 }
 0x269   :  { %v225_v37 = vpack.c.bf16 %v181_v36, %v181_v36  ;;  %v240_v38 = vpop.f32.mrb[1].mxu0 }
 0x26a   :  { %v184_v39 = vpop.f32.mrb[2].mxu0 }
 0x26b   :  { %v226_v40 = vpack.c.bf16 %v184_v39, %v184_v39  ;;  %v241_v41 = vpop.f32.mrb[3].mxu0  ;;  %197 = vst.msk [vmem:[#allocation11] sm:$0xf] %vm196_vm2, %v225_v37 }
 0x26d   :  { %198 = vst.msk [vmem:[#allocation11 + $0x4] sm:$0xf] %vm196_vm2, %v226_v40 }
 0x26e   :  { %356 = shalt.err (!%p353_p8)
}
 0x26f   :  { %s357_s17 = scalar_lea.hbm %s502_s4, 128 }
 0x270   :  { %p358_p9 = scmp.ne.s32.totalorder %s502_s4, %s357_s17  ;;  %p361_p10 = scmp.lt.u32.totalorder %s357_s17, %s502_s4 }
 0x272   :  { %p363_p11 = pnand %p361_p10, %p358_p9 }
 0x274   :  { %366 = shalt.err (!%p363_p11)
}
 0x275   :  { %210 = dma.vmem_to_hbm [thread:$0]  %s205_s13, 128, %s502_s4, [#allocation5], %s377_s1, %s377_s1, %s378_s12  }
 0x276   :  { %373 = dma.done.wait [#allocation5], 128  }
 0x277   :  { %374 = vsyncadd [#allocation5], 4294967168 }
 0x278   :  { %214 = vsyncpa [#allocation4], 1 }
 0x279   :  { %215 = vsyncpa [#allocation7], 1 }
 0x27a   :  { %216 = vsyncpa [#allocation10], 1 }
 0x27b   :  { %217 = vsyncpa [#allocation5], 1 }

// kernel: gpt_forward.13
= control target key start
LH: loop header
LB: loop body
LE: loop exit
PB: predicated region body
PF: predicated region fallthrough
CT: control target
= control target key end

     0   :  { %8 = vsyncpa [#allocation3], 0  ;;  %s381_s0 = inlined_call_operand.hbm [shape: bf16[16,32], index: 0, kind: input, shape index: {}]   ;;  %s382_s1 = inlined_call_operand.hbm [shape: bf16[32,32], index: 1, kind: input, shape index: {}]   ;;  %s383_s2 = inlined_call_operand.hbm [shape: bf16[16,32], index: 2, kind: input, shape index: {}]   ;;  %s384_s3 = inlined_call_operand.hbm [shape: bf16[16,32], index: 3, kind: output, shape index: {}]  }
   0x1   :  { %9 = vsyncpa [#allocation6], 0 }
   0x2   :  { %10 = vsyncpa [#allocation4], 0  ;;  %s286_s12 = smov [#allocation5]   ;;  %s287_s14 = smov [#allocation2]  }
   0x3   :  { %s28_s13 = sshll.u32 %s286_s12, 4  ;;  %s16_s15 = sshll.u32 %s287_s14, 4  ;;  %s29_s13 = int_to_ptr.vmem [resolvable:$true] %s28_s13  ;;  %s314_s15 = int_to_ptr.vmem [resolvable:$true] %s16_s15 }
   0x4   :  { %s192_s18 = scalar_lea.hbm %s382_s1, 256 }
   0x5   :  { %p193_p0 = scmp.ne.s32.totalorder %s382_s1, %s192_s18  ;;  %p196_p1 = scmp.lt.u32.totalorder %s192_s18, %s382_s1 }
   0x7   :  { %p198_p2 = pnand %p196_p1, %p193_p0 }
   0x9   :  { %201 = shalt.err (!%p198_p2)
}
   0xa   :  { %s202_s23 = scalar_lea.vmem %s29_s13, 256  ;;  %p207_p4 = scmp.lt.s32.totalorder %s29_s13, %s29_s13 }
   0xb   :  { %p203_p3 = scmp.ne.s32.totalorder %s29_s13, %s202_s23  ;;  %p208_p5 = scmp.lt.s32.totalorder %s202_s23, %s202_s23 }
   0xd   :  { %p209_p6 = por %p208_p5, %p207_p4 }
   0xf   :  { %p210_p7 = pnand %p209_p6, %p203_p3 }
  0x11   :  { %213 = shalt.err (!%p210_p7)
}
  0x12   :  { %s288_s24 = smov 64   ;;  %s289_s25 = smov 4  }
  0x13   :  { %34 = dma.hbm_to_vmem [thread:$0]  %s382_s1, 256, %s29_s13, [#allocation6], %s288_s24, %s288_s24, %s289_s25  }
  0x14   :  { %s214_s30 = scalar_lea.hbm %s381_s0, 128 }
  0x15   :  { %p215_p8 = scmp.ne.s32.totalorder %s381_s0, %s214_s30  ;;  %p218_p9 = scmp.lt.u32.totalorder %s214_s30, %s381_s0 }
  0x17   :  { %p220_p10 = pnand %p218_p9, %p215_p8 }
  0x19   :  { %223 = shalt.err (!%p220_p10)
}
  0x1a   :  { %s224_s8 = scalar_lea.vmem %s314_s15, 128  ;;  %p229_p12 = scmp.lt.s32.totalorder %s314_s15, %s314_s15 }
  0x1b   :  { %p225_p11 = scmp.ne.s32.totalorder %s314_s15, %s224_s8  ;;  %p230_p13 = scmp.lt.s32.totalorder %s224_s8, %s224_s8 }
  0x1d   :  { %p231_p0 = por %p230_p13, %p229_p12 }
  0x1f   :  { %p232_p1 = pnand %p231_p0, %p225_p11 }
  0x21   :  { %235 = shalt.err (!%p232_p1)
}
  0x22   :  { %22 = dma.hbm_to_vmem [thread:$0]  %s381_s0, 128, %s314_s15, [#allocation3], %s288_s24, %s288_s24, %s289_s25  }
  0x23   :  { %s290_s10 = smov [#allocation7]   ;;  %s236_s14 = scalar_lea.hbm %s383_s2, 128 }
  0x24   :  { %s40_s11 = sshll.u32 %s290_s10, 4  ;;  %p237_p2 = scmp.ne.s32.totalorder %s383_s2, %s236_s14  ;;  %s41_s11 = int_to_ptr.vmem [resolvable:$true] %s40_s11 }
  0x25   :  { %p240_p3 = scmp.lt.u32.totalorder %s236_s14, %s383_s2 }
  0x27   :  { %p242_p4 = pnand %p240_p3, %p237_p2 }
  0x29   :  { %245 = shalt.err (!%p242_p4)
}
  0x2a   :  { %s246_s20 = scalar_lea.vmem %s41_s11, 128  ;;  %p251_p6 = scmp.lt.s32.totalorder %s41_s11, %s41_s11 }
  0x2b   :  { %p247_p5 = scmp.ne.s32.totalorder %s41_s11, %s246_s20  ;;  %p252_p7 = scmp.lt.s32.totalorder %s246_s20, %s246_s20 }
  0x2d   :  { %p253_p8 = por %p252_p7, %p251_p6 }
  0x2f   :  { %p254_p9 = pnand %p253_p8, %p247_p5 }
  0x31   :  { %257 = shalt.err (!%p254_p9)
}
  0x32   :  { %46 = dma.hbm_to_vmem [thread:$0]  %s383_s2, 128, %s41_s11, [#allocation6], %s288_s24, %s288_s24, %s289_s25  }
  0x33   :  { %280 = dma.done.wait [#allocation3], 128  }
  0x34   :  { %281 = vsyncadd [#allocation3], 4294967168 }
  0x35   :  { %282 = dma.done.wait [#allocation6], 384  }
  0x36   :  { %283 = vsyncadd [#allocation6], 4294966912  ;;  %v291_v0 = vmov 0.0   ;;  %vm292_vm0 = vmmov 0   ;;  %v189_v1 = vld [vmem:[#allocation5] sm:$0xff]   ;;  %v190_v2 = vld [vmem:[#allocation5 + $0x8] sm:$0xff]  }
  0x37   :  { %173 = vmatprep.subr.bf16.mxu0 %v291_v0  ;;  %177 = vmatprep.mubr.msk.bf16.mxu0 %vm292_vm0, %v291_v0  ;;  %v191_v3 = vld [vmem:[#allocation2] sm:$0xff]   ;;  %vm84_vm1 = vcmask 261120   ;;  %v167_v4 = vld [vmem:[#allocation7] sm:$0xff]   ;;  %vm137_vm2 = vcmask 257024   ;;  %s293_s2 = smov [#allocation8]  }
  0x38   :  { %174 = vmatpush3.bf16.msra.mxu0 %v189_v1  ;;  %v168_v5 = vunpack.c.l.bf16 %v167_v4  ;;  %v169_v6 = vunpack.c.h.bf16 %v167_v4  ;;  %s145_s21 = sshll.u32 %s293_s2, 4  ;;  %s146_s21 = int_to_ptr.vmem [resolvable:$true] %s145_s21 }
  0x39   :  { %175 = vmatprep.subr.bf16.mxu0 %v291_v0  ;;  %s258_s22 = scalar_lea.vmem %s146_s21, 128  ;;  %p263_p11 = scmp.lt.s32.totalorder %s146_s21, %s146_s21 }
  0x3a   :  { %p259_p10 = scmp.ne.s32.totalorder %s146_s21, %s258_s22  ;;  %p264_p12 = scmp.lt.s32.totalorder %s258_s22, %s258_s22 }
  0x3c   :  { %176 = vmatpush3.bf16.msra.mxu0 %v190_v2  ;;  %p265_p13 = por %p264_p12, %p263_p11 }
  0x3e   :  { %p266_p0 = pnand %p265_p13, %p259_p10 }
  0x3f   :  { %178 = vmatmul.mubr.msk.bf16.vlgmr.msra.gmra.mrb[0].mxu0 %vm84_vm1, %v191_v3 }
 0x112   :  { %v122_v7 = vpop.f32.mrb[0].mxu0 }
 0x113   :  { %v123_v8 = vadd.f32 %v168_v5, %v122_v7  ;;  %v179_v9 = vpop.f32.mrb[1].mxu0 }
 0x114   :  { %v125_v10 = vpop.f32.mrb[2].mxu0 }
 0x115   :  { %v164_v11 = vpack.c.bf16 %v123_v8, %v123_v8  ;;  %v126_v12 = vadd.f32 %v169_v6, %v125_v10  ;;  %v180_v13 = vpop.f32.mrb[3].mxu0 }
 0x117   :  { %v165_v14 = vpack.c.bf16 %v126_v12, %v126_v12  ;;  %138 = vst.msk [vmem:[#allocation8] sm:$0xf] %vm137_vm2, %v164_v11 }
 0x119   :  { %139 = vst.msk [vmem:[#allocation8 + $0x4] sm:$0xf] %vm137_vm2, %v165_v14 }
 0x11a   :  { %269 = shalt.err (!%p266_p0)
}
 0x11b   :  { %s270_s27 = scalar_lea.hbm %s384_s3, 128 }
 0x11c   :  { %p271_p1 = scmp.ne.s32.totalorder %s384_s3, %s270_s27  ;;  %p274_p2 = scmp.lt.u32.totalorder %s270_s27, %s384_s3 }
 0x11e   :  { %p276_p3 = pnand %p274_p2, %p271_p1 }
 0x120   :  { %279 = shalt.err (!%p276_p3)
}
 0x121   :  { %151 = dma.vmem_to_hbm [thread:$0]  %s146_s21, 128, %s384_s3, [#allocation4], %s288_s24, %s288_s24, %s289_s25  }
 0x122   :  { %284 = dma.done.wait [#allocation4], 128  }
 0x123   :  { %285 = vsyncadd [#allocation4], 4294967168 }
 0x124   :  { %155 = vsyncpa [#allocation3], 1 }
 0x125   :  { %156 = vsyncpa [#allocation6], 1 }
 0x126   :  { %157 = vsyncpa [#allocation4], 1 }

// kernel: gpt_forward.14
= control target key start
LH: loop header
LB: loop body
LE: loop exit
PB: predicated region body
PF: predicated region fallthrough
CT: control target
= control target key end

     0   :  { %10 = vsyncpa [#allocation4], 0  ;;  %s569_s0 = inlined_call_operand.hbm [shape: bf16[16,32], index: 0, kind: input, shape index: {}]   ;;  %s570_s1 = inlined_call_operand.hbm [shape: f32[1,32], index: 1, kind: input, shape index: {}]   ;;  %s571_s2 = inlined_call_operand.hbm [shape: f32[1,32], index: 2, kind: input, shape index: {}]   ;;  %s572_s3 = inlined_call_operand.hbm [shape: bf16[32,64], index: 3, kind: input, shape index: {}]   ;;  %s573_s4 = inlined_call_operand.hbm [shape: f32[1,64], index: 4, kind: input, shape index: {}]   ;;  %s574_s5 = inlined_call_operand.hbm [shape: bf16[16,64], index: 5, kind: output, shape index: {}]  }
   0x1   :  { %11 = vsyncpa [#allocation7], 0 }
   0x2   :  { %12 = vsyncpa [#allocation10], 0 }
   0x3   :  { %13 = vsyncpa [#allocation5], 0  ;;  %s442_s18 = smov [#allocation6]   ;;  %s302_s22 = scalar_lea.hbm %s570_s1, 16 }
   0x4   :  { %s32_s19 = sshll.u32 %s442_s18, 4  ;;  %p303_p0 = scmp.ne.s32.totalorder %s570_s1, %s302_s22  ;;  %s33_s19 = int_to_ptr.vmem [resolvable:$true] %s32_s19 }
   0x5   :  { %p306_p1 = scmp.lt.u32.totalorder %s302_s22, %s570_s1 }
   0x7   :  { %p308_p2 = pnand %p306_p1, %p303_p0 }
   0x9   :  { %311 = shalt.err (!%p308_p2)
}
   0xa   :  { %s312_s27 = scalar_lea.vmem %s33_s19, 16  ;;  %s316_s28 = scalar_lea.vmem %s33_s19, 32 }
   0xb   :  { %p313_p3 = scmp.ne.s32.totalorder %s33_s19, %s312_s27  ;;  %p317_p4 = scmp.lt.s32.totalorder %s33_s19, %s33_s19 }
   0xc   :  { %p318_p5 = scmp.lt.s32.totalorder %s316_s28, %s312_s27 }
   0xe   :  { %p319_p6 = por %p318_p5, %p317_p4 }
  0x10   :  { %p320_p7 = pnand %p319_p6, %p313_p3 }
  0x12   :  { %323 = shalt.err (!%p320_p7)
}
  0x13   :  { %35 = dma.hbm_to_vmem [thread:$0]  %s570_s1, 16, %s33_s19, [#allocation7]  }
  0x14   :  { %s443_s6 = smov [#allocation9]   ;;  %s444_s8 = smov [#allocation3]  }
  0x15   :  { %s51_s7 = sshll.u32 %s443_s6, 4  ;;  %s19_s9 = sshll.u32 %s444_s8, 4  ;;  %s52_s7 = int_to_ptr.vmem [resolvable:$true] %s51_s7  ;;  %s20_s9 = int_to_ptr.vmem [resolvable:$true] %s19_s9 }
  0x16   :  { %s324_s12 = scalar_lea.hbm %s572_s3, 256 }
  0x17   :  { %p325_p8 = scmp.ne.s32.totalorder %s572_s3, %s324_s12  ;;  %p328_p9 = scmp.lt.u32.totalorder %s324_s12, %s572_s3 }
  0x19   :  { %p330_p10 = pnand %p328_p9, %p325_p8 }
  0x1b   :  { %333 = shalt.err (!%p330_p10)
}
  0x1c   :  { %s334_s1 = scalar_lea.vmem %s52_s7, 256  ;;  %p339_p12 = scmp.lt.s32.totalorder %s52_s7, %s52_s7 }
  0x1d   :  { %p335_p11 = scmp.ne.s32.totalorder %s52_s7, %s334_s1  ;;  %p340_p13 = scmp.lt.s32.totalorder %s334_s1, %s334_s1 }
  0x1f   :  { %p341_p0 = por %p340_p13, %p339_p12 }
  0x21   :  { %p342_p1 = pnand %p341_p0, %p335_p11 }
  0x23   :  { %345 = shalt.err (!%p342_p1)
}
  0x24   :  { %s445_s17 = smov 64   ;;  %s446_s18 = smov 4  }
  0x25   :  { %57 = dma.hbm_to_vmem [thread:$0]  %s572_s3, 256, %s52_s7, [#allocation10], %s445_s17, %s445_s17, %s446_s18  }
  0x26   :  { %s346_s23 = scalar_lea.hbm %s569_s0, 128 }
  0x27   :  { %p347_p2 = scmp.ne.s32.totalorder %s569_s0, %s346_s23  ;;  %p350_p3 = scmp.lt.u32.totalorder %s346_s23, %s569_s0 }
  0x29   :  { %p352_p4 = pnand %p350_p3, %p347_p2 }
  0x2b   :  { %355 = shalt.err (!%p352_p4)
}
  0x2c   :  { %s356_s28 = scalar_lea.vmem %s20_s9, 128  ;;  %p361_p6 = scmp.lt.s32.totalorder %s20_s9, %s20_s9 }
  0x2d   :  { %p357_p5 = scmp.ne.s32.totalorder %s20_s9, %s356_s28  ;;  %p362_p7 = scmp.lt.s32.totalorder %s356_s28, %s356_s28 }
  0x2f   :  { %p363_p8 = por %p362_p7, %p361_p6 }
  0x31   :  { %p364_p9 = pnand %p363_p8, %p357_p5 }
  0x33   :  { %367 = shalt.err (!%p364_p9)
}
  0x34   :  { %25 = dma.hbm_to_vmem [thread:$0]  %s569_s0, 128, %s20_s9, [#allocation4], %s445_s17, %s445_s17, %s446_s18  }
  0x35   :  { %s447_s30 = smov [#allocation8]   ;;  %s448_s7 = smov [#allocation11]  }
  0x36   :  { %s42_s6 = sshll.u32 %s447_s30, 4  ;;  %s64_s8 = sshll.u32 %s448_s7, 4  ;;  %s43_s6 = int_to_ptr.vmem [resolvable:$true] %s42_s6  ;;  %s65_s8 = int_to_ptr.vmem [resolvable:$true] %s64_s8 }
  0x37   :  { %s368_s12 = scalar_lea.hbm %s571_s2, 16 }
  0x38   :  { %p369_p10 = scmp.ne.s32.totalorder %s571_s2, %s368_s12  ;;  %p372_p11 = scmp.lt.u32.totalorder %s368_s12, %s571_s2 }
  0x3a   :  { %p374_p12 = pnand %p372_p11, %p369_p10 }
  0x3c   :  { %377 = shalt.err (!%p374_p12)
}
  0x3d   :  { %s378_s0 = scalar_lea.vmem %s43_s6, 16  ;;  %s382_s9 = scalar_lea.vmem %s43_s6, 32 }
  0x3e   :  { %p379_p13 = scmp.ne.s32.totalorder %s43_s6, %s378_s0  ;;  %p383_p0 = scmp.lt.s32.totalorder %s43_s6, %s43_s6 }
  0x3f   :  { %p384_p1 = scmp.lt.s32.totalorder %s382_s9, %s378_s0 }
  0x41   :  { %p385_p2 = por %p384_p1, %p383_p0 }
  0x43   :  { %p386_p3 = pnand %p385_p2, %p379_p13 }
  0x45   :  { %389 = shalt.err (!%p386_p3)
}
  0x46   :  { %45 = dma.hbm_to_vmem [thread:$0]  %s571_s2, 16, %s43_s6, [#allocation7]  }
  0x47   :  { %s390_s22 = scalar_lea.hbm %s573_s4, 16 }
  0x48   :  { %p391_p4 = scmp.ne.s32.totalorder %s573_s4, %s390_s22  ;;  %p394_p5 = scmp.lt.u32.totalorder %s390_s22, %s573_s4 }
  0x4a   :  { %p396_p6 = pnand %p394_p5, %p391_p4 }
  0x4c   :  { %399 = shalt.err (!%p396_p6)
}
  0x4d   :  { %s400_s27 = scalar_lea.vmem %s65_s8, 16  ;;  %s404_s28 = scalar_lea.vmem %s65_s8, 32 }
  0x4e   :  { %p401_p7 = scmp.ne.s32.totalorder %s65_s8, %s400_s27  ;;  %p405_p8 = scmp.lt.s32.totalorder %s65_s8, %s65_s8 }
  0x4f   :  { %p406_p9 = scmp.lt.s32.totalorder %s404_s28, %s400_s27 }
  0x51   :  { %p407_p10 = por %p406_p9, %p405_p8 }
  0x53   :  { %p408_p11 = pnand %p407_p10, %p401_p7 }
  0x55   :  { %411 = shalt.err (!%p408_p11)
}
  0x56   :  { %67 = dma.hbm_to_vmem [thread:$0]  %s573_s4, 16, %s65_s8, [#allocation10]  }
  0x57   :  { %434 = dma.done.wait [#allocation4], 128  }
  0x58   :  { %435 = vsyncadd [#allocation4], 4294967168 }
  0x59   :  { %436 = dma.done.wait [#allocation7], 32  }
  0x5a   :  { %437 = vsyncadd [#allocation7], 4294967264 }
  0x5b   :  { %438 = dma.done.wait [#allocation10], 272  }
  0x5c   :  { %439 = vsyncadd [#allocation10], 4294967024  ;;  %v268_v0 = vld [vmem:[#allocation3] sm:$0xff]   ;;  %vm92_vm0 = vcmask 261120   ;;  %v292_v15 = vld [vmem:[#allocation9] sm:$0xff]   ;;  %v449_v16 = vmov 0.0  }
  0x5d   :  { %v269_v1 = vunpack.c.l.bf16 %v268_v0  ;;  %v270_v2 = vunpack.c.h.bf16 %v268_v0  ;;  %274 = vmatprep.subr.bf16.mxu0 %v449_v16  ;;  %v293_v17 = vld [vmem:[#allocation9 + $0x8] sm:$0xff]   ;;  %vm450_vm1 = vmmov 0   ;;  %v257_v26 = vld [vmem:[#allocation6] ss:$0 sm:$0xff]  ;;  %v258_v30 = vld [vmem:[#allocation8] ss:$0 sm:$0xff] }
  0x5e   :  { %275 = vmatpush3.bf16.msra.mxu0 %v292_v15  ;;  %278 = vmatprep.mubr.msk.bf16.mxu0 %vm450_vm1, %v449_v16  ;;  %v259_v36 = vld [vmem:[#allocation11] ss:$0 sm:$0xff]  ;;  %vm235_vm2 = vcmask 519168   ;;  %s451_s4 = smov [#allocation12]  }
  0x5f   :  { %v93_v3 = vsel %vm92_vm0, %v269_v1, 0.0  ;;  %v96_v4 = vsel %vm92_vm0, %v270_v2, 0.0  ;;  %276 = vmatprep.subr.bf16.mxu0 %v449_v16  ;;  %s243_s29 = sshll.u32 %s451_s4, 4  ;;  %s244_s29 = int_to_ptr.vmem [resolvable:$true] %s243_s29 }
  0x60   :  { %94 = vadd.xlane.f32.xlu0 %v93_v3  ;;  %s412_s30 = scalar_lea.vmem %s244_s29, 128  ;;  %p417_p13 = scmp.lt.s32.totalorder %s244_s29, %s244_s29 }
  0x61   :  { %p413_p12 = scmp.ne.s32.totalorder %s244_s29, %s412_s30  ;;  %p418_p0 = scmp.lt.s32.totalorder %s412_s30, %s412_s30 }
  0x62   :  { %277 = vmatpush3.bf16.msra.mxu0 %v293_v17 }
  0x63   :  { %p419_p1 = por %p418_p0, %p417_p13 }
  0x64   :  { %97 = vadd.xlane.f32.xlu0 %v96_v4 }
  0x65   :  { %p420_p2 = pnand %p419_p1, %p413_p12 }
  0xed   :  { %v95_v5 = vpop.xlane.xlu0 %94 }
  0xee   :  { %v100_v6 = vmul.f32 0.03125, %v95_v5 }
  0xf0   :  { %v102_v7 = vsub.f32 %v269_v1, %v100_v6 }
  0xf1   :  { %v98_v8 = vpop.xlane.xlu0 %97 }
  0xf2   :  { %v101_v9 = vmul.f32 0.03125, %v98_v8  ;;  %v104_v10 = vmul.f32 %v102_v7, %v102_v7 }
  0xf4   :  { %v103_v11 = vsub.f32 %v270_v2, %v101_v9  ;;  %v106_v12 = vsel %vm92_vm0, %v104_v10, 0.0 }
  0xf5   :  { %107 = vadd.xlane.f32.xlu1 %v106_v12 }
  0xf6   :  { %v105_v13 = vmul.f32 %v103_v11, %v103_v11 }
  0xf8   :  { %v109_v14 = vsel %vm92_vm0, %v105_v13, 0.0 }
  0xf9   :  { %110 = vadd.xlane.f32.xlu1 %v109_v14 }
 0x182   :  { %v108_v18 = vpop.xlane.xlu1 %107 }
 0x183   :  { %v112_v19 = vmul.f32 0.03125, %v108_v18 }
 0x185   :  { %v114_v20 = vadd.f32 1e-05, %v112_v19 }
 0x186   :  { %v111_v21 = vpop.xlane.xlu1 %110 }
 0x187   :  { %294 = vrsqrt.f32 %v114_v20  ;;  %v113_v22 = vmul.f32 0.03125, %v111_v21 }
 0x189   :  { %v115_v23 = vadd.f32 1e-05, %v113_v22 }
 0x18b   :  { %296 = vrsqrt.f32 %v115_v23 }
 0x191   :  { %v295_v24 = vpop.eup %294 }
 0x192   :  { %v118_v25 = vmul.f32 %v295_v24, %v102_v7 }
 0x194   :  { %v127_v28 = vmul.f32 %v257_v26, %v118_v25 }
 0x195   :  { %v297_v27 = vpop.eup %296 }
 0x196   :  { %v119_v29 = vmul.f32 %v297_v27, %v103_v11  ;;  %v136_v32 = vadd.f32 %v258_v30, %v127_v28 }
 0x198   :  { %v128_v31 = vmul.f32 %v257_v26, %v119_v29 }
 0x19a   :  { %v137_v33 = vadd.f32 %v258_v30, %v128_v31 }
 0x19c   :  { %v138_v34 = vpack.c.bf16 %v137_v33, %v136_v32 }
 0x19e   :  { %139 = vst.msk [vmem:[#allocation2] sm:$0xff] %vm92_vm0, %v138_v34 }
 0x1a5   :  { %v140_v35 = vld [vmem:[#allocation2] sm:$0xff] }
 0x1a6   :  { %279 = vmatmul.mubr.msk.bf16.vlgmr.msra.gmra.mrb[0].mxu0 %vm92_vm0, %v140_v35 }
 0x279   :  { %v202_v37 = vpop.f32.mrb[0].mxu0 }
 0x27a   :  { %v203_v38 = vadd.f32 %v259_v36, %v202_v37  ;;  %v280_v39 = vpop.f32.mrb[1].mxu0 }
 0x27b   :  { %v205_v40 = vpop.f32.mrb[2].mxu0 }
 0x27c   :  { %v211_v41 = vmul.f32 0.044715, %v203_v38  ;;  %v206_v42 = vadd.f32 %v259_v36, %v205_v40  ;;  %v281_v43 = vpop.f32.mrb[3].mxu0  ;;  %v209_v54 = vmul.f32 0.5, %v203_v38 }
 0x27e   :  { %v213_v44 = vmul.f32 %v211_v41, %v203_v38  ;;  %v212_v45 = vmul.f32 0.044715, %v206_v42  ;;  %v210_v57 = vmul.f32 0.5, %v206_v42 }
 0x280   :  { %v215_v46 = vmul.f32 %v213_v44, %v203_v38  ;;  %v214_v47 = vmul.f32 %v212_v45, %v206_v42 }
 0x282   :  { %v217_v48 = vadd.f32 %v215_v46, %v203_v38  ;;  %v216_v49 = vmul.f32 %v214_v47, %v206_v42 }
 0x284   :  { %v219_v50 = vmul.f32 0.7978846, %v217_v48  ;;  %v218_v51 = vadd.f32 %v216_v49, %v206_v42 }
 0x286   :  { %v220_v52 = vmul.f32 0.7978846, %v218_v51  ;;  %298 = vtanh.f32 %v219_v50 }
 0x288   :  { %300 = vtanh.f32 %v220_v52 }
 0x290   :  { %v299_v53 = vpop.eup %298 }
 0x291   :  { %v223_v55 = vadd.f32 1.0, %v299_v53 }
 0x292   :  { %v301_v56 = vpop.eup %300 }
 0x293   :  { %v224_v58 = vadd.f32 1.0, %v301_v56  ;;  %v225_v59 = vmul.f32 %v223_v55, %v209_v54 }
 0x295   :  { %v226_v60 = vmul.f32 %v224_v58, %v210_v57  ;;  %v265_v61 = vpack.c.bf16 %v225_v59, %v225_v59 }
 0x297   :  { %v266_v62 = vpack.c.bf16 %v226_v60, %v226_v60  ;;  %236 = vst.msk [vmem:[#allocation12] sm:$0xf] %vm235_vm2, %v265_v61 }
 0x299   :  { %237 = vst.msk [vmem:[#allocation12 + $0x4] sm:$0xf] %vm235_vm2, %v266_v62 }
 0x29a   :  { %423 = shalt.err (!%p420_p2)
}
 0x29b   :  { %s424_s8 = scalar_lea.hbm %s574_s5, 128 }
 0x29c   :  { %p425_p3 = scmp.ne.s32.totalorder %s574_s5, %s424_s8  ;;  %p428_p4 = scmp.lt.u32.totalorder %s424_s8, %s574_s5 }
 0x29e   :  { %p430_p5 = pnand %p428_p4, %p425_p3 }
 0x2a0   :  { %433 = shalt.err (!%p430_p5)
}
 0x2a1   :  { %249 = dma.vmem_to_hbm [thread:$0]  %s244_s29, 128, %s574_s5, [#allocation5], %s445_s17, %s445_s17, %s446_s18  }
 0x2a2   :  { %440 = dma.done.wait [#allocation5], 128  }
 0x2a3   :  { %441 = vsyncadd [#allocation5], 4294967168 }
 0x2a4   :  { %253 = vsyncpa [#allocation4], 1 }
 0x2a5   :  { %254 = vsyncpa [#allocation7], 1 }
 0x2a6   :  { %255 = vsyncpa [#allocation10], 1 }
 0x2a7   :  { %256 = vsyncpa [#allocation5], 1 }

// kernel: gpt_forward.12
= control target key start
LH: loop header
LB: loop body
LE: loop exit
PB: predicated region body
PF: predicated region fallthrough
CT: control target
= control target key end

     0   :  { %s2678_s0 = inlined_call_operand.hbm [shape: bf16[16,96], index: 0, kind: input, shape index: {}, may-alias: {0,1}]   ;;  %s2679_s1 = inlined_call_operand.hbm [shape: bf16[16,96], index: 1, kind: input, shape index: {}, may-alias: {0,1}]   ;;  %s2680_s2 = inlined_call_operand.hbm [shape: f32[8,4], index: 2, kind: input, shape index: {}, may-alias: {2,4}]   ;;  %s2681_s3 = inlined_call_operand.hbm [shape: f32[8,4], index: 3, kind: input, shape index: {}, may-alias: {3,5}]   ;;  %s2682_s4 = inlined_call_operand.hbm [shape: f32[8,4], index: 4, kind: input, shape index: {}, may-alias: {2,4}]   ;;  %s2683_s5 = inlined_call_operand.hbm [shape: f32[8,4], index: 5, kind: input, shape index: {}, may-alias: {3,5}]   ;;  %s2684_s6 = inlined_call_operand.hbm [shape: bf16[16,32], index: 6, kind: output, shape index: {}]  }
   0x1   :  { %2690 = sst [smem:[#allocation21_spill]] %s2680_s2 }
   0x2   :  { %2691 = sst [smem:[#allocation22_spill]] %s2681_s3 }
   0x3   :  { %2692 = sst [smem:[#allocation23_spill]] %s2682_s4 }
   0x4   :  { %2693 = sst [smem:[#allocation24_spill]] %s2683_s5 }
   0x5   :  { %11 = vsyncpa [#allocation3], 0 }
   0x6   :  { %13 = vsyncpa [#allocation3 + $0x1], 0 }
   0x7   :  { %14 = vsyncpa [#allocation6], 0 }
   0x8   :  { %16 = vsyncpa [#allocation6 + $0x1], 0 }
   0x9   :  { %17 = vsyncpa [#allocation9], 0 }
   0xa   :  { %18 = vsyncpa [#allocation12], 0 }
   0xb   :  { %19 = vsyncpa [#allocation4], 0 }
   0xc   :  { %21 = vsyncpa [#allocation4 + $0x1], 0  ;;  %s2124_s21 = smov 0   ;;  %s2126_s22 = smov 0  }
   0xd   :  { %s2128_s23 = smov 0   ;;  %s2130_s24 = smov 0  }
   0xe   :  { %s2132_s25 = smov 0   ;;  %s2134_s26 = smov 0  }
   0xf LB: > { %s2155_s27 = sadd.s32 4294967295, %s2047_s26   ;;  %p1472_p0 = scmp.ge.s32.totalorder %s2047_s26, 1  ;;  %s2047_s26 = sphi %s2134_s26, %s27_s26   ;;  %s2043_s25 = sphi %s2132_s25, %s2724_s25   ;;  %s2039_s24 = sphi %s2130_s24, %s2723_s24   ;;  %s2035_s23 = sphi %s2128_s23, %s2722_s23   ;;  %s2031_s22 = sphi %s2126_s22, %s2721_s22   ;;  %s2027_s21 = sphi %s2124_s21, %s2720_s21  }
  0x10   : > { %p2685_p1 = scmp.eq.s32.totalorder %s2155_s27, 0  ;;  %p220_p2 = scmp.lt.s32.totalorder %s2047_s26, 3 }
  0x11   : > { %s2049_s29 = smov [#allocation7]   ;;  %s2050_s7 = smov [#allocation8]  }
  0x12   : > { %p2160_p3 = pnand %p1472_p0, %p220_p2  ;;  %s235_s30 = sshll.u32 %s2049_s29, 4  ;;  %s236_s30 = int_to_ptr.vmem [resolvable:$true] %s235_s30 }
  0x13   : > { %s248_s8 = sshll.u32 %s2050_s7, 4  ;;  %s2051_s10 = smov [#allocation10]   ;;  %s2173_s8 = int_to_ptr.vmem [resolvable:$true] %s248_s8 }
  0x14   : > { %s2694_s28 = scalar_select %p2160_p3, 1, 0 }
  0x15   : > { %p1641_p5 = pneg %p2160_p3  ;;  %s259_s11 = sshll.u32 %s2051_s10, 4  ;;  %s2175_s11 = int_to_ptr.vmem [resolvable:$true] %s259_s11 }
  0x16   : > { %s2696_s2 = sld [smem:[#allocation21_spill]] }
  0x17   : > { %p2169_p6 = pnand %p1641_p5, %p2685_p1 }
  0x19   : > { %p2185_p8 = pneg %p2169_p6 }
  0x1c   : > { %s1777_s14 = scalar_lea.hbm %s2696_s2, 128 }
  0x1d   : > { %p1778_p7 = scmp.ne.s32.totalorder %s2696_s2, %s1777_s14  ;;  %p1784_p11 = scmp.lt.u32.totalorder %s1777_s14, %s2696_s2 }
  0x1f   : > { %p1780_p9 = pnand %p2185_p8, %p1778_p7 }
  0x21   : > { %p1781_p10 = pneg %p1780_p9 }
  0x23   : > { %p1786_p12 = pnand %p1784_p11, %p1781_p10 }
  0x25   : > { %1789 = shalt.err (!%p1786_p12)
}
  0x26   : > { %s1790_s20 = scalar_lea.vmem %s236_s30, 128  ;;  %p1798_p5 = scmp.lt.s32.totalorder %s236_s30, %s236_s30 }
  0x27   : > { %p1791_p13 = scmp.ne.s32.totalorder %s236_s30, %s1790_s20  ;;  %p1799_p4 = scmp.lt.s32.totalorder %s1790_s20, %s1790_s20 }
  0x29   : > { %p1793_p0 = pnand %p1791_p13, %p2185_p8  ;;  %p1800_p1 = por %p1799_p4, %p1798_p5 }
  0x2b   : > { %p1794_p2 = pneg %p1793_p0 }
  0x2d   : > { %p1801_p3 = pnand %p1800_p1, %p1794_p2 }
  0x2f   : > { %1804 = shalt.err (!%p1801_p3)
}
  0x30   : > { %1644 = dma.hbm_to_vmem [thread:$0]  (!%p2169_p6), %s2696_s2, 128, %s236_s30, [#allocation6]  }
  0x31   : > { %s2698_s3 = sld [smem:[#allocation22_spill]] }
  0x37   : > { %s1805_s13 = scalar_lea.hbm %s2698_s3, 128 }
  0x38   : > { %p1806_p7 = scmp.ne.s32.totalorder %s2698_s3, %s1805_s13  ;;  %p1812_p1 = scmp.lt.u32.totalorder %s1805_s13, %s2698_s3 }
  0x3a   : > { %p1808_p9 = pnand %p1806_p7, %p2185_p8 }
  0x3c   : > { %p1809_p4 = pneg %p1808_p9 }
  0x3e   : > { %p1814_p3 = pnand %p1812_p1, %p1809_p4 }
  0x40   : > { %1817 = shalt.err (!%p1814_p3)
}
  0x41   : > { %s1818_s30 = scalar_lea.vmem %s2173_s8, 128  ;;  %p1826_p13 = scmp.lt.s32.totalorder %s2173_s8, %s2173_s8 }
  0x42   : > { %p1819_p10 = scmp.ne.s32.totalorder %s2173_s8, %s1818_s30  ;;  %p1827_p0 = scmp.lt.s32.totalorder %s1818_s30, %s1818_s30 }
  0x44   : > { %p1821_p11 = pnand %p1819_p10, %p2185_p8  ;;  %p1828_p2 = por %p1827_p0, %p1826_p13 }
  0x46   : > { %p1822_p12 = pneg %p1821_p11 }
  0x48   : > { %p1829_p5 = pnand %p1828_p2, %p1822_p12 }
  0x4a   : > { %1832 = shalt.err (!%p1829_p5)
}
  0x4b   : > { %1647 = dma.hbm_to_vmem [thread:$0]  (!%p2169_p6), %s2698_s3, 128, %s2173_s8, [#allocation9]  }
  0x4c   : > { %s2699_s4 = sld [smem:[#allocation23_spill]] }
  0x52   : > { %s1833_s10 = scalar_lea.hbm %s2699_s4, 128 }
  0x53   : > { %p1834_p7 = scmp.ne.s32.totalorder %s2699_s4, %s1833_s10  ;;  %p1840_p1 = scmp.lt.u32.totalorder %s1833_s10, %s2699_s4 }
  0x55   : > { %p1836_p9 = pnand %p1834_p7, %p2185_p8 }
  0x57   : > { %p1837_p4 = pneg %p1836_p9 }
  0x59   : > { %p1842_p3 = pnand %p1840_p1, %p1837_p4 }
  0x5b   : > { %1845 = shalt.err (!%p1842_p3)
}
  0x5c   : > { %s1846_s8 = scalar_lea.vmem %s2175_s11, 128  ;;  %p1854_p13 = scmp.lt.s32.totalorder %s2175_s11, %s2175_s11 }
  0x5d   : > { %p1847_p10 = scmp.ne.s32.totalorder %s2175_s11, %s1846_s8  ;;  %p1855_p0 = scmp.lt.s32.totalorder %s1846_s8, %s1846_s8 }
  0x5f   : > { %p1849_p11 = pnand %p1847_p10, %p2185_p8  ;;  %p1856_p2 = por %p1855_p0, %p1854_p13 }
  0x61   : > { %p1850_p12 = pneg %p1849_p11 }
  0x63   : > { %p1857_p5 = pnand %p1856_p2, %p1850_p12 }
  0x65   : > { %1860 = shalt.err (!%p1857_p5)
}
  0x66   : > { %1650 = dma.hbm_to_vmem [thread:$0]  (!%p2169_p6), %s2699_s4, 128, %s2175_s11, [#allocation9]  }
  0x67   : > { %s2052_s30 = smov [#allocation11]   ;;  %s2700_s5 = sld [smem:[#allocation24_spill]] }
  0x68   : > { %s270_s19 = sshll.u32 %s2052_s30, 4  ;;  %s271_s19 = int_to_ptr.vmem [resolvable:$true] %s270_s19 }
  0x6d   : > { %s1861_s7 = scalar_lea.hbm %s2700_s5, 128 }
  0x6e   : > { %p1862_p7 = scmp.ne.s32.totalorder %s2700_s5, %s1861_s7  ;;  %p1868_p1 = scmp.lt.u32.totalorder %s1861_s7, %s2700_s5 }
  0x70   : > { %p1864_p9 = pnand %p1862_p7, %p2185_p8 }
  0x72   : > { %p1865_p4 = pneg %p1864_p9 }
  0x74   : > { %p1870_p3 = pnand %p1868_p1, %p1865_p4 }
  0x76   : > { %1873 = shalt.err (!%p1870_p3)
}
  0x77   : > { %s1874_s11 = scalar_lea.vmem %s271_s19, 128  ;;  %p1882_p13 = scmp.lt.s32.totalorder %s271_s19, %s271_s19 }
  0x78   : > { %p1875_p10 = scmp.ne.s32.totalorder %s271_s19, %s1874_s11  ;;  %p1883_p0 = scmp.lt.s32.totalorder %s1874_s11, %s1874_s11 }
  0x7a   : > { %p1877_p11 = pnand %p1875_p10, %p2185_p8  ;;  %p1884_p2 = por %p1883_p0, %p1882_p13 }
  0x7c   : > { %p1878_p12 = pneg %p1877_p11 }
  0x7e   : > { %p1885_p5 = pnand %p1884_p2, %p1878_p12 }
  0x80   : > { %1888 = shalt.err (!%p1885_p5)
}
  0x81   : > { %1653 = dma.hbm_to_vmem [thread:$0]  (!%p2169_p6), %s2700_s5, 128, %s271_s19, [#allocation12]  }
  0x82   : > { %s1471_s17 = sadd.s32 4294967294, %s2047_s26   ;;  %s39_s16 = sadd.s32 1, %s2043_s25 }
  0x83   : > { %p41_p8 = scmp.ge.s32.totalorder %s39_s16, 2  ;;  %s48_s9 = sadd.s32 1, %s2035_s23 }
  0x84   : > { %p55_p7 = scmp.ne.s32.totalorder %s2035_s23, %s2031_s22  ;;  %p56_p9 = scmp.eq.s32.totalorder %s2047_s26, 0 }
  0x85   : > { %s2726_s16 = smov (%p41_p8, %s39_s16), 0  ;;  %p61_p1 = scmp.ne.s32.totalorder %s2031_s22, %s2027_s21 }
  0x86   : > { %2701 = sst [smem:[#allocation20_spill]] %s2726_s16  ;;  %p2273_p4 = por %p56_p9, %p55_p7 }
  0x87   : > { %s45_s30 = ssub.s32 %s2043_s25, %s2726_s16  ;;  %p207_p6 = scmp.eq.s32.totalorder %s2155_s27, 1 }
  0x88   : > { %p46_p3 = scmp.eq.s32.totalorder %s45_s30, 0  ;;  %p2703_p10 = scmp.eq.s32.totalorder %s2155_s27, 0 }
  0x89   : > { %p2288_p12 = por %p207_p6, %p55_p7  ;;  %p213_p13 = scmp.eq.s32.totalorder %s1471_s17, 1 }
  0x8a   : > { %p2284_p11 = por %p2703_p10, %p61_p1  ;;  %p1669_p2 = scmp.lt.s32.totalorder %s2047_s26, 2 }
  0x8b   : > { %s2705_s20 = scalar_select %p2288_p12, 1, 0 }
  0x8c   : > { %s2704_s19 = scalar_select %p2284_p11, 1, 0 }
  0x8d   : > { %s2293_s29 = scalar_select %p46_p3, %s2035_s23, %s48_s9  }
  0x8e   : > { %p2295_p0 = por %p213_p13, %p61_p1  ;;  %s281_s10 = sand.u32 1, %s2035_s23  }
  0x8f   : > { %s1479_s12 = sshll.u32 %s2043_s25, 6  ;;  %s2302_s13 = sshll.u32 %s281_s10, 2 }
  0x90   : > { %s2706_s7 = scalar_select %p2295_p0, 1, 0 }
  0x91   : > { %s2307_s15 = scalar_lea.hbm %s2678_s0, %s1479_s12  ;;  %s285_s8 = scalar_lea.vmem [#allocation2], %s2302_s13 }
  0x92   : > { %s293_s17 = sshll.u32 %s285_s8, 4  ;;  %p2312_p5 = pnand %p1669_p2, %p2273_p4  ;;  %s2316_s17 = int_to_ptr.vmem [resolvable:$true] %s293_s17 }
  0x93   : > { %s2321_s11 = scalar_lea.hbm %s2679_s1, %s1479_s12  ;;  %s282_s2 = scalar_lea.sflag [#allocation3], %s281_s10 }
  0x94   : > { %s1889_s3 = scalar_lea.hbm %s2307_s15, 64  ;;  %p1891_p7 = pneg %p2312_p5 }
  0x95   : > { %p1890_p8 = scmp.ne.s32.totalorder %s2307_s15, %s1889_s3  ;;  %s1894_s4 = scalar_lea.hbm %s2678_s0, 128 }
  0x96   : > { %p1895_p1 = scmp.lt.u32.totalorder %s2307_s15, %s2678_s0  ;;  %p1896_p6 = scmp.lt.u32.totalorder %s1894_s4, %s1889_s3 }
  0x97   : > { %p1892_p9 = pnand %p1891_p7, %p1890_p8  ;;  %p1898_p10 = scmp.lt.u32.totalorder %s1889_s3, %s2307_s15 }
  0x98   : > { %p1897_p3 = por %p1896_p6, %p1895_p1 }
  0x99   : > { %p1893_p4 = pneg %p1892_p9 }
  0x9a   : > { %p1899_p13 = por %p1898_p10, %p1897_p3 }
  0x9c   : > { %p1900_p2 = pnand %p1899_p13, %p1893_p4 }
  0x9e   : > { %1903 = shalt.err (!%p1900_p2)
}
  0x9f   : > { %s1904_s10 = scalar_lea.vmem %s2316_s17, 64  ;;  %s2053_s12 = smov [#allocation2]  }
  0xa0   : > { %p1905_p8 = scmp.ne.s32.totalorder %s2316_s17, %s1904_s10  ;;  %s1909_s30 = sshll.u32 %s2053_s12, 4  ;;  %s1910_s30 = int_to_ptr.vmem [resolvable:$false] %s1909_s30 }
  0xa1   : > { %s1911_s5 = scalar_lea.vmem %s1910_s30, 128  ;;  %p1912_p12 = scmp.lt.s32.totalorder %s2316_s17, %s1910_s30 }
  0xa2   : > { %p1907_p9 = pnand %p1905_p8, %p1891_p7  ;;  %p1913_p1 = scmp.lt.s32.totalorder %s1911_s5, %s1904_s10 }
  0xa4   : > { %p1908_p0 = pneg %p1907_p9  ;;  %p1914_p6 = por %p1913_p1, %p1912_p12 }
  0xa6   : > { %p1915_p3 = pnand %p1914_p6, %p1908_p0 }
  0xa8   : > { %1918 = shalt.err (!%p1915_p3)
}
  0xa9   : > { %1657 = dma.hbm_to_vmem [thread:$0]  (!%p2312_p5), %s2307_s15, 64, %s2316_s17, %s282_s2  }
  0xaa   : > { %s300_s3 = sand.u32 1, %s2047_s26   ;;  %s304_s4 = scalar_lea.vmem [#allocation5], %s2302_s13 }
  0xab   : > { %s311_s16 = sshll.u32 %s304_s4, 4  ;;  %s301_s14 = scalar_lea.sflag [#allocation6], %s300_s3  ;;  %s312_s16 = int_to_ptr.vmem [resolvable:$true] %s311_s16 }
  0xac   : > { %s1919_s18 = scalar_lea.hbm %s2321_s11, 64  ;;  %s1924_s12 = scalar_lea.hbm %s2679_s1, 128 }
  0xad   : > { %p1920_p12 = scmp.ne.s32.totalorder %s2321_s11, %s1919_s18  ;;  %p1925_p10 = scmp.lt.u32.totalorder %s2321_s11, %s2679_s1 }
  0xae   : > { %p1926_p13 = scmp.lt.u32.totalorder %s1924_s12, %s1919_s18  ;;  %p1928_p8 = scmp.lt.u32.totalorder %s1919_s18, %s2321_s11 }
  0xaf   : > { %p1922_p0 = pnand %p1920_p12, %p1891_p7 }
  0xb0   : > { %p1927_p2 = por %p1926_p13, %p1925_p10 }
  0xb1   : > { %p1923_p4 = pneg %p1922_p0 }
  0xb2   : > { %p1929_p9 = por %p1928_p8, %p1927_p2 }
  0xb4   : > { %p1930_p1 = pnand %p1929_p9, %p1923_p4 }
  0xb6   : > { %1933 = shalt.err (!%p1930_p1)
}
  0xb7   : > { %s1934_s2 = scalar_lea.vmem %s312_s16, 64  ;;  %s2054_s13 = smov [#allocation5]  }
  0xb8   : > { %p1935_p6 = scmp.ne.s32.totalorder %s312_s16, %s1934_s2  ;;  %s1939_s15 = sshll.u32 %s2054_s13, 4  ;;  %s1940_s15 = int_to_ptr.vmem [resolvable:$false] %s1939_s15 }
  0xb9   : > { %s1941_s17 = scalar_lea.vmem %s1940_s15, 128  ;;  %p1942_p0 = scmp.lt.s32.totalorder %s312_s16, %s1940_s15 }
  0xba   : > { %p1937_p3 = pnand %p1935_p6, %p1891_p7  ;;  %p1943_p11 = scmp.lt.s32.totalorder %s1941_s17, %s1934_s2 }
  0xbc   : > { %p1938_p12 = pneg %p1937_p3  ;;  %p1944_p10 = por %p1943_p11, %p1942_p0 }
  0xbe   : > { %p1945_p13 = pnand %p1944_p10, %p1938_p12 }
  0xc0   : > { %1948 = shalt.err (!%p1945_p13)
}
  0xc1   : > { %1660 = dma.hbm_to_vmem [thread:$0]  (!%p2312_p5), %s2321_s11, 64, %s312_s16, %s301_s14  }
  0xc2   : > { %p2708_p4 = scmp.ne.s32.totalorder %s2694_s28, 0 }
  0xc3   : > { %s2372_s3 = sand.u32 (!%p2708_p4), 1, %s2031_s22   ;;  %p2709_p11 = scmp.ne.s32.totalorder (!%p2708_p4), %s2704_s19, 0 }
  0xc4   : > { %320 = sbr.rel (%p2708_p4) target bundleno = 2113 (0x841), region = 44  ;;  %s2375_s4 = sshll.u32 (!%p2708_p4), %s2372_s3, 2 }
  0xc5   : > { %s323_s18 = scalar_lea.sflag (!%p2708_p4), [#allocation3], %s2372_s3  ;;  %s326_s8 = scalar_lea.vmem (!%p2708_p4), [#allocation2], %s2375_s4 }
  0xcb   : > { %2002 = dma.done.wait (%p2709_p11), %s323_s18, 64  }
  0xcc   : > { %2004 = vsyncadd (%p2709_p11), %s323_s18, 4294967232  ;;  %s331_s28 = sand.u32 1, %s2155_s27   ;;  %s335_s11 = scalar_lea.vmem [#allocation5], %s2375_s4 }
  0xcd   : > { %s332_s9 = scalar_lea.sflag [#allocation6], %s331_s28 }
  0xce   : > { %2006 = dma.done.wait (%p2709_p11), %s332_s9, 64  }
  0xcf   : > { %2008 = vsyncadd (%p2709_p11), %s332_s9, 4294967232  ;;  %p2710_p5 = scmp.eq.s32.totalorder %s2155_s27, 0 }
  0xd1   : > { %2010 = dma.done.wait (%p2710_p5), [#allocation6], 128   ;;  %p2711_p7 = pmov %p2710_p5 }
  0xd2   : > { %p2712_p2 = pmov %p2710_p5 }
  0xd3   : > { %2012 = vsyncadd (%p2711_p7), [#allocation6], 4294967168 }
  0xd4   : > { %2014 = dma.done.wait (%p2712_p2), [#allocation9], 256   ;;  %p2713_p8 = pmov %p2712_p2 }
  0xd5   : > { %p2714_p9 = pmov %p2712_p2 }
  0xd6   : > { %2016 = vsyncadd (%p2713_p8), [#allocation9], 4294967040 }
  0xd7   : > { %2018 = dma.done.wait (%p2714_p9), [#allocation12], 128   ;;  %p2715_p1 = pmov %p2712_p2 }
  0xd8   : > { %v2401_v0 = vld [vmem:[#allocation11] sm:$0xff]  ;;  %s2055_s19 = smov 32   ;;  %v2404_v1 = vld [vmem:[#allocation10] sm:$0xff]  ;;  %s2056_s16 = smov 36   ;;  %v2408_v2 = vld [vmem:[#allocation7] sm:$0xff]  ;;  %v2059_v14 = vmov 0.0  }
  0xd9   : > { %2020 = vsyncadd (%p2715_p1), [#allocation12], 4294967168  ;;  %449 = vrot.lane.b32.xlu0 %v2401_v0, %s2055_s19  ;;  %445 = vrot.lane.b32.xlu1 %v2404_v1, %s2056_s16  ;;  %s2057_s14 = smov 4   ;;  %v2413_v3 = vld [vmem:[#allocation8] sm:$0xff]  ;;  %v400_v4 = vld [vmem:[%s326_s8] sm:$0xf] }
  0xda   : > { %v2417_v5 = vld [vmem:[%s335_s11] sm:$0xf]  ;;  %v401_v6 = vunpack.c.l.bf16 %v400_v4  ;;  %s2058_s27 = smov 124   ;;  %1531 = vmatprep.subr.bf16.mxu0 %v2059_v14  ;;  %1543 = vmatprep.subr.bf16.mxu1 %v2059_v14  ;;  %vm2060_vm0 = vmmov 0   ;;  %s2061_s10 = smov 92   ;;  %vm465_vm1 = vcmask 31744  }
  0xdb   : > { %v2420_v7 = vunpack.c.l.bf16 %v2417_v5  ;;  %1533 = vmatprep.mubr.msk.bf16.mxu0 %vm2060_vm0, %v2059_v14  ;;  %1545 = vmatprep.mubr.msk.bf16.mxu1 %vm2060_vm0, %v2059_v14  ;;  %s2062_s12 = smov 96   ;;  %s2063_s30 = smov 40   ;;  %v2501_v57 = vcombine.low %v2417_v5, %v2417_v5  ;;  %vm562_vm3 = vcmask 64512   ;;  %vm582_vm4 = vcmask 1043456  }
  0xdc   : > { %v2422_v8 = vmul.f32 0.35355338, %v401_v6  ;;  %s2064_s5 = smov 8   ;;  %s2065_s2 = smov 44   ;;  %vm1303_vm5 = vcmask 130048   ;;  %vm1305_vm6 = vcmask 195584  }
  0xdd   : > { %435 = vrot.lane.b32.xlu0 %v2401_v0, %s2056_s16  ;;  %s2066_s13 = smov 12   ;;  %s2067_s15 = smov 48   ;;  %vm1308_vm7 = vcmask 257024  }
  0xde   : > { %v422_v11 = vmul.f32 %v2422_v8, %v2413_v3  ;;  %s2068_s17 = smov 16   ;;  %s2069_s18 = smov 52   ;;  %v405_v38 = vmul.f32 %v2422_v8, %v2408_v2 }
  0xdf   : > { %s2070_s8 = smov 20   ;;  %s2071_s28 = smov 64  }
  0xe0   : > { %s2072_s9 = smov 84   ;;  %s2073_s11 = smov 116  }
  0xe1   : > { %418 = vrot.lane.b32.xlu0 %v2408_v2, %s2057_s14  ;;  %s2075_s16 = smov 120   ;;  %p2716_p3 = scmp.ne.s32.totalorder %s2705_s20, 0 }
  0xe5   : > { %430 = vrot.lane.b32.xlu0 %v2404_v1, %s2055_s19  ;;  %s2074_s19 = smov 88  }
  0xe9   : > { %407 = vrot.lane.b32.xlu0 %v2413_v3, %s2057_s14 }
 0x14b   : > { %v450_v9 = vpop.permute.xlu0 %449  ;;  %v446_v15 = vpop.permute.xlu1 %445 }
 0x14c   : > { %v452_v10 = vmul.f32 %v450_v9, %v2420_v7  ;;  %v448_v17 = vmul.f32 %v446_v15, %v2420_v7 }
 0x14e   : > { %454 = vrot.lane.b32.xlu1 %v452_v10, %s2057_s14 }
 0x14f   : > { %v436_v12 = vpop.permute.xlu0 %435 }
 0x150   : > { %v438_v13 = vmul.f32 %v436_v12, %v2420_v7 }
 0x152   : > { %424 = vrot.lane.b32.xlu1 %v422_v11, %s2057_s14 }
 0x153   : > { %v419_v16 = vpop.permute.xlu0 %418 }
 0x154   : > { %v421_v20 = vmul.f32 %v419_v16, %v2422_v8 }
 0x156   : > { %440 = vrot.lane.b32.xlu1 %v438_v13, %s2058_s27 }
 0x157   : > { %v431_v21 = vpop.permute.xlu0 %430 }
 0x158   : > { %v433_v25 = vmul.f32 %v431_v21, %v2420_v7 }
 0x15b   : > { %v408_v26 = vpop.permute.xlu0 %407 }
 0x15c   : > { %v410_v30 = vmul.f32 %v408_v26, %v2422_v8 }
 0x1c0   : > { %v455_v18 = vpop.permute.xlu1 %454 }
 0x1c1   : > { %v457_v19 = vadd.f32 %v455_v18, %v448_v17 }
 0x1c3   : > { %v458_v22 = vpack.c.bf16 %v457_v19, %v457_v19 }
 0x1c4   : > { %v425_v23 = vpop.permute.xlu1 %424 }
 0x1c5   : > { %463 = vrot.lane.b32.xlu1 %v458_v22, %s2061_s10  ;;  %v427_v24 = vadd.f32 %v425_v23, %v421_v20  ;;  %s2076_s10 = smov 108  }
 0x1c7   : > { %v428_v27 = vpack.c.bf16 %v427_v24, %v427_v24 }
 0x1c8   : > { %v441_v28 = vpop.permute.xlu1 %440 }
 0x1c9   : > { %v443_v29 = vsub.f32 %v433_v25, %v441_v28  ;;  %460 = vrot.lane.b32.xlu0 %v428_v27, %s2058_s27 }
 0x1cb   : > { %v444_v31 = vpack.c.bf16 %v443_v29, %v443_v29 }
 0x1cd   : > { %513 = vrot.lane.b32.xlu1 %v444_v31, %s2062_s12  ;;  %412 = vrot.lane.b32.xlu0 %v410_v30, %s2058_s27  ;;  %s2077_s12 = smov 80  }
 0x1d1   : > { %673 = vrot.lane.b32.xlu1 %v2401_v0, %s2063_s30  ;;  %645 = vrot.lane.b32.xlu0 %v2413_v3, %s2064_s5 }
 0x1d5   : > { %659 = vrot.lane.b32.xlu1 %v2401_v0, %s2065_s2  ;;  %631 = vrot.lane.b32.xlu0 %v2413_v3, %s2066_s13 }
 0x1d9   : > { %894 = vrot.lane.b32.xlu1 %v2401_v0, %s2067_s15  ;;  %866 = vrot.lane.b32.xlu0 %v2413_v3, %s2068_s17 }
 0x1dd   : > { %880 = vrot.lane.b32.xlu1 %v2401_v0, %s2069_s18  ;;  %852 = vrot.lane.b32.xlu0 %v2413_v3, %s2070_s8 }
 0x1e1   : > { %669 = vrot.lane.b32.xlu1 %v2404_v1, %s2065_s2  ;;  %s2078_s2 = smov 112  }
 0x1e5   : > { %641 = vrot.lane.b32.xlu1 %v2408_v2, %s2066_s13  ;;  %s2079_s13 = smov 76  }
 0x1e9   : > { %655 = vrot.lane.b32.xlu1 %v2404_v1, %s2063_s30 }
 0x1ed   : > { %627 = vrot.lane.b32.xlu1 %v2408_v2, %s2064_s5 }
 0x237   : > { %v464_v32 = vpop.permute.xlu1 %463 }
 0x238   : > { %v470_v33 = vsel %vm465_vm1, %v464_v32, 0 }
 0x239   : > { %1532 = vmatpush3.bf16.xpose.msra.mxu0 %v470_v33 }
 0x23a   : > { %1537 = vmatprep.subr.bf16.mxu0 %v2059_v14 }
 0x23b   : > { %v461_v34 = vpop.permute.xlu0 %460 }
 0x23f   : > { %v514_v35 = vpop.permute.xlu1 %513  ;;  %v413_v36 = vpop.permute.xlu0 %412 }
 0x240   : > { %1534 = vmatmul.mubr.msk.bf16.vlgmr.msra.gmra.mrb[0].mxu0 %vm465_vm1, %v461_v34  ;;  %v519_v37 = vsel %vm465_vm1, %v514_v35, 0  ;;  %v415_v41 = vsub.f32 %v405_v38, %v413_v36 }
 0x241   : > { %1538 = vmatpush3.bf16.xpose.msra.mxu0 %v519_v37  ;;  %1539 = vmatprep.mubr.msk.bf16.mxu0 %vm2060_vm0, %v2059_v14 }
 0x242   : > { %1561 = vmatprep.subr.bf16.mxu0 %v2059_v14  ;;  %v416_v46 = vpack.c.bf16 %v415_v41, %v415_v41 }
 0x243   : > { %v674_v39 = vpop.permute.xlu1 %673  ;;  %v646_v40 = vpop.permute.xlu0 %645 }
 0x244   : > { %v676_v42 = vmul.f32 %v674_v39, %v2420_v7  ;;  %v648_v43 = vmul.f32 %v646_v40, %v2422_v8  ;;  %v393_v40 = vlaneseq }
 0x246   : > { %678 = vrot.lane.b32.xlu0 %v676_v42, %s2057_s14  ;;  %v2512_v41 = vshrl.u32 %v393_v40, 7  ;;  %v2514_v42 = vand.u32 127, %v393_v40 }
 0x247   : > { %v660_v44 = vpop.permute.xlu1 %659  ;;  %v632_v45 = vpop.permute.xlu0 %631 }
 0x248   : > { %v634_v47 = vmul.f32 %v632_v45, %v2422_v8  ;;  %v662_v48 = vmul.f32 %v660_v44, %v2420_v7  ;;  %vm399_vm2 = vcmp.gt.s32.totalorder %v2514_v42, %v2512_v41 }
 0x24a   : > { %650 = vrot.lane.b32.xlu0 %v648_v43, %s2057_s14  ;;  %636 = vrot.lane.b32.xlu1 %v634_v47, %s2058_s27 }
 0x24b   : > { %v895_v49 = vpop.permute.xlu1 %894  ;;  %v867_v53 = vpop.permute.xlu0 %866 }
 0x24c   : > { %1540 = vmatmul.mubr.msk.bf16.vlgmr.msra.gmra.mrb[0].mxu0 %vm465_vm1, %v416_v46  ;;  %v897_v51 = vmul.f32 %v895_v49, %v2420_v7  ;;  %v869_v54 = vmul.f32 %v867_v53, %v2422_v8 }
 0x24d   : > { %1563 = vmatprep.mubr.msk.bf16.mxu0 %vm2060_vm0, %v2059_v14 }
 0x24e   : > { %664 = vrot.lane.b32.xlu0 %v662_v48, %s2058_s27  ;;  %862 = vrot.lane.b32.xlu1 %v2408_v2, %s2070_s8  ;;  %s2081_s8 = smov 28  }
 0x24f   : > { %v881_v50 = vpop.permute.xlu1 %880  ;;  %v853_v55 = vpop.permute.xlu0 %852 }
 0x250   : > { %v883_v52 = vmul.f32 %v881_v50, %v2420_v7  ;;  %v855_v56 = vmul.f32 %v853_v55, %v2422_v8 }
 0x252   : > { %890 = vrot.lane.b32.xlu0 %v2404_v1, %s2069_s18  ;;  %876 = vrot.lane.b32.xlu1 %v2404_v1, %s2067_s15  ;;  %s2080_s18 = smov 56  }
 0x253   : > { %v670_v58 = vpop.permute.xlu1 %669 }
 0x254   : > { %v672_v61 = vmul.f32 %v670_v58, %v2420_v7 }
 0x256   : > { %899 = vrot.lane.b32.xlu0 %v897_v51, %s2057_s14  ;;  %885 = vrot.lane.b32.xlu1 %v883_v52, %s2058_s27 }
 0x257   : > { %v642_v59 = vpop.permute.xlu1 %641 }
 0x258   : > { %v644_v6 = vmul.f32 %v642_v59, %v2422_v8 }
 0x25a   : > { %871 = vrot.lane.b32.xlu0 %v869_v54, %s2057_s14  ;;  %848 = vrot.lane.b32.xlu1 %v2408_v2, %s2068_s17 }
 0x25b   : > { %v656_v60 = vpop.permute.xlu1 %655 }
 0x25c   : > { %v658_v12 = vmul.f32 %v656_v60, %v2420_v7 }
 0x25e   : > { %857 = vrot.lane.b32.xlu1 %v855_v56, %s2058_s27 }
 0x25f   : > { %v628_v62 = vpop.permute.xlu1 %627 }
 0x260   : > { %v630_v13 = vmul.f32 %v628_v62, %v2422_v8 }
 0x262   : > { %577 = vrot.lane.b32.xlu1 %v2501_v57, %s2071_s28  ;;  %s2082_s28 = smov 24  }
 0x2b8   : > { %v679_v63 = vpop.permute.xlu0 %678 }
 0x2b9   : > { %v681_v4 = vadd.f32 %v679_v63, %v672_v61 }
 0x2bb   : > { %v682_v9 = vpack.c.bf16 %v681_v4, %v681_v4 }
 0x2bc   : > { %v651_v10 = vpop.permute.xlu0 %650  ;;  %v637_v11 = vpop.permute.xlu1 %636 }
 0x2bd   : > { %687 = vrot.lane.b32.xlu1 %v682_v9, %s2072_s9  ;;  %v653_v5 = vadd.f32 %v651_v10, %v644_v6  ;;  %v639_v19 = vsub.f32 %v630_v13, %v637_v11  ;;  %s2083_s9 = smov 60  }
 0x2bf   : > { %v654_v15 = vpack.c.bf16 %v653_v5, %v653_v5  ;;  %v640_v24 = vpack.c.bf16 %v639_v19, %v639_v19 }
 0x2c0   : > { %v665_v16 = vpop.permute.xlu0 %664  ;;  %v863_v17 = vpop.permute.xlu1 %862 }
 0x2c1   : > { %v667_v18 = vsub.f32 %v658_v12, %v665_v16  ;;  %684 = vrot.lane.b32.xlu1 %v654_v15, %s2073_s11  ;;  %v865_v28 = vmul.f32 %v863_v17, %v2422_v8  ;;  %s2087_s11 = smov 104  }
 0x2c3   : > { %v668_v20 = vpack.c.bf16 %v667_v18, %v667_v18 }
 0x2c4   : > { %v891_v21 = vpop.permute.xlu0 %890  ;;  %v877_v22 = vpop.permute.xlu1 %876 }
 0x2c5   : > { %v893_v23 = vmul.f32 %v891_v21, %v2420_v7  ;;  %739 = vrot.lane.b32.xlu1 %v668_v20, %s2074_s19  ;;  %v879_v29 = vmul.f32 %v877_v22, %v2420_v7 }
 0x2c8   : > { %v900_v25 = vpop.permute.xlu0 %899  ;;  %v886_v26 = vpop.permute.xlu1 %885 }
 0x2c9   : > { %v902_v27 = vadd.f32 %v900_v25, %v893_v23  ;;  %736 = vrot.lane.b32.xlu1 %v640_v24, %s2075_s16  ;;  %v888_v33 = vsub.f32 %v879_v29, %v886_v26 }
 0x2cb   : > { %v889_v37 = vpack.c.bf16 %v888_v33, %v888_v33  ;;  %v903_v49 = vpack.c.bf16 %v902_v27, %v902_v27 }
 0x2cc   : > { %v872_v30 = vpop.permute.xlu0 %871  ;;  %v849_v31 = vpop.permute.xlu1 %848 }
 0x2cd   : > { %v874_v32 = vadd.f32 %v872_v30, %v865_v28  ;;  %v851_v34 = vmul.f32 %v849_v31, %v2422_v8 }
 0x2cf   : > { %v875_v35 = vpack.c.bf16 %v874_v32, %v874_v32 }
 0x2d0   : > { %v858_v36 = vpop.permute.xlu1 %857 }
 0x2d1   : > { %905 = vrot.lane.b32.xlu1 %v875_v35, %s2076_s10  ;;  %v860_v38 = vsub.f32 %v851_v34, %v858_v36 }
 0x2d3   : > { %v861_v39 = vpack.c.bf16 %v860_v38, %v860_v38 }
 0x2d4   : > { %v578_v50 = vpop.permute.xlu1 %577 }
 0x2d5   : > { %960 = vrot.lane.b32.xlu1 %v889_v37, %s2077_s12  ;;  %v584_v51 = vsel %vm582_vm4, %v578_v50, 0  ;;  %s1311_s12 = scalar_lea.sflag [#allocation4], %s2372_s3 }
 0x2d6   : > { %1544 = vmatpush3.bf16.msra.mxu1 %v584_v51 }
 0x2d7   : > { %1549 = vmatprep.subr.bf16.mxu1 %v2059_v14 }
 0x2d9   : > { %957 = vrot.lane.b32.xlu1 %v861_v39, %s2078_s2 }
 0x2dd   : > { %1115 = vrot.lane.b32.xlu1 %v2401_v0, %s2080_s18 }
 0x2e1   : > { %1087 = vrot.lane.b32.xlu1 %v2413_v3, %s2082_s28 }
 0x2e5   : > { %1101 = vrot.lane.b32.xlu1 %v2401_v0, %s2083_s9 }
 0x2e9   : > { %1111 = vrot.lane.b32.xlu1 %v2404_v1, %s2083_s9 }
 0x2ed   : > { %1083 = vrot.lane.b32.xlu1 %v2408_v2, %s2081_s8 }
 0x2f1   : > { %1097 = vrot.lane.b32.xlu1 %v2404_v1, %s2080_s18 }
 0x2f5   : > { %1069 = vrot.lane.b32.xlu1 %v2408_v2, %s2082_s28 }
 0x31f   : > { %v555_v43 = vpop.f32.mrb[0].mxu0 }
 0x320   : > { %v561_v44 = vsel %vm399_vm2, -3.4028235e+38, %v555_v43  ;;  %v1541_v45 = vpop.f32.mrb[1].mxu0 }
 0x321   : > { %v558_v46 = vpop.f32.mrb[2].mxu0  ;;  %v563_v47 = vsel %vm562_vm3, %v561_v44, -inf }
 0x322   : > { %564 = vmax.xlane.f32.xlu0 %v563_v47  ;;  %v1542_v48 = vpop.f32.mrb[3].mxu0 }
 0x32f   : > { %v688_v55 = vpop.permute.xlu1 %687 }
 0x330   : > { %v693_v0 = vsel %vm465_vm1, %v688_v55, 0 }
 0x338   : > { %908 = vrot.lane.b32.xlu0 %v903_v49, %s2079_s13 }
 0x33c   : > { %1073 = vrot.lane.b32.xlu0 %v2413_v3, %s2081_s8  ;;  %v685_v3 = vpop.permute.xlu1 %684 }
 0x340   : > { %v740_v1 = vpop.permute.xlu1 %739 }
 0x341   : > { %v745_v2 = vsel %vm465_vm1, %v740_v1, 0 }
 0x344   : > { %v737_v59 = vpop.permute.xlu1 %736 }
 0x348   : > { %v906_v60 = vpop.permute.xlu1 %905 }
 0x34c   : > { %v961_v63 = vpop.permute.xlu1 %960 }
 0x34d   : > { %v966_v6 = vsel %vm465_vm1, %v961_v63, 0 }
 0x350   : > { %v958_v4 = vpop.permute.xlu1 %957 }
 0x354   : > { %v1116_v9 = vpop.permute.xlu1 %1115 }
 0x355   : > { %v1118_v10 = vmul.f32 %v1116_v9, %v2420_v7 }
 0x357   : > { %1120 = vrot.lane.b32.xlu0 %v1118_v10, %s2057_s14 }
 0x358   : > { %v1088_v11 = vpop.permute.xlu1 %1087 }
 0x359   : > { %v1090_v5 = vmul.f32 %v1088_v11, %v2422_v8 }
 0x35b   : > { %1092 = vrot.lane.b32.xlu0 %v1090_v5, %s2057_s14  ;;  %s2084_s14 = smov 68  }
 0x35c   : > { %v1102_v12 = vpop.permute.xlu1 %1101 }
 0x35d   : > { %v1104_v15 = vmul.f32 %v1102_v12, %v2420_v7 }
 0x35f   : > { %1106 = vrot.lane.b32.xlu0 %v1104_v15, %s2058_s27 }
 0x360   : > { %v1112_v27 = vpop.permute.xlu1 %1111 }
 0x361   : > { %v1114_v31 = vmul.f32 %v1112_v27, %v2420_v7 }
 0x364   : > { %v1084_v29 = vpop.permute.xlu1 %1083 }
 0x365   : > { %v1086_v46 = vmul.f32 %v1084_v29, %v2422_v8 }
 0x368   : > { %v1098_v32 = vpop.permute.xlu1 %1097 }
 0x369   : > { %v1100_v34 = vmul.f32 %v1098_v32, %v2420_v7 }
 0x36c   : > { %v1070_v47 = vpop.permute.xlu1 %1069 }
 0x36d   : > { %v1072_v49 = vmul.f32 %v1070_v47, %v2422_v8 }
 0x3af   : > { %v565_v52 = vpop.xlane.xlu0 %564 }
 0x3b0   : > { %v566_v53 = vsub.f32 %v561_v44, %v565_v52 }
 0x3b2   : > { %v567_v54 = vmul.f32 1.442695, %v566_v53 }
 0x3b3   : > { %v909_v61 = vpop.permute.xlu0 %908 }
 0x3b4   : > { %1761 = vpow2.f32 %v567_v54  ;;  %v914_v62 = vsel %vm465_vm1, %v909_v61, 0 }
 0x3b7   : > { %v1074_v13 = vpop.permute.xlu0 %1073 }
 0x3b8   : > { %v1076_v16 = vmul.f32 %v1074_v13, %v2422_v8 }
 0x3ba   : > { %1078 = vrot.lane.b32.xlu0 %v1076_v16, %s2058_s27  ;;  %s2085_s27 = smov 72  }
 0x3be   : > { %v2536_v56 = vpop.eup %1761 }
 0x3bf   : > { %v573_v58 = vpack.c.bf16 %v2536_v56, %v2536_v56  ;;  %v569_v15 = vsel %vm562_vm3, %v2536_v56, 0.0 }
 0x3c1   : > { %1546 = vmatmul.mubr.msk.bf16.vlgmr.msra.gmra.mrb[0].mxu1 %vm562_vm3, %v573_v58 }
 0x3c2   : > { %1550 = vmatpush3.bf16.xpose.msra.mxu1 %v693_v0  ;;  %1551 = vmatprep.mubr.msk.bf16.mxu1 %vm2060_vm0, %v2059_v14 }
 0x3c3   : > { %1555 = vmatprep.subr.bf16.mxu1 %v2059_v14 }
 0x3c9   : > { %1552 = vmatmul.mubr.msk.bf16.vlgmr.msra.gmra.mrb[4].mxu1 %vm465_vm1, %v685_v3  ;;  %v1121_v28 = vpop.permute.xlu0 %1120 }
 0x3ca   : > { %1556 = vmatpush3.bf16.xpose.msra.mxu1 %v745_v2  ;;  %1557 = vmatprep.mubr.msk.bf16.mxu1 %vm2060_vm0, %v2059_v14  ;;  %v1123_v33 = vadd.f32 %v1121_v28, %v1114_v31 }
 0x3cb   : > { %1567 = vmatprep.subr.bf16.mxu1 %v2059_v14 }
 0x3cc   : > { %v1124_v37 = vpack.c.bf16 %v1123_v33, %v1123_v33 }
 0x3cd   : > { %v1093_v30 = vpop.permute.xlu0 %1092 }
 0x3ce   : > { %v1095_v48 = vadd.f32 %v1093_v30, %v1086_v46 }
 0x3d0   : > { %v1096_v51 = vpack.c.bf16 %v1095_v48, %v1095_v48 }
 0x3d1   : > { %v1107_v35 = vpop.permute.xlu0 %1106 }
 0x3d2   : > { %v1109_v38 = vsub.f32 %v1100_v34, %v1107_v35 }
 0x3d4   : > { %v1110_v7 = vpack.c.bf16 %v1109_v38, %v1109_v38 }
 0x3d5   : > { %1558 = vmatmul.mubr.msk.bf16.vlgmr.msra.gmra.mrb[4].mxu1 %vm465_vm1, %v737_v59 }
 0x3d6   : > { %1568 = vmatpush3.bf16.xpose.msra.mxu1 %v914_v62  ;;  %1569 = vmatprep.mubr.msk.bf16.mxu1 %vm2060_vm0, %v2059_v14 }
 0x3d7   : > { %1573 = vmatprep.subr.bf16.mxu1 %v2059_v14 }
 0x3dd   : > { %1570 = vmatmul.mubr.msk.bf16.vlgmr.msra.gmra.mrb[8].mxu1 %vm465_vm1, %v906_v60 }
 0x3de   : > { %1574 = vmatpush3.bf16.xpose.msra.mxu1 %v966_v6  ;;  %1575 = vmatprep.mubr.msk.bf16.mxu1 %vm2060_vm0, %v2059_v14 }
 0x3df   : > { %1597 = vmatprep.subr.bf16.mxu1 %v2059_v14 }
 0x3e9   : > { %1576 = vmatmul.mubr.msk.bf16.vlgmr.msra.gmra.mrb[8].mxu1 %vm465_vm1, %v958_v4 }
 0x3ea   : > { %1599 = vmatprep.mubr.msk.bf16.mxu1 %vm2060_vm0, %v2059_v14 }
 0x42c   : > { %v1079_v50 = vpop.permute.xlu0 %1078 }
 0x42d   : > { %v1081_v52 = vsub.f32 %v1072_v49, %v1079_v50 }
 0x42f   : > { %v1082_v53 = vpack.c.bf16 %v1081_v52, %v1081_v52 }
 0x494   : > { %v2571_v17 = vpop.f32.mrb[0].mxu1 }
 0x495   : > { %v1547_v18 = vpop.f32.mrb[1].mxu1 }
 0x496   : > { %v623_v19 = vpop.f32.mrb[2].mxu1 }
 0x497   : > { %v1548_v20 = vpop.f32.mrb[3].mxu1 }
 0x4a8   : > { %v781_v21 = vpop.f32.mrb[4].mxu1 }
 0x4a9   : > { %v787_v22 = vsel %vm399_vm2, -3.4028235e+38, %v781_v21  ;;  %v1559_v23 = vpop.f32.mrb[5].mxu1 }
 0x4aa   : > { %v784_v24 = vpop.f32.mrb[6].mxu1  ;;  %v788_v25 = vsel %vm562_vm3, %v787_v22, -inf }
 0x4ab   : > { %789 = vmax.xlane.f32.xlu1 %v788_v25  ;;  %v1560_v26 = vpop.f32.mrb[7].mxu1 }
 0x4bc   : > { %v1002_v36 = vpop.f32.mrb[8].mxu1  ;;  %1020 = vrot.lane.b32.xlu1 %v2501_v57, %s2067_s15  ;;  %s2086_s15 = smov 100  }
 0x4bd   : > { %v1008_v39 = vsel %vm399_vm2, -3.4028235e+38, %v1002_v36  ;;  %v1577_v40 = vpop.f32.mrb[9].mxu1 }
 0x4be   : > { %v1005_v43 = vpop.f32.mrb[10].mxu1  ;;  %v1009_v44 = vsel %vm562_vm3, %v1008_v39, -inf }
 0x4bf   : > { %v1578_v45 = vpop.f32.mrb[11].mxu1  ;;  %1010 = vmax.xlane.f32.xlu0 %v1009_v44 }
 0x4c0   : > { %1129 = vrot.lane.b32.xlu1 %v1124_v37, %s2084_s14 }
 0x4c4   : > { %1181 = vrot.lane.b32.xlu1 %v1110_v7, %s2085_s27 }
 0x4d5   : > { %799 = vrot.lane.b32.xlu0 %v2501_v57, %s2080_s18 }
 0x4d9   : > { %1126 = vrot.lane.b32.xlu0 %v1096_v51, %s2086_s15 }
 0x4dd   : > { %1178 = vrot.lane.b32.xlu0 %v1082_v53, %s2087_s11 }
 0x4e1   : > { %1241 = vrot.lane.b32.xlu0 %v2501_v57, %s2063_s30  ;;  %s1504_s30 = sshll.u32 %s2039_s24, 6 }
 0x4e2   : > { %s2629_s10 = scalar_lea.hbm %s2684_s6, %s1504_s30 }
 0x538   : > { %v790_v54 = vpop.xlane.xlu1 %789 }
 0x539   : > { %v791_v55 = vsub.f32 %v787_v22, %v790_v54 }
 0x53b   : > { %v792_v3 = vmul.f32 1.442695, %v791_v55 }
 0x53c   : > { %v1021_v60 = vpop.permute.xlu1 %1020 }
 0x53d   : > { %1763 = vpow2.f32 %v792_v3  ;;  %v1026_v62 = vsel %vm582_vm4, %v1021_v60, 0 }
 0x540   : > { %v1130_v6 = vpop.permute.xlu1 %1129 }
 0x541   : > { %v1135_v10 = vsel %vm465_vm1, %v1130_v6, 0 }
 0x544   : > { %v1182_v16 = vpop.permute.xlu1 %1181 }
 0x545   : > { %v1187_v18 = vsel %vm465_vm1, %v1182_v16, 0 }
 0x547   : > { %v1764_v0 = vpop.eup %1763 }
 0x548   : > { %v794_v8 = vsel %vm562_vm3, %v1764_v0, 0.0  ;;  %v798_v57 = vpack.c.bf16 %v1764_v0, %v1764_v0 }
 0x549   : > { %795 = vadd.xlane.f32.xlu0 %v794_v8 }
 0x54c   : > { %v1011_v58 = vpop.xlane.xlu0 %1010 }
 0x54d   : > { %v1012_v1 = vsub.f32 %v1008_v39, %v1011_v58 }
 0x54f   : > { %v1013_v2 = vmul.f32 1.442695, %v1012_v1 }
 0x550   : > { %v800_v59 = vpop.permute.xlu0 %799 }
 0x551   : > { %1765 = vpow2.f32 %v1013_v2  ;;  %v805_v61 = vsel %vm582_vm4, %v800_v59, 0 }
 0x552   : > { %1562 = vmatpush3.bf16.msra.mxu0 %v805_v61 }
 0x553   : > { %1579 = vmatprep.subr.bf16.mxu0 %v2059_v14 }
 0x554   : > { %v1127_v63 = vpop.permute.xlu0 %1126 }
 0x555   : > { %1564 = vmatmul.mubr.msk.bf16.vlgmr.msra.gmra.mrb[4].mxu0 %vm562_vm3, %v798_v57 }
 0x556   : > { %1580 = vmatpush3.bf16.msra.mxu0 %v1026_v62  ;;  %1581 = vmatprep.mubr.msk.bf16.mxu0 %vm2060_vm0, %v2059_v14 }
 0x557   : > { %1585 = vmatprep.subr.bf16.mxu0 %v2059_v14 }
 0x558   : > { %v1179_v4 = vpop.permute.xlu0 %1178 }
 0x55b   : > { %v1766_v9 = vpop.eup %1765 }
 0x55c   : > { %v1015_v11 = vsel %vm562_vm3, %v1766_v9, 0.0  ;;  %v1019_v5 = vpack.c.bf16 %v1766_v9, %v1766_v9  ;;  %v1242_v12 = vpop.permute.xlu0 %1241 }
 0x55d   : > { %1016 = vadd.xlane.f32.xlu0 %v1015_v11  ;;  %v1247_v13 = vsel %vm582_vm4, %v1242_v12, 0 }
 0x55e   : > { %1582 = vmatmul.mubr.msk.bf16.vlgmr.msra.gmra.mrb[8].mxu0 %vm562_vm3, %v1019_v5  ;;  %1598 = vmatpush3.bf16.msra.mxu1 %v1247_v13 }
 0x55f   : > { %1586 = vmatpush3.bf16.xpose.msra.mxu0 %v1135_v10  ;;  %1587 = vmatprep.mubr.msk.bf16.mxu0 %vm2060_vm0, %v2059_v14 }
 0x560   : > { %1591 = vmatprep.subr.bf16.mxu0 %v2059_v14 }
 0x561   : > { %570 = vadd.xlane.f32.xlu0 %v569_v15 }
 0x566   : > { %1588 = vmatmul.mubr.msk.bf16.vlgmr.msra.gmra.mrb[12].mxu0 %vm465_vm1, %v1127_v63 }
 0x567   : > { %1592 = vmatpush3.bf16.xpose.msra.mxu0 %v1187_v18  ;;  %1593 = vmatprep.mubr.msk.bf16.mxu0 %vm2060_vm0, %v2059_v14 }
 0x572   : > { %1594 = vmatmul.mubr.msk.bf16.vlgmr.msra.gmra.mrb[12].mxu0 %vm465_vm1, %v1179_v4 }
 0x5d6   : > { %v796_v19 = vpop.xlane.xlu0 %795 }
 0x5d7   : > { %1767 = vrcp.f32 %v796_v19 }
 0x5e1   : > { %v1768_v21 = vpop.eup %1767 }
 0x5ea   : > { %v1017_v20 = vpop.xlane.xlu0 %1016 }
 0x5eb   : > { %1769 = vrcp.f32 %v1017_v20 }
 0x5ee   : > { %v571_v49 = vpop.xlane.xlu0 %570 }
 0x5f5   : > { %v1770_v26 = vpop.eup %1769 }
 0x628   : > { %v841_v56 = vpop.f32.mrb[4].mxu0 }
 0x629   : > { %v847_v22 = vmul.f32 %v1768_v21, %v841_v56  ;;  %v1565_v23 = vpop.f32.mrb[5].mxu0 }
 0x62a   : > { %v844_v24 = vpop.f32.mrb[6].mxu0 }
 0x62b   : > { %v1566_v25 = vpop.f32.mrb[7].mxu0 }
 0x631   : > { %v1062_v27 = vpop.f32.mrb[8].mxu0 }
 0x632   : > { %v1068_v28 = vmul.f32 %v1770_v26, %v1062_v27  ;;  %v1583_v29 = vpop.f32.mrb[9].mxu0 }
 0x633   : > { %v1065_v30 = vpop.f32.mrb[10].mxu0 }
 0x634   : > { %1295 = vrot.lane.b32.xlu0 %v1068_v28, %s2068_s17  ;;  %v1584_v14 = vpop.f32.mrb[11].mxu0 }
 0x645   : > { %v1223_v31 = vpop.f32.mrb[12].mxu0 }
 0x646   : > { %v1229_v32 = vsel %vm399_vm2, -3.4028235e+38, %v1223_v31  ;;  %v1595_v33 = vpop.f32.mrb[13].mxu0 }
 0x647   : > { %v1226_v34 = vpop.f32.mrb[14].mxu0  ;;  %v1230_v35 = vsel %vm562_vm3, %v1229_v32, -inf }
 0x648   : > { %1231 = vmax.xlane.f32.xlu1 %v1230_v35  ;;  %v1596_v36 = vpop.f32.mrb[15].mxu0 }
 0x6a6   : > { %v1296_v54 = vpop.permute.xlu0 %1295 }
 0x6d5   : > { %v1232_v37 = vpop.xlane.xlu1 %1231 }
 0x6d6   : > { %v1233_v38 = vsub.f32 %v1229_v32, %v1232_v37 }
 0x6d8   : > { %v1234_v39 = vmul.f32 1.442695, %v1233_v38 }
 0x6da   : > { %1771 = vpow2.f32 %v1234_v39 }
 0x6e4   : > { %v1772_v40 = vpop.eup %1771 }
 0x6e5   : > { %v1236_v43 = vsel %vm562_vm3, %v1772_v40, 0.0  ;;  %v1240_v44 = vpack.c.bf16 %v1772_v40, %v1772_v40 }
 0x6e6   : > { %1237 = vadd.xlane.f32.xlu1 %v1236_v43 }
 0x6e7   : > { %1600 = vmatmul.mubr.msk.bf16.vlgmr.msra.gmra.mrb[12].mxu1 %vm562_vm3, %v1240_v44 }
 0x6f7   : > { %1291 = vrot.lane.b32.xlu1 %v847_v22, %s2064_s5  ;;  %s384_s5 = scalar_lea.vmem [#allocation13], %s2375_s4  ;;  %s2088_s4 = smov [#allocation13]  }
 0x6f8   : > { %s1325_s17 = sshll.u32 %s384_s5, 4  ;;  %s1953_s2 = sshll.u32 %s2088_s4, 4  ;;  %s2631_s17 = int_to_ptr.vmem [resolvable:$true] %s1325_s17  ;;  %s1954_s2 = int_to_ptr.vmem [resolvable:$false] %s1953_s2 }
 0x6f9   : > { %s1949_s24 = scalar_lea.vmem %s2631_s17, 64  ;;  %s1955_s13 = scalar_lea.vmem %s1954_s2, 128 }
 0x6fa   : > { %p1950_p6 = scmp.ne.s32.totalorder %s2631_s17, %s1949_s24  ;;  %p1956_p10 = scmp.lt.s32.totalorder %s2631_s17, %s1954_s2 }
 0x6fb   : > { %p1957_p13 = scmp.lt.s32.totalorder %s1955_s13, %s1949_s24 }
 0x6fc   : > { %p1951_p12 = pnand %p1950_p6, %p2716_p3 }
 0x6fd   : > { %p1958_p4 = por %p1957_p13, %p1956_p10 }
 0x6fe   : > { %p1952_p0 = pneg %p1951_p12 }
 0x700   : > { %p1959_p11 = pnand %p1958_p4, %p1952_p0 }
 0x773   : > { %v1238_v41 = vpop.xlane.xlu1 %1237 }
 0x774   : > { %1773 = vrcp.f32 %v1238_v41 }
 0x775   : > { %1775 = vrcp.f32 %v571_v49 }
 0x777   : > { %v1292_v51 = vpop.permute.xlu1 %1291 }
 0x77e   : > { %v1774_v42 = vpop.eup %1773 }
 0x77f   : > { %v1776_v50 = vpop.eup %1775 }
 0x780   : > { %v626_v52 = vmul.f32 %v1776_v50, %v2571_v17 }
 0x782   : > { %v1302_v53 = vsel %vm562_vm3, %v626_v52, %v1292_v51 }
 0x783   : > { %v1304_v55 = vsel %vm1303_vm5, %v1302_v53, %v1296_v54 }
 0x7ba   : > { %v1283_v45 = vpop.f32.mrb[12].mxu1 }
 0x7bb   : > { %v1289_v7 = vmul.f32 %v1774_v42, %v1283_v45  ;;  %v1601_v46 = vpop.f32.mrb[13].mxu1 }
 0x7bc   : > { %v1286_v47 = vpop.f32.mrb[14].mxu1 }
 0x7bd   : > { %v1602_v48 = vpop.f32.mrb[15].mxu1  ;;  %1299 = vrot.lane.b32.xlu1 %v1289_v7, %s2082_s28 }
 0x82f   : > { %v1300_v3 = vpop.permute.xlu1 %1299 }
 0x830   : > { %v1306_v0 = vsel %vm1305_vm6, %v1304_v55, %v1300_v3 }
 0x831   : > { %v1307_v8 = vpack.c.bf16 %v1306_v0, %v1306_v0 }
 0x833   : > { %1309 = vst.msk [vmem:[%s384_s5] sm:$0xf] %vm1308_vm7, %v1307_v8 }
 0x834   : > { %1962 = shalt.err (!%p1959_p11)
}
 0x835   : > { %s1963_s3 = scalar_lea.hbm %s2629_s10, 64  ;;  %s1967_s28 = scalar_lea.hbm %s2684_s6, 128 }
 0x836   : > { %p1964_p5 = scmp.ne.s32.totalorder %s2629_s10, %s1963_s3  ;;  %p1968_p8 = scmp.lt.u32.totalorder %s2629_s10, %s2684_s6 }
 0x837   : > { %p1969_p9 = scmp.lt.u32.totalorder %s1967_s28, %s1963_s3  ;;  %p1971_p6 = scmp.lt.u32.totalorder %s1963_s3, %s2629_s10 }
 0x838   : > { %p1965_p7 = pnand %p1964_p5, %p2716_p3 }
 0x839   : > { %p1970_p1 = por %p1969_p9, %p1968_p8 }
 0x83a   : > { %p1966_p2 = pneg %p1965_p7 }
 0x83b   : > { %p1972_p12 = por %p1971_p6, %p1970_p1 }
 0x83d   : > { %p1973_p0 = pnand %p1972_p12, %p1966_p2 }
 0x83f   : > { %1976 = shalt.err (!%p1973_p0)
}
 0x840   : > { %1639 = dma.vmem_to_hbm [thread:$0]  (%p2716_p3), %s2631_s17, 64, %s2629_s10, %s1311_s12  }
 0x841 PF: > { %s1337_s27 = sand.u32 1, %s2027_s21   ;;  %p2717_p10 = scmp.ne.s32.totalorder %s2706_s7, 0 }
 0x842   : > { %p2718_p13 = scmp.ge.s32.totalorder %s2047_s26, 2  ;;  %s1338_s15 = scalar_lea.sflag [#allocation4], %s1337_s27 }
 0x844   : > { %p1662_p4 = pnand %p2718_p13, %p2717_p10 }
 0x846   : > { %2022 = dma.done.wait (!%p1662_p4), %s1338_s15, 64  }
 0x847   : > { %2024 = vsyncadd (!%p1662_p4), %s1338_s15, 4294967232  ;;  %s27_s26 = sadd.s32 1, %s2047_s26   ;;  %s2719_s20 = sld [smem:[#allocation20_spill]] }
 0x848   : > { %p24_p11 = scmp.ge.s32.totalorder %s27_s26, 4   ;;  %s2720_s21 = smov %s2031_s22 }
 0x849   : > { %s2721_s22 = smov %s2035_s23  ;;  %s2722_s23 = smov %s2293_s29 }
 0x84a   : > { %s2723_s24 = smov %s2043_s25  ;;  %26 = sbr.rel (!%p24_p11) target bundleno = 15 (0xf), region = 120 }
 0x84d   : > { %s2724_s25 = smov %s2719_s20 }
 0x851   :  { %1343 = vsyncpa [#allocation3], 1 }
 0x852   :  { %1345 = vsyncpa [#allocation3 + $0x1], 1 }
 0x853   :  { %1346 = vsyncpa [#allocation6], 1 }
 0x854   :  { %1348 = vsyncpa [#allocation6 + $0x1], 1 }
 0x855   :  { %1349 = vsyncpa [#allocation9], 1 }
 0x856   :  { %1350 = vsyncpa [#allocation12], 1 }
 0x857   :  { %1351 = vsyncpa [#allocation4], 1 }
 0x858   :  { %1353 = vsyncpa [#allocation4 + $0x1], 1 }

// kernel: gpt_forward.15
= control target key start
LH: loop header
LB: loop body
LE: loop exit
PB: predicated region body
PF: predicated region fallthrough
CT: control target
= control target key end

     0   :  { %9 = vsyncpa [#allocation3], 0  ;;  %s483_s0 = inlined_call_operand.hbm [shape: bf16[16,64], index: 0, kind: input, shape index: {}]   ;;  %s484_s1 = inlined_call_operand.hbm [shape: bf16[64,32], index: 1, kind: input, shape index: {}]   ;;  %s485_s2 = inlined_call_operand.hbm [shape: f32[1,32], index: 2, kind: input, shape index: {}]   ;;  %s486_s3 = inlined_call_operand.hbm [shape: bf16[16,32], index: 3, kind: input, shape index: {}]   ;;  %s487_s4 = inlined_call_operand.hbm [shape: bf16[16,32], index: 4, kind: output, shape index: {}]  }
   0x1   :  { %10 = vsyncpa [#allocation6], 0 }
   0x2   :  { %11 = vsyncpa [#allocation9], 0 }
   0x3   :  { %12 = vsyncpa [#allocation4], 0  ;;  %s363_s15 = smov [#allocation5]   ;;  %s364_s17 = smov [#allocation2]  }
   0x4   :  { %s30_s16 = sshll.u32 %s363_s15, 4  ;;  %s18_s18 = sshll.u32 %s364_s17, 4  ;;  %s31_s16 = int_to_ptr.vmem [resolvable:$true] %s30_s16  ;;  %s397_s18 = int_to_ptr.vmem [resolvable:$true] %s18_s18 }
   0x5   :  { %s245_s21 = scalar_lea.hbm %s484_s1, 512 }
   0x6   :  { %p246_p0 = scmp.ne.s32.totalorder %s484_s1, %s245_s21  ;;  %p249_p1 = scmp.lt.u32.totalorder %s245_s21, %s484_s1 }
   0x8   :  { %p251_p2 = pnand %p249_p1, %p246_p0 }
   0xa   :  { %254 = shalt.err (!%p251_p2)
}
   0xb   :  { %s255_s26 = scalar_lea.vmem %s31_s16, 512  ;;  %p260_p4 = scmp.lt.s32.totalorder %s31_s16, %s31_s16 }
   0xc   :  { %p256_p3 = scmp.ne.s32.totalorder %s31_s16, %s255_s26  ;;  %p261_p5 = scmp.lt.s32.totalorder %s255_s26, %s255_s26 }
   0xe   :  { %p262_p6 = por %p261_p5, %p260_p4 }
  0x10   :  { %p263_p7 = pnand %p262_p6, %p256_p3 }
  0x12   :  { %266 = shalt.err (!%p263_p7)
}
  0x13   :  { %s365_s27 = smov 64   ;;  %s366_s28 = smov 4  }
  0x14   :  { %36 = dma.hbm_to_vmem [thread:$0]  %s484_s1, 512, %s31_s16, [#allocation6], %s365_s27, %s365_s27, %s366_s28  }
  0x15   :  { %s267_s7 = scalar_lea.hbm %s483_s0, 128 }
  0x16   :  { %p268_p8 = scmp.ne.s32.totalorder %s483_s0, %s267_s7  ;;  %p271_p9 = scmp.lt.u32.totalorder %s267_s7, %s483_s0 }
  0x18   :  { %p273_p10 = pnand %p271_p9, %p268_p8 }
  0x1a   :  { %276 = shalt.err (!%p273_p10)
}
  0x1b   :  { %s277_s12 = scalar_lea.vmem %s397_s18, 128  ;;  %p282_p12 = scmp.lt.s32.totalorder %s397_s18, %s397_s18 }
  0x1c   :  { %p278_p11 = scmp.ne.s32.totalorder %s397_s18, %s277_s12  ;;  %p283_p13 = scmp.lt.s32.totalorder %s277_s12, %s277_s12 }
  0x1e   :  { %p284_p0 = por %p283_p13, %p282_p12 }
  0x20   :  { %p285_p1 = pnand %p284_p0, %p278_p11 }
  0x22   :  { %288 = shalt.err (!%p285_p1)
}
  0x23   :  { %24 = dma.hbm_to_vmem [thread:$0]  %s483_s0, 128, %s397_s18, [#allocation3], %s365_s27, %s365_s27, %s366_s28  }
  0x24   :  { %s367_s14 = smov [#allocation7]   ;;  %s368_s16 = smov [#allocation8]  }
  0x25   :  { %s43_s15 = sshll.u32 %s367_s14, 4  ;;  %s52_s17 = sshll.u32 %s368_s16, 4  ;;  %s44_s15 = int_to_ptr.vmem [resolvable:$true] %s43_s15  ;;  %s434_s17 = int_to_ptr.vmem [resolvable:$true] %s52_s17 }
  0x26   :  { %s289_s21 = scalar_lea.hbm %s485_s2, 16 }
  0x27   :  { %p290_p2 = scmp.ne.s32.totalorder %s485_s2, %s289_s21  ;;  %p293_p3 = scmp.lt.u32.totalorder %s289_s21, %s485_s2 }
  0x29   :  { %p295_p4 = pnand %p293_p3, %p290_p2 }
  0x2b   :  { %298 = shalt.err (!%p295_p4)
}
  0x2c   :  { %s299_s0 = scalar_lea.vmem %s44_s15, 16  ;;  %s303_s18 = scalar_lea.vmem %s44_s15, 32 }
  0x2d   :  { %p300_p5 = scmp.ne.s32.totalorder %s44_s15, %s299_s0  ;;  %p304_p6 = scmp.lt.s32.totalorder %s44_s15, %s44_s15 }
  0x2e   :  { %p305_p7 = scmp.lt.s32.totalorder %s303_s18, %s299_s0 }
  0x30   :  { %p306_p8 = por %p305_p7, %p304_p6 }
  0x32   :  { %p307_p9 = pnand %p306_p8, %p300_p5 }
  0x34   :  { %310 = shalt.err (!%p307_p9)
}
  0x35   :  { %46 = dma.hbm_to_vmem [thread:$0]  %s485_s2, 16, %s44_s15, [#allocation6]  }
  0x36   :  { %s311_s6 = scalar_lea.hbm %s486_s3, 128 }
  0x37   :  { %p312_p10 = scmp.ne.s32.totalorder %s486_s3, %s311_s6  ;;  %p315_p11 = scmp.lt.u32.totalorder %s311_s6, %s486_s3 }
  0x39   :  { %p317_p12 = pnand %p315_p11, %p312_p10 }
  0x3b   :  { %320 = shalt.err (!%p317_p12)
}
  0x3c   :  { %s321_s11 = scalar_lea.vmem %s434_s17, 128  ;;  %p326_p0 = scmp.lt.s32.totalorder %s434_s17, %s434_s17 }
  0x3d   :  { %p322_p13 = scmp.ne.s32.totalorder %s434_s17, %s321_s11  ;;  %p327_p1 = scmp.lt.s32.totalorder %s321_s11, %s321_s11 }
  0x3f   :  { %p328_p2 = por %p327_p1, %p326_p0 }
  0x41   :  { %p329_p3 = pnand %p328_p2, %p322_p13 }
  0x43   :  { %332 = shalt.err (!%p329_p3)
}
  0x44   :  { %58 = dma.hbm_to_vmem [thread:$0]  %s486_s3, 128, %s434_s17, [#allocation9], %s365_s27, %s365_s27, %s366_s28  }
  0x45   :  { %355 = dma.done.wait [#allocation3], 128  }
  0x46   :  { %356 = vsyncadd [#allocation3], 4294967168 }
  0x47   :  { %357 = dma.done.wait [#allocation6], 528  }
  0x48   :  { %358 = vsyncadd [#allocation6], 4294966768 }
  0x49   :  { %359 = dma.done.wait [#allocation9], 128  }
  0x4a   :  { %360 = vsyncadd [#allocation9], 4294967168  ;;  %v369_v0 = vmov 0.0   ;;  %vm370_vm0 = vmmov 0   ;;  %v240_v1 = vld [vmem:[#allocation5] sm:$0xff]   ;;  %v241_v2 = vld [vmem:[#allocation5 + $0x8] sm:$0xff]  }
  0x4b   :  { %219 = vmatprep.subr.bf16.mxu0 %v369_v0  ;;  %227 = vmatprep.mubr.msk.bf16.mxu0 %vm370_vm0, %v369_v0  ;;  %v242_v3 = vld [vmem:[#allocation5 + $0x10] sm:$0xff]   ;;  %v243_v4 = vld [vmem:[#allocation5 + $0x18] sm:$0xff]   ;;  %vm118_vm1 = vcmask 523264   ;;  %v211_v6 = vld [vmem:[#allocation8] sm:$0xff]   ;;  %vm177_vm2 = vcmask 257024   ;;  %s371_s3 = smov [#allocation10]  }
  0x4c   :  { %220 = vmatpush3.bf16.msra.mxu0 %v240_v1  ;;  %v244_v5 = vld [vmem:[#allocation2] sm:$0xff]   ;;  %v199_v7 = vld [vmem:[#allocation7] ss:$0 sm:$0xff]  ;;  %v212_v8 = vunpack.c.l.bf16 %v211_v6  ;;  %v213_v12 = vunpack.c.h.bf16 %v211_v6  ;;  %s185_s1 = sshll.u32 %s371_s3, 4  ;;  %s186_s1 = int_to_ptr.vmem [resolvable:$true] %s185_s1 }
  0x4d   :  { %221 = vmatprep.subr.bf16.mxu0 %v369_v0  ;;  %s333_s13 = scalar_lea.vmem %s186_s1, 128  ;;  %p338_p5 = scmp.lt.s32.totalorder %s186_s1, %s186_s1 }
  0x4e   :  { %p334_p4 = scmp.ne.s32.totalorder %s186_s1, %s333_s13  ;;  %p339_p6 = scmp.lt.s32.totalorder %s333_s13, %s333_s13 }
  0x50   :  { %222 = vmatpush3.bf16.msra.mxu0 %v241_v2  ;;  %p340_p7 = por %p339_p6, %p338_p5 }
  0x51   :  { %223 = vmatprep.subr.bf16.mxu0 %v369_v0 }
  0x52   :  { %p341_p8 = pnand %p340_p7, %p334_p4 }
  0x54   :  { %224 = vmatpush3.bf16.msra.mxu0 %v242_v3 }
  0x55   :  { %225 = vmatprep.subr.bf16.mxu0 %v369_v0 }
  0x58   :  { %226 = vmatpush3.bf16.msra.mxu0 %v243_v4 }
  0x5b   :  { %228 = vmatmul.mubr.msk.bf16.vlgmr.msra.gmra.mrb[0].mxu0 %vm118_vm1, %v244_v5 }
 0x12e   :  { %v156_v9 = vpop.f32.mrb[0].mxu0 }
 0x12f   :  { %v157_v10 = vadd.f32 %v199_v7, %v156_v9  ;;  %v229_v11 = vpop.f32.mrb[1].mxu0 }
 0x130   :  { %v159_v13 = vpop.f32.mrb[2].mxu0 }
 0x131   :  { %v167_v14 = vadd.f32 %v212_v8, %v157_v10  ;;  %v160_v15 = vadd.f32 %v199_v7, %v159_v13  ;;  %v230_v16 = vpop.f32.mrb[3].mxu0 }
 0x133   :  { %v208_v17 = vpack.c.bf16 %v167_v14, %v167_v14  ;;  %v168_v18 = vadd.f32 %v213_v12, %v160_v15 }
 0x135   :  { %v209_v19 = vpack.c.bf16 %v168_v18, %v168_v18  ;;  %178 = vst.msk [vmem:[#allocation10] sm:$0xf] %vm177_vm2, %v208_v17 }
 0x137   :  { %179 = vst.msk [vmem:[#allocation10 + $0x4] sm:$0xf] %vm177_vm2, %v209_v19 }
 0x138   :  { %344 = shalt.err (!%p341_p8)
}
 0x139   :  { %s345_s16 = scalar_lea.hbm %s487_s4, 128 }
 0x13a   :  { %p346_p9 = scmp.ne.s32.totalorder %s487_s4, %s345_s16  ;;  %p349_p10 = scmp.lt.u32.totalorder %s345_s16, %s487_s4 }
 0x13c   :  { %p351_p11 = pnand %p349_p10, %p346_p9 }
 0x13e   :  { %354 = shalt.err (!%p351_p11)
}
 0x13f   :  { %191 = dma.vmem_to_hbm [thread:$0]  %s186_s1, 128, %s487_s4, [#allocation4], %s365_s27, %s365_s27, %s366_s28  }
 0x140   :  { %361 = dma.done.wait [#allocation4], 128  }
 0x141   :  { %362 = vsyncadd [#allocation4], 4294967168 }
 0x142   :  { %195 = vsyncpa [#allocation3], 1 }
 0x143   :  { %196 = vsyncpa [#allocation6], 1 }
 0x144   :  { %197 = vsyncpa [#allocation9], 1 }
 0x145   :  { %198 = vsyncpa [#allocation4], 1 }

// kernel: gpt_forward.21
= control target key start
LH: loop header
LB: loop body
LE: loop exit
PB: predicated region body
PF: predicated region fallthrough
CT: control target
= control target key end

     0   :  { %9 = vsyncpa [#allocation4], 0  ;;  %s536_s0 = inlined_call_operand.hbm [shape: bf16[16,32], index: 0, kind: input, shape index: {}]   ;;  %s537_s1 = inlined_call_operand.hbm [shape: f32[1,32], index: 1, kind: input, shape index: {}]   ;;  %s538_s2 = inlined_call_operand.hbm [shape: f32[1,32], index: 2, kind: input, shape index: {}]   ;;  %s539_s3 = inlined_call_operand.hbm [shape: bf16[64,32], index: 3, kind: input, shape index: {}]   ;;  %s540_s4 = inlined_call_operand.hbm [shape: bf16[16,64], index: 4, kind: output, shape index: {}]  }
   0x1   :  { %10 = vsyncpa [#allocation7], 0 }
   0x2   :  { %11 = vsyncpa [#allocation10], 0 }
   0x3   :  { %12 = vsyncpa [#allocation5], 0  ;;  %s409_s15 = smov [#allocation6]   ;;  %s410_s17 = smov [#allocation3]  }
   0x4   :  { %s31_s16 = sshll.u32 %s409_s15, 4  ;;  %s18_s18 = sshll.u32 %s410_s17, 4  ;;  %s32_s16 = int_to_ptr.vmem [resolvable:$true] %s31_s16  ;;  %s443_s18 = int_to_ptr.vmem [resolvable:$true] %s18_s18 }
   0x5   :  { %s291_s21 = scalar_lea.hbm %s537_s1, 16 }
   0x6   :  { %p292_p0 = scmp.ne.s32.totalorder %s537_s1, %s291_s21  ;;  %p295_p1 = scmp.lt.u32.totalorder %s291_s21, %s537_s1 }
   0x8   :  { %p297_p2 = pnand %p295_p1, %p292_p0 }
   0xa   :  { %300 = shalt.err (!%p297_p2)
}
   0xb   :  { %s301_s26 = scalar_lea.vmem %s32_s16, 16  ;;  %s305_s27 = scalar_lea.vmem %s32_s16, 32 }
   0xc   :  { %p302_p3 = scmp.ne.s32.totalorder %s32_s16, %s301_s26  ;;  %p306_p4 = scmp.lt.s32.totalorder %s32_s16, %s32_s16 }
   0xd   :  { %p307_p5 = scmp.lt.s32.totalorder %s305_s27, %s301_s26 }
   0xf   :  { %p308_p6 = por %p307_p5, %p306_p4 }
  0x11   :  { %p309_p7 = pnand %p308_p6, %p302_p3 }
  0x13   :  { %312 = shalt.err (!%p309_p7)
}
  0x14   :  { %34 = dma.hbm_to_vmem [thread:$0]  %s537_s1, 16, %s32_s16, [#allocation7]  }
  0x15   :  { %s313_s6 = scalar_lea.hbm %s536_s0, 128 }
  0x16   :  { %p314_p8 = scmp.ne.s32.totalorder %s536_s0, %s313_s6  ;;  %p317_p9 = scmp.lt.u32.totalorder %s313_s6, %s536_s0 }
  0x18   :  { %p319_p10 = pnand %p317_p9, %p314_p8 }
  0x1a   :  { %322 = shalt.err (!%p319_p10)
}
  0x1b   :  { %s323_s11 = scalar_lea.vmem %s443_s18, 128  ;;  %p328_p12 = scmp.lt.s32.totalorder %s443_s18, %s443_s18 }
  0x1c   :  { %p324_p11 = scmp.ne.s32.totalorder %s443_s18, %s323_s11  ;;  %p329_p13 = scmp.lt.s32.totalorder %s323_s11, %s323_s11 }
  0x1e   :  { %p330_p0 = por %p329_p13, %p328_p12 }
  0x20   :  { %p331_p1 = pnand %p330_p0, %p324_p11 }
  0x22   :  { %334 = shalt.err (!%p331_p1)
}
  0x23   :  { %s411_s1 = smov 64   ;;  %s412_s12 = smov 4  }
  0x24   :  { %24 = dma.hbm_to_vmem [thread:$0]  %s536_s0, 128, %s443_s18, [#allocation4], %s411_s1, %s411_s1, %s412_s12  }
  0x25   :  { %s413_s15 = smov [#allocation8]   ;;  %s414_s17 = smov [#allocation9]  }
  0x26   :  { %s41_s16 = sshll.u32 %s413_s15, 4  ;;  %s50_s19 = sshll.u32 %s414_s17, 4  ;;  %s42_s16 = int_to_ptr.vmem [resolvable:$true] %s41_s16  ;;  %s477_s19 = int_to_ptr.vmem [resolvable:$true] %s50_s19 }
  0x27   :  { %s335_s22 = scalar_lea.hbm %s538_s2, 16 }
  0x28   :  { %p336_p2 = scmp.ne.s32.totalorder %s538_s2, %s335_s22  ;;  %p339_p3 = scmp.lt.u32.totalorder %s335_s22, %s538_s2 }
  0x2a   :  { %p341_p4 = pnand %p339_p3, %p336_p2 }
  0x2c   :  { %344 = shalt.err (!%p341_p4)
}
  0x2d   :  { %s345_s0 = scalar_lea.vmem %s42_s16, 16  ;;  %s349_s18 = scalar_lea.vmem %s42_s16, 32 }
  0x2e   :  { %p346_p5 = scmp.ne.s32.totalorder %s42_s16, %s345_s0  ;;  %p350_p6 = scmp.lt.s32.totalorder %s42_s16, %s42_s16 }
  0x2f   :  { %p351_p7 = scmp.lt.s32.totalorder %s349_s18, %s345_s0 }
  0x31   :  { %p352_p8 = por %p351_p7, %p350_p6 }
  0x33   :  { %p353_p9 = pnand %p352_p8, %p346_p5 }
  0x35   :  { %356 = shalt.err (!%p353_p9)
}
  0x36   :  { %44 = dma.hbm_to_vmem [thread:$0]  %s538_s2, 16, %s42_s16, [#allocation7]  }
  0x37   :  { %s357_s5 = scalar_lea.hbm %s539_s3, 512 }
  0x38   :  { %p358_p10 = scmp.ne.s32.totalorder %s539_s3, %s357_s5  ;;  %p361_p11 = scmp.lt.u32.totalorder %s357_s5, %s539_s3 }
  0x3a   :  { %p363_p12 = pnand %p361_p11, %p358_p10 }
  0x3c   :  { %366 = shalt.err (!%p363_p12)
}
  0x3d   :  { %s367_s10 = scalar_lea.vmem %s477_s19, 512  ;;  %p372_p0 = scmp.lt.s32.totalorder %s477_s19, %s477_s19 }
  0x3e   :  { %p368_p13 = scmp.ne.s32.totalorder %s477_s19, %s367_s10  ;;  %p373_p1 = scmp.lt.s32.totalorder %s367_s10, %s367_s10 }
  0x40   :  { %p374_p2 = por %p373_p1, %p372_p0 }
  0x42   :  { %p375_p3 = pnand %p374_p2, %p368_p13 }
  0x44   :  { %378 = shalt.err (!%p375_p3)
}
  0x45   :  { %56 = dma.hbm_to_vmem [thread:$0]  %s539_s3, 512, %s477_s19, [#allocation10], %s411_s1, %s411_s1, %s412_s12  }
  0x46   :  { %401 = dma.done.wait [#allocation4], 128  }
  0x47   :  { %402 = vsyncadd [#allocation4], 4294967168 }
  0x48   :  { %403 = dma.done.wait [#allocation7], 32  }
  0x49   :  { %404 = vsyncadd [#allocation7], 4294967264 }
  0x4a   :  { %405 = dma.done.wait [#allocation10], 512  }
  0x4b   :  { %406 = vsyncadd [#allocation10], 4294966784  ;;  %v254_v0 = vld [vmem:[#allocation3] sm:$0xff]   ;;  %vm78_vm0 = vcmask 261120   ;;  %v283_v15 = vld [vmem:[#allocation9] sm:$0xff]   ;;  %v415_v16 = vmov 0.0  }
  0x4c   :  { %v255_v1 = vunpack.c.l.bf16 %v254_v0  ;;  %v256_v2 = vunpack.c.h.bf16 %v254_v0  ;;  %262 = vmatprep.subr.bf16.mxu0 %v415_v16  ;;  %v160_v17 = vsel %vm78_vm0, %v283_v15, 0  ;;  %v284_v18 = vld [vmem:[#allocation9 + $0x8] sm:$0xff]   ;;  %v285_v20 = vld [vmem:[#allocation9 + $0x10] sm:$0xff]   ;;  %v286_v22 = vld [vmem:[#allocation9 + $0x18] sm:$0xff]   ;;  %vm416_vm1 = vmmov 0   ;;  %s417_s3 = smov [#allocation11]  }
  0x4d   :  { %263 = vmatpush3.bf16.xpose.msra.mxu0 %v160_v17  ;;  %v163_v19 = vsel %vm78_vm0, %v284_v18, 0  ;;  %v166_v21 = vsel %vm78_vm0, %v285_v20, 0  ;;  %v169_v23 = vsel %vm78_vm0, %v286_v22, 0  ;;  %270 = vmatprep.mubr.msk.bf16.mxu0 %vm416_vm1, %v415_v16  ;;  %v242_v32 = vld [vmem:[#allocation6] ss:$0 sm:$0xff]  ;;  %vm220_vm2 = vcmask 519168  }
  0x4e   :  { %v79_v3 = vsel %vm78_vm0, %v255_v1, 0.0  ;;  %v82_v4 = vsel %vm78_vm0, %v256_v2, 0.0  ;;  %264 = vmatprep.subr.bf16.mxu0 %v415_v16  ;;  %v243_v36 = vld [vmem:[#allocation8] ss:$0 sm:$0xff]  ;;  %s228_s13 = sshll.u32 %s417_s3, 4  ;;  %s229_s13 = int_to_ptr.vmem [resolvable:$true] %s228_s13 }
  0x4f   :  { %80 = vadd.xlane.f32.xlu0 %v79_v3  ;;  %s379_s14 = scalar_lea.vmem %s229_s13, 128  ;;  %p384_p5 = scmp.lt.s32.totalorder %s229_s13, %s229_s13 }
  0x50   :  { %p380_p4 = scmp.ne.s32.totalorder %s229_s13, %s379_s14  ;;  %p385_p6 = scmp.lt.s32.totalorder %s379_s14, %s379_s14 }
  0x52   :  { %p386_p7 = por %p385_p6, %p384_p5 }
  0x53   :  { %83 = vadd.xlane.f32.xlu0 %v82_v4 }
  0x54   :  { %p387_p8 = pnand %p386_p7, %p380_p4 }
  0x55   :  { %265 = vmatpush3.bf16.xpose.msra.mxu0 %v163_v19 }
  0x56   :  { %266 = vmatprep.subr.bf16.mxu0 %v415_v16 }
  0x5d   :  { %267 = vmatpush3.bf16.xpose.msra.mxu0 %v166_v21 }
  0x5e   :  { %268 = vmatprep.subr.bf16.mxu0 %v415_v16 }
  0x65   :  { %269 = vmatpush3.bf16.xpose.msra.mxu0 %v169_v23 }
  0xdc   :  { %v81_v5 = vpop.xlane.xlu0 %80 }
  0xdd   :  { %v86_v6 = vmul.f32 0.03125, %v81_v5 }
  0xdf   :  { %v88_v7 = vsub.f32 %v255_v1, %v86_v6 }
  0xe0   :  { %v84_v8 = vpop.xlane.xlu0 %83 }
  0xe1   :  { %v87_v9 = vmul.f32 0.03125, %v84_v8  ;;  %v90_v10 = vmul.f32 %v88_v7, %v88_v7 }
  0xe3   :  { %v89_v11 = vsub.f32 %v256_v2, %v87_v9  ;;  %v92_v12 = vsel %vm78_vm0, %v90_v10, 0.0 }
  0xe4   :  { %93 = vadd.xlane.f32.xlu1 %v92_v12 }
  0xe5   :  { %v91_v13 = vmul.f32 %v89_v11, %v89_v11 }
  0xe7   :  { %v95_v14 = vsel %vm78_vm0, %v91_v13, 0.0 }
  0xe8   :  { %96 = vadd.xlane.f32.xlu1 %v95_v14 }
 0x171   :  { %v94_v24 = vpop.xlane.xlu1 %93 }
 0x172   :  { %v98_v25 = vmul.f32 0.03125, %v94_v24 }
 0x174   :  { %v100_v26 = vadd.f32 1e-05, %v98_v25 }
 0x175   :  { %v97_v27 = vpop.xlane.xlu1 %96 }
 0x176   :  { %287 = vrsqrt.f32 %v100_v26  ;;  %v99_v28 = vmul.f32 0.03125, %v97_v27 }
 0x178   :  { %v101_v29 = vadd.f32 1e-05, %v99_v28 }
 0x17a   :  { %289 = vrsqrt.f32 %v101_v29 }
 0x180   :  { %v288_v30 = vpop.eup %287 }
 0x181   :  { %v104_v31 = vmul.f32 %v288_v30, %v88_v7 }
 0x183   :  { %v113_v34 = vmul.f32 %v242_v32, %v104_v31 }
 0x184   :  { %v290_v33 = vpop.eup %289 }
 0x185   :  { %v105_v35 = vmul.f32 %v290_v33, %v89_v11  ;;  %v122_v38 = vadd.f32 %v243_v36, %v113_v34 }
 0x187   :  { %v114_v37 = vmul.f32 %v242_v32, %v105_v35 }
 0x189   :  { %v123_v39 = vadd.f32 %v243_v36, %v114_v37 }
 0x18b   :  { %v124_v40 = vpack.c.bf16 %v123_v39, %v122_v38 }
 0x18d   :  { %125 = vst.msk [vmem:[#allocation2] sm:$0xff] %vm78_vm0, %v124_v40 }
 0x194   :  { %v126_v41 = vld [vmem:[#allocation2] sm:$0xff] }
 0x195   :  { %271 = vmatmul.mubr.msk.bf16.vlgmr.msra.gmra.mrb[0].mxu0 %vm78_vm0, %v126_v41 }
 0x268   :  { %v205_v42 = vpop.f32.mrb[0].mxu0 }
 0x269   :  { %v251_v43 = vpack.c.bf16 %v205_v42, %v205_v42  ;;  %v272_v44 = vpop.f32.mrb[1].mxu0 }
 0x26a   :  { %v208_v45 = vpop.f32.mrb[2].mxu0 }
 0x26b   :  { %v252_v46 = vpack.c.bf16 %v208_v45, %v208_v45  ;;  %v273_v47 = vpop.f32.mrb[3].mxu0  ;;  %221 = vst.msk [vmem:[#allocation11] sm:$0xf] %vm220_vm2, %v251_v43 }
 0x26d   :  { %222 = vst.msk [vmem:[#allocation11 + $0x4] sm:$0xf] %vm220_vm2, %v252_v46 }
 0x26e   :  { %390 = shalt.err (!%p387_p8)
}
 0x26f   :  { %s391_s17 = scalar_lea.hbm %s540_s4, 128 }
 0x270   :  { %p392_p9 = scmp.ne.s32.totalorder %s540_s4, %s391_s17  ;;  %p395_p10 = scmp.lt.u32.totalorder %s391_s17, %s540_s4 }
 0x272   :  { %p397_p11 = pnand %p395_p10, %p392_p9 }
 0x274   :  { %400 = shalt.err (!%p397_p11)
}
 0x275   :  { %234 = dma.vmem_to_hbm [thread:$0]  %s229_s13, 128, %s540_s4, [#allocation5], %s411_s1, %s411_s1, %s412_s12  }
 0x276   :  { %407 = dma.done.wait [#allocation5], 128  }
 0x277   :  { %408 = vsyncadd [#allocation5], 4294967168 }
 0x278   :  { %238 = vsyncpa [#allocation4], 1 }
 0x279   :  { %239 = vsyncpa [#allocation7], 1 }
 0x27a   :  { %240 = vsyncpa [#allocation10], 1 }
 0x27b   :  { %241 = vsyncpa [#allocation5], 1 }

</bundles_post_ra>
